<compile_context>
chip_gen: v5e
topology: v5e:2x2
jax: 0.10.0
libtpu: 0.0.40
codegen_flags: <defaults>
</compile_context>

<pallas_src>
import functools

import jax
import jax.numpy as jnp
from jax import lax
from jax.experimental import pallas as pl
from jax.experimental.pallas import tpu as pltpu

_PAD = 8  # guard rows around the flattened h scratch (multiple of 8, >= 1)


def _round_up(x, m):
    return (x + m - 1) // m * m


def _pick_band_rows(H, WP, C, Hc, budget_bytes=20 * 1024 * 1024):
    """Largest band height whose per-step VMEM working set fits the budget
    (sized so double-buffered blocks + f32 scratch + f32 temporaries stay well
    inside v7x's 64 MiB physical VMEM; v5e/v6e have 128 MiB)."""
    best = 8
    for th in (8, 16, 24, 32, 48, 64, 96, 128, 192, 256):
        rows = th * WP
        r_all = (th + 2) * WP + 2 * _PAD
        est = 0
        est += 2 * rows * C * 2                              # x band block (bf16, 2-buffered)
        est += 2 * 2 * WP * C * 2                            # halo-row blocks
        est += 2 * rows * C * 4                              # output block (f32, 2-buffered)
        est += 2 * r_all * Hc * 4                            # h1 + h2 scratch (f32)
        est += 2 * rows * Hc * 4                             # project_in band result before store
        est += 4 * rows * Hc * 4                             # acc1/acc2 + gelu/gating temps
        est += rows * Hc * 2 + rows * C * 4                  # bf16 gated + f32 out
        est += 2 * (2 * C * Hc * 2 + 18 * Hc * 4 + Hc * C * 2)   # weights
        if est <= budget_bytes:
            best = th
    return best


def _gffn_kernel(xband_ref, xtop_ref, xbot_ref, w_in_ref, w_dw1_ref, w_dw2_ref,
                 w_out_ref, o_ref, h1_ref, h2_ref, *, TH, WP, Hc, fuse, approx_gelu):
    rows = TH * WP              # band output rows (flattened row-major over (TH, WP))
    r_all = (TH + 2) * WP       # band rows + one-row top/bottom halo

    w_in = w_in_ref[...]        # (C, 2*Hc) bf16, the two chunk halves adjacent in lanes
    if not fuse:
        w_in1, w_in2 = w_in[:, :Hc], w_in[:, Hc:]

    def project_in_store(x, row_off):
        # 1x1 conv (no bias) on the MXU, split into the two chunk() halves.
        if fuse:   # Hc % 128 == 0 -> one wide matmul, lane-tile-aligned (free) split
            hc = jnp.dot(x, w_in, preferred_element_type=jnp.float32)
            h1, h2 = hc[:, :Hc], hc[:, Hc:]
        else:      # keep halves separate so the big result never needs a lane relayout
            h1 = jnp.dot(x, w_in1, preferred_element_type=jnp.float32)
            h2 = jnp.dot(x, w_in2, preferred_element_type=jnp.float32)
        n = x.shape[0]
        # scratch is f32: the MXU f32 result is stored as-is (no down/up conversion
        # round-trip around the dwconv MAC loop).
        h1_ref[pl.ds(row_off, n), :] = h1
        h2_ref[pl.ds(row_off, n), :] = h2

    project_in_store(xtop_ref[...], _PAD)                 # halo row above the band
    project_in_store(xband_ref[...], _PAD + WP)           # the band itself
    project_in_store(xbot_ref[...], _PAD + WP + rows)     # halo row below the band

    # Zero the guard rows: they are only read by taps whose outputs land in the
    # discarded padded border columns, but keep them clean anyway (cost is tiny).
    zg = jnp.zeros((_PAD, Hc), h1_ref.dtype)
    h1_ref[pl.ds(0, _PAD), :] = zg
    h2_ref[pl.ds(0, _PAD), :] = zg
    h1_ref[pl.ds(_PAD + r_all, _PAD), :] = zg
    h2_ref[pl.ds(_PAD + r_all, _PAD), :] = zg

    # Depthwise 3x3, padding=1: nine statically-offset row-shifted MACs over the
    # flattened padded grid.  WP % 8 == 0 keeps the kx == 1 taps and every dy base
    # window sublane aligned; f32 scratch keeps the +/-1 shifted taps plain
    # sublane-offset loads (no packed-bf16 realign); accumulation is f32
    # (v5e VPU has no bf16 path).
    acc1 = jnp.zeros((rows, Hc), jnp.float32)
    acc2 = jnp.zeros((rows, Hc), jnp.float32)
    t = 0
    for ky in range(3):
        for kx in range(3):
            off = _PAD + ky * WP + (kx - 1)               # static python int
            acc1 = acc1 + h1_ref[pl.ds(off, rows), :] * w_dw1_ref[t:t + 1, :]
            acc2 = acc2 + h2_ref[pl.ds(off, rows), :] * w_dw2_ref[t:t + 1, :]
            t += 1
    # TODO(synk): the kx = 0/2 taps could also be derived from the already-loaded
    # aligned ky windows with pltpu.roll (XLU) once the rotate direction is pinned
    # on this Mosaic build; loads currently have slack, so this is a minor win.

    # gating (exact erf GELU by default, like F.gelu) + project_out (1x1 conv, no bias)
    gated = jax.nn.gelu(acc1, approximate=approx_gelu) * acc2
    out = jnp.dot(gated.astype(jnp.bfloat16), w_out_ref[...],
                  preferred_element_type=jnp.float32)      # (rows, C)
    o_ref[...] = out.astype(o_ref.dtype)


def gffn_pallas(x_nchw, w_in, w_dw, w_out, *, exact_gelu=True, band_rows=None):
    """GFFN forward.  x_nchw: (B, C, H, W).  Weights in PyTorch layout:
       w_in (2*Hc, C), w_dw (2*Hc, 3, 3), w_out (C, Hc)."""
    B, C, H, W = x_nchw.shape
    Hc = w_in.shape[0] // 2
    out_dtype = x_nchw.dtype

    WP = _round_up(W + 2, 8)            # 1 zero column left + >=1 right, sublane aligned
    if band_rows is None:
        band_rows = _pick_band_rows(H, WP, C, Hc)
    TH = max(1, min(int(band_rows), H))
    NB = -(-H // TH)
    Hb = NB * TH
    rows = TH * WP
    r_alloc = (TH + 2) * WP + 2 * _PAD
    fuse = (Hc % 128 == 0)

    # --- glue (plain JAX; transpose + cast + pad fuse into ~one pass over x) ---
    xh = jnp.transpose(x_nchw, (0, 2, 3, 1)).astype(jnp.bfloat16)        # NHWC bf16
    xp = jnp.pad(xh, ((0, 0), (0, Hb - H), (1, WP - W - 1), (0, 0)))     # (B, Hb, WP, C)
    x_band = xp.reshape(B, NB, rows, C)                                  # free reshape
    # one-row halos above/below each band (tiny strided slices)
    zrow = jnp.zeros((B, 1, WP, C), jnp.bfloat16)
    x_top = jnp.concatenate([zrow, xp[:, TH - 1:Hb - 1:TH]], axis=1)     # (B, NB, WP, C)
    x_bot = jnp.concatenate([xp[:, TH:Hb:TH], zrow], axis=1)             # (B, NB, WP, C)

    # --- weights: PyTorch layout -> matmul / tap layout ---
    w_in_f = jnp.transpose(w_in, (1, 0)).astype(jnp.bfloat16)            # (C, 2*Hc)
    w_dw1 = jnp.transpose(w_dw[:Hc], (1, 2, 0)).reshape(9, Hc).astype(jnp.float32)
    w_dw2 = jnp.transpose(w_dw[Hc:], (1, 2, 0)).reshape(9, Hc).astype(jnp.float32)
    w_o = jnp.transpose(w_out, (1, 0)).astype(jnp.bfloat16)              # (Hc, C)

    kernel = functools.partial(_gffn_kernel, TH=TH, WP=WP, Hc=Hc,
                               fuse=fuse, approx_gelu=not exact_gelu)

    out_bands = pl.pallas_call(
        kernel,
        out_shape=jax.ShapeDtypeStruct((B, NB, rows, C), out_dtype),
        grid=(B, NB),
        in_specs=[
            pl.BlockSpec((None, None, rows, C), lambda b, i: (b, i, 0, 0)),  # band
            pl.BlockSpec((None, None, WP, C), lambda b, i: (b, i, 0, 0)),    # top halo row
            pl.BlockSpec((None, None, WP, C), lambda b, i: (b, i, 0, 0)),    # bottom halo row
            pl.BlockSpec((C, 2 * Hc), lambda b, i: (0, 0)),                  # w_in (fused)
            pl.BlockSpec((9, Hc), lambda b, i: (0, 0)),                      # dw taps half 1
            pl.BlockSpec((9, Hc), lambda b, i: (0, 0)),                      # dw taps half 2
            pl.BlockSpec((Hc, C), lambda b, i: (0, 0)),                      # w_out
        ],
        out_specs=pl.BlockSpec((None, None, rows, C), lambda b, i: (b, i, 0, 0)),
        scratch_shapes=[
            pltpu.VMEM((r_alloc, Hc), jnp.float32),
            pltpu.VMEM((r_alloc, Hc), jnp.float32),
        ],
        compiler_params=pltpu.CompilerParams(
            dimension_semantics=("parallel", "parallel"),   # batch x band: keeps both v7x TCs busy
            vmem_limit_bytes=48 * 1024 * 1024),
    )(x_band, x_top, x_bot, w_in_f, w_dw1, w_dw2, w_o)

    out = out_bands.reshape(B, Hb, WP, C)[:, :H, 1:W + 1, :]   # drop padded border/rows
    return jnp.transpose(out, (0, 3, 1, 2))                    # back to NCHW


def gffn_reference(x_nchw, w_in, w_dw, w_out, *, exact_gelu=True):
    """Pure-JAX NCHW reference mirroring the PyTorch module (f32, HIGHEST precision)."""
    Hc2 = w_in.shape[0]
    dn = ("NCHW", "OIHW", "NCHW")
    prec = lax.Precision.HIGHEST
    h = lax.conv_general_dilated(x_nchw, w_in[..., None, None], (1, 1), "VALID",
                                 dimension_numbers=dn, precision=prec)
    h = lax.conv_general_dilated(h, w_dw[:, None, :, :], (1, 1), ((1, 1), (1, 1)),
                                 dimension_numbers=dn, feature_group_count=Hc2,
                                 precision=prec)
    x1, x2 = jnp.split(h, 2, axis=1)
    g = jax.nn.gelu(x1, approximate=not exact_gelu) * x2
    return lax.conv_general_dilated(g, w_out[..., None, None], (1, 1), "VALID",
                                    dimension_numbers=dn, precision=prec)


if __name__ == "__main__":
    def run_case(key, B, C, H, W, expansion, band_rows):
        Hc = int(C * expansion)
        k_x, k_in, k_dw, k_out = jax.random.split(key, 4)
        x = jax.random.normal(k_x, (B, C, H, W), jnp.float32)
        w_in = 0.2 * jax.random.normal(k_in, (2 * Hc, C), jnp.float32)      # project_in (out,in)
        w_dw = 0.2 * jax.random.normal(k_dw, (2 * Hc, 3, 3), jnp.float32)   # depthwise (ch,kh,kw)
        w_out = 0.2 * jax.random.normal(k_out, (C, Hc), jnp.float32)        # project_out (out,in)

        exact = True
        try:
            y = jax.block_until_ready(
                gffn_pallas(x, w_in, w_dw, w_out, exact_gelu=True, band_rows=band_rows))
        except Exception:
            # TODO(synk): exact (erf) GELU may not lower on some Mosaic builds; tanh fallback.
            exact = False
            y = jax.block_until_ready(
                gffn_pallas(x, w_in, w_dw, w_out, exact_gelu=False, band_rows=band_rows))

        y_ref = gffn_reference(x, w_in, w_dw, w_out, exact_gelu=exact)
        assert y.shape == (B, C, H, W), y.shape
        max_err = float(jnp.max(jnp.abs(y.astype(jnp.float32) - y_ref)))
        assert jnp.allclose(y.astype(jnp.float32), y_ref, atol=1e-2, rtol=5e-2), \
            f"max abs err {max_err}"

    key = jax.random.PRNGKey(0)
    k1, k2 = jax.random.split(key)
    # two bands of 8 rows each -> exercises band tiling + halo exchange
    run_case(k1, B=2, C=4, H=16, W=16, expansion=2, band_rows=8)
    # ragged H/W, auto band size, odd channel counts -> single-band path + W padding
    run_case(k2, B=1, C=5, H=13, W=11, expansion=2, band_rows=None)
    print("KERNEL_OK")
</pallas_src>

<mosaic_0001>
module attributes {stable_mosaic.version = 11 : i64} {
  func.func @_gffn_kernel(%arg0: i32, %arg1: i32, %arg2: memref<1x1x192x4xbf16, #tpu.memory_space<vmem>>, %arg3: memref<1x1x24x4xbf16, #tpu.memory_space<vmem>>, %arg4: memref<1x1x24x4xbf16, #tpu.memory_space<vmem>>, %arg5: memref<4x16xbf16, #tpu.memory_space<vmem>>, %arg6: memref<9x8xf32, #tpu.memory_space<vmem>>, %arg7: memref<9x8xf32, #tpu.memory_space<vmem>>, %arg8: memref<8x4xbf16, #tpu.memory_space<vmem>>, %arg9: memref<1x1x192x4xf32, #tpu.memory_space<vmem>>, %arg10: memref<256x8xf32, #tpu.memory_space<vmem>>, %arg11: memref<256x8xf32, #tpu.memory_space<vmem>>) attributes {dimension_semantics = [#tpu.dimension_semantics<parallel>, #tpu.dimension_semantics<parallel>], iteration_bounds = array<i64: 2, 2>, scalar_prefetch = 0 : i64, scratch_operands = 2 : i64, tpu.core_type = #tpu.core_type<tc>, window_params = [{transform_indices = @transform_0, window_bounds = array<i64: 1, 1, 192, 4>}, {transform_indices = @transform_1, window_bounds = array<i64: 1, 1, 24, 4>}, {transform_indices = @transform_2, window_bounds = array<i64: 1, 1, 24, 4>}, {pipeline_mode = #tpu.pipeline_mode<synchronous>, transform_indices = @transform_3, window_bounds = array<i64: 4, 16>}, {pipeline_mode = #tpu.pipeline_mode<synchronous>, transform_indices = @transform_4, window_bounds = array<i64: 9, 8>}, {pipeline_mode = #tpu.pipeline_mode<synchronous>, transform_indices = @transform_5, window_bounds = array<i64: 9, 8>}, {pipeline_mode = #tpu.pipeline_mode<synchronous>, transform_indices = @transform_6, window_bounds = array<i64: 8, 4>}, {transform_indices = @transform_7, window_bounds = array<i64: 1, 1, 192, 4>}]} {
    %c0 = arith.constant 0 : index
    %c0_0 = arith.constant 0 : index
    %0 = vector.load %arg5[%c0, %c0_0] : memref<4x16xbf16, #tpu.memory_space<vmem>>, vector<4x16xbf16>
    %1 = vector.extract_strided_slice %0 {offsets = [0, 0], sizes = [4, 8], strides = [1, 1]} : vector<4x16xbf16> to vector<4x8xbf16>
    %2 = vector.extract_strided_slice %0 {offsets = [0, 8], sizes = [4, 8], strides = [1, 1]} : vector<4x16xbf16> to vector<4x8xbf16>
    %c0_1 = arith.constant 0 : index
    %c0_2 = arith.constant 0 : index
    %c0_3 = arith.constant 0 : index
    %c0_4 = arith.constant 0 : index
    %3 = vector.load %arg3[%c0_1, %c0_2, %c0_3, %c0_4] : memref<1x1x24x4xbf16, #tpu.memory_space<vmem>>, vector<1x1x24x4xbf16>
    %4 = vector.shape_cast %3 : vector<1x1x24x4xbf16> to vector<24x4xbf16>
    %cst = arith.constant dense<0.000000e+00> : vector<24x8xf32>
    %5 = tpu.matmul %4, %1, %cst {dimension_numbers = #tpu.dot_dimension_numbers<[1], [0], [0], [1], [0, 0, 1, 1], [], []>} : vector<24x4xbf16>, vector<4x8xbf16>, vector<24x8xf32> -> vector<24x8xf32>
    %cst_5 = arith.constant dense<0.000000e+00> : vector<24x8xf32>
    %6 = tpu.matmul %4, %2, %cst_5 {dimension_numbers = #tpu.dot_dimension_numbers<[1], [0], [0], [1], [0, 0, 1, 1], [], []>} : vector<24x4xbf16>, vector<4x8xbf16>, vector<24x8xf32> -> vector<24x8xf32>
    %c8 = arith.constant 8 : index
    %c0_6 = arith.constant 0 : index
    %7 = vector.load %arg10[%c8, %c0_6] : memref<256x8xf32, #tpu.memory_space<vmem>>, vector<24x8xf32>
    tpu.vector_store %arg10[%c8, %c0_6], %5 {strides = array<i32>} : memref<256x8xf32, #tpu.memory_space<vmem>>, vector<24x8xf32>,
    %c8_7 = arith.constant 8 : index
    %c0_8 = arith.constant 0 : index
    %8 = vector.load %arg11[%c8_7, %c0_8] : memref<256x8xf32, #tpu.memory_space<vmem>>, vector<24x8xf32>
    tpu.vector_store %arg11[%c8_7, %c0_8], %6 {strides = array<i32>} : memref<256x8xf32, #tpu.memory_space<vmem>>, vector<24x8xf32>,
    %c0_9 = arith.constant 0 : index
    %c0_10 = arith.constant 0 : index
    %c0_11 = arith.constant 0 : index
    %c0_12 = arith.constant 0 : index
    %9 = vector.load %arg2[%c0_9, %c0_10, %c0_11, %c0_12] : memref<1x1x192x4xbf16, #tpu.memory_space<vmem>>, vector<1x1x192x4xbf16>
    %10 = vector.shape_cast %9 : vector<1x1x192x4xbf16> to vector<192x4xbf16>
    %cst_13 = arith.constant dense<0.000000e+00> : vector<192x8xf32>
    %11 = tpu.matmul %10, %1, %cst_13 {dimension_numbers = #tpu.dot_dimension_numbers<[1], [0], [0], [1], [0, 0, 1, 1], [], []>} : vector<192x4xbf16>, vector<4x8xbf16>, vector<192x8xf32> -> vector<192x8xf32>
    %cst_14 = arith.constant dense<0.000000e+00> : vector<192x8xf32>
    %12 = tpu.matmul %10, %2, %cst_14 {dimension_numbers = #tpu.dot_dimension_numbers<[1], [0], [0], [1], [0, 0, 1, 1], [], []>} : vector<192x4xbf16>, vector<4x8xbf16>, vector<192x8xf32> -> vector<192x8xf32>
    %c32 = arith.constant 32 : index
    %c0_15 = arith.constant 0 : index
    %13 = vector.load %arg10[%c32, %c0_15] : memref<256x8xf32, #tpu.memory_space<vmem>>, vector<192x8xf32>
    tpu.vector_store %arg10[%c32, %c0_15], %11 {strides = array<i32>} : memref<256x8xf32, #tpu.memory_space<vmem>>, vector<192x8xf32>,
    %c32_16 = arith.constant 32 : index
    %c0_17 = arith.constant 0 : index
    %14 = vector.load %arg11[%c32_16, %c0_17] : memref<256x8xf32, #tpu.memory_space<vmem>>, vector<192x8xf32>
    tpu.vector_store %arg11[%c32_16, %c0_17], %12 {strides = array<i32>} : memref<256x8xf32, #tpu.memory_space<vmem>>, vector<192x8xf32>,
    %c0_18 = arith.constant 0 : index
    %c0_19 = arith.constant 0 : index
    %c0_20 = arith.constant 0 : index
    %c0_21 = arith.constant 0 : index
    %15 = vector.load %arg4[%c0_18, %c0_19, %c0_20, %c0_21] : memref<1x1x24x4xbf16, #tpu.memory_space<vmem>>, vector<1x1x24x4xbf16>
    %16 = vector.shape_cast %15 : vector<1x1x24x4xbf16> to vector<24x4xbf16>
    %cst_22 = arith.constant dense<0.000000e+00> : vector<24x8xf32>
    %17 = tpu.matmul %16, %1, %cst_22 {dimension_numbers = #tpu.dot_dimension_numbers<[1], [0], [0], [1], [0, 0, 1, 1], [], []>} : vector<24x4xbf16>, vector<4x8xbf16>, vector<24x8xf32> -> vector<24x8xf32>
    %cst_23 = arith.constant dense<0.000000e+00> : vector<24x8xf32>
    %18 = tpu.matmul %16, %2, %cst_23 {dimension_numbers = #tpu.dot_dimension_numbers<[1], [0], [0], [1], [0, 0, 1, 1], [], []>} : vector<24x4xbf16>, vector<4x8xbf16>, vector<24x8xf32> -> vector<24x8xf32>
    %c224 = arith.constant 224 : index
    %c0_24 = arith.constant 0 : index
    %19 = vector.load %arg10[%c224, %c0_24] : memref<256x8xf32, #tpu.memory_space<vmem>>, vector<24x8xf32>
    tpu.vector_store %arg10[%c224, %c0_24], %17 {strides = array<i32>} : memref<256x8xf32, #tpu.memory_space<vmem>>, vector<24x8xf32>,
    %c224_25 = arith.constant 224 : index
    %c0_26 = arith.constant 0 : index
    %20 = vector.load %arg11[%c224_25, %c0_26] : memref<256x8xf32, #tpu.memory_space<vmem>>, vector<24x8xf32>
    tpu.vector_store %arg11[%c224_25, %c0_26], %18 {strides = array<i32>} : memref<256x8xf32, #tpu.memory_space<vmem>>, vector<24x8xf32>,
    %cst_27 = arith.constant 0.000000e+00 : f32
    %21 = vector.broadcast %cst_27 : f32 to vector<8x8xf32>
    %c0_28 = arith.constant 0 : index
    %c0_29 = arith.constant 0 : index
    %22 = vector.load %arg10[%c0_28, %c0_29] : memref<256x8xf32, #tpu.memory_space<vmem>>, vector<8x8xf32>
    tpu.vector_store %arg10[%c0_28, %c0_29], %21 {strides = array<i32>} : memref<256x8xf32, #tpu.memory_space<vmem>>, vector<8x8xf32>,
    %c0_30 = arith.constant 0 : index
    %c0_31 = arith.constant 0 : index
    %23 = vector.load %arg11[%c0_30, %c0_31] : memref<256x8xf32, #tpu.memory_space<vmem>>, vector<8x8xf32>
    tpu.vector_store %arg11[%c0_30, %c0_31], %21 {strides = array<i32>} : memref<256x8xf32, #tpu.memory_space<vmem>>, vector<8x8xf32>,
    %c248 = arith.constant 248 : index
    %c0_32 = arith.constant 0 : index
    %24 = vector.load %arg10[%c248, %c0_32] : memref<256x8xf32, #tpu.memory_space<vmem>>, vector<8x8xf32>
    tpu.vector_store %arg10[%c248, %c0_32], %21 {strides = array<i32>} : memref<256x8xf32, #tpu.memory_space<vmem>>, vector<8x8xf32>,
    %c248_33 = arith.constant 248 : index
    %c0_34 = arith.constant 0 : index
    %25 = vector.load %arg11[%c248_33, %c0_34] : memref<256x8xf32, #tpu.memory_space<vmem>>, vector<8x8xf32>
    tpu.vector_store %arg11[%c248_33, %c0_34], %21 {strides = array<i32>} : memref<256x8xf32, #tpu.memory_space<vmem>>, vector<8x8xf32>,
    %cst_35 = arith.constant 0.000000e+00 : f32
    %26 = vector.broadcast %cst_35 : f32 to vector<192x8xf32>
    %cst_36 = arith.constant 0.000000e+00 : f32
    %27 = vector.broadcast %cst_36 : f32 to vector<192x8xf32>
    %c7 = arith.constant 7 : index
    %c0_37 = arith.constant 0 : index
    %28 = vector.load %arg10[%c7, %c0_37] : memref<256x8xf32, #tpu.memory_space<vmem>>, vector<192x8xf32>
    %c0_38 = arith.constant 0 : index
    %c0_39 = arith.constant 0 : index
    %29 = vector.load %arg6[%c0_38, %c0_39] : memref<9x8xf32, #tpu.memory_space<vmem>>, vector<1x8xf32>
    %30 = vector.broadcast %29 : vector<1x8xf32> to vector<192x8xf32>
    %31 = arith.mulf %28, %30 : vector<192x8xf32>
    %32 = arith.addf %26, %31 : vector<192x8xf32>
    %c7_40 = arith.constant 7 : index
    %c0_41 = arith.constant 0 : index
    %33 = vector.load %arg11[%c7_40, %c0_41] : memref<256x8xf32, #tpu.memory_space<vmem>>, vector<192x8xf32>
    %c0_42 = arith.constant 0 : index
    %c0_43 = arith.constant 0 : index
    %34 = vector.load %arg7[%c0_42, %c0_43] : memref<9x8xf32, #tpu.memory_space<vmem>>, vector<1x8xf32>
    %35 = vector.broadcast %34 : vector<1x8xf32> to vector<192x8xf32>
    %36 = arith.mulf %33, %35 : vector<192x8xf32>
    %37 = arith.addf %27, %36 : vector<192x8xf32>
    %c8_44 = arith.constant 8 : index
    %c0_45 = arith.constant 0 : index
    %38 = vector.load %arg10[%c8_44, %c0_45] : memref<256x8xf32, #tpu.memory_space<vmem>>, vector<192x8xf32>
    %c1 = arith.constant 1 : index
    %c0_46 = arith.constant 0 : index
    %39 = vector.load %arg6[%c1, %c0_46] : memref<9x8xf32, #tpu.memory_space<vmem>>, vector<1x8xf32>
    %40 = vector.broadcast %39 : vector<1x8xf32> to vector<192x8xf32>
    %41 = arith.mulf %38, %40 : vector<192x8xf32>
    %42 = arith.addf %32, %41 : vector<192x8xf32>
    %c8_47 = arith.constant 8 : index
    %c0_48 = arith.constant 0 : index
    %43 = vector.load %arg11[%c8_47, %c0_48] : memref<256x8xf32, #tpu.memory_space<vmem>>, vector<192x8xf32>
    %c1_49 = arith.constant 1 : index
    %c0_50 = arith.constant 0 : index
    %44 = vector.load %arg7[%c1_49, %c0_50] : memref<9x8xf32, #tpu.memory_space<vmem>>, vector<1x8xf32>
    %45 = vector.broadcast %44 : vector<1x8xf32> to vector<192x8xf32>
    %46 = arith.mulf %43, %45 : vector<192x8xf32>
    %47 = arith.addf %37, %46 : vector<192x8xf32>
    %c9 = arith.constant 9 : index
    %c0_51 = arith.constant 0 : index
    %48 = vector.load %arg10[%c9, %c0_51] : memref<256x8xf32, #tpu.memory_space<vmem>>, vector<192x8xf32>
    %c2 = arith.constant 2 : index
    %c0_52 = arith.constant 0 : index
    %49 = vector.load %arg6[%c2, %c0_52] : memref<9x8xf32, #tpu.memory_space<vmem>>, vector<1x8xf32>
    %50 = vector.broadcast %49 : vector<1x8xf32> to vector<192x8xf32>
    %51 = arith.mulf %48, %50 : vector<192x8xf32>
    %52 = arith.addf %42, %51 : vector<192x8xf32>
    %c9_53 = arith.constant 9 : index
    %c0_54 = arith.constant 0 : index
    %53 = vector.load %arg11[%c9_53, %c0_54] : memref<256x8xf32, #tpu.memory_space<vmem>>, vector<192x8xf32>
    %c2_55 = arith.constant 2 : index
    %c0_56 = arith.constant 0 : index
    %54 = vector.load %arg7[%c2_55, %c0_56] : memref<9x8xf32, #tpu.memory_space<vmem>>, vector<1x8xf32>
    %55 = vector.broadcast %54 : vector<1x8xf32> to vector<192x8xf32>
    %56 = arith.mulf %53, %55 : vector<192x8xf32>
    %57 = arith.addf %47, %56 : vector<192x8xf32>
    %c31 = arith.constant 31 : index
    %c0_57 = arith.constant 0 : index
    %58 = vector.load %arg10[%c31, %c0_57] : memref<256x8xf32, #tpu.memory_space<vmem>>, vector<192x8xf32>
    %c3 = arith.constant 3 : index
    %c0_58 = arith.constant 0 : index
    %59 = vector.load %arg6[%c3, %c0_58] : memref<9x8xf32, #tpu.memory_space<vmem>>, vector<1x8xf32>
    %60 = vector.broadcast %59 : vector<1x8xf32> to vector<192x8xf32>
    %61 = arith.mulf %58, %60 : vector<192x8xf32>
    %62 = arith.addf %52, %61 : vector<192x8xf32>
    %c31_59 = arith.constant 31 : index
    %c0_60 = arith.constant 0 : index
    %63 = vector.load %arg11[%c31_59, %c0_60] : memref<256x8xf32, #tpu.memory_space<vmem>>, vector<192x8xf32>
    %c3_61 = arith.constant 3 : index
    %c0_62 = arith.constant 0 : index
    %64 = vector.load %arg7[%c3_61, %c0_62] : memref<9x8xf32, #tpu.memory_space<vmem>>, vector<1x8xf32>
    %65 = vector.broadcast %64 : vector<1x8xf32> to vector<192x8xf32>
    %66 = arith.mulf %63, %65 : vector<192x8xf32>
    %67 = arith.addf %57, %66 : vector<192x8xf32>
    %c32_63 = arith.constant 32 : index
    %c0_64 = arith.constant 0 : index
    %68 = vector.load %arg10[%c32_63, %c0_64] : memref<256x8xf32, #tpu.memory_space<vmem>>, vector<192x8xf32>
    %c4 = arith.constant 4 : index
    %c0_65 = arith.constant 0 : index
    %69 = vector.load %arg6[%c4, %c0_65] : memref<9x8xf32, #tpu.memory_space<vmem>>, vector<1x8xf32>
    %70 = vector.broadcast %69 : vector<1x8xf32> to vector<192x8xf32>
    %71 = arith.mulf %68, %70 : vector<192x8xf32>
    %72 = arith.addf %62, %71 : vector<192x8xf32>
    %c32_66 = arith.constant 32 : index
    %c0_67 = arith.constant 0 : index
    %73 = vector.load %arg11[%c32_66, %c0_67] : memref<256x8xf32, #tpu.memory_space<vmem>>, vector<192x8xf32>
    %c4_68 = arith.constant 4 : index
    %c0_69 = arith.constant 0 : index
    %74 = vector.load %arg7[%c4_68, %c0_69] : memref<9x8xf32, #tpu.memory_space<vmem>>, vector<1x8xf32>
    %75 = vector.broadcast %74 : vector<1x8xf32> to vector<192x8xf32>
    %76 = arith.mulf %73, %75 : vector<192x8xf32>
    %77 = arith.addf %67, %76 : vector<192x8xf32>
    %c33 = arith.constant 33 : index
    %c0_70 = arith.constant 0 : index
    %78 = vector.load %arg10[%c33, %c0_70] : memref<256x8xf32, #tpu.memory_space<vmem>>, vector<192x8xf32>
    %c5 = arith.constant 5 : index
    %c0_71 = arith.constant 0 : index
    %79 = vector.load %arg6[%c5, %c0_71] : memref<9x8xf32, #tpu.memory_space<vmem>>, vector<1x8xf32>
    %80 = vector.broadcast %79 : vector<1x8xf32> to vector<192x8xf32>
    %81 = arith.mulf %78, %80 : vector<192x8xf32>
    %82 = arith.addf %72, %81 : vector<192x8xf32>
    %c33_72 = arith.constant 33 : index
    %c0_73 = arith.constant 0 : index
    %83 = vector.load %arg11[%c33_72, %c0_73] : memref<256x8xf32, #tpu.memory_space<vmem>>, vector<192x8xf32>
    %c5_74 = arith.constant 5 : index
    %c0_75 = arith.constant 0 : index
    %84 = vector.load %arg7[%c5_74, %c0_75] : memref<9x8xf32, #tpu.memory_space<vmem>>, vector<1x8xf32>
    %85 = vector.broadcast %84 : vector<1x8xf32> to vector<192x8xf32>
    %86 = arith.mulf %83, %85 : vector<192x8xf32>
    %87 = arith.addf %77, %86 : vector<192x8xf32>
    %c55 = arith.constant 55 : index
    %c0_76 = arith.constant 0 : index
    %88 = vector.load %arg10[%c55, %c0_76] : memref<256x8xf32, #tpu.memory_space<vmem>>, vector<192x8xf32>
    %c6 = arith.constant 6 : index
    %c0_77 = arith.constant 0 : index
    %89 = vector.load %arg6[%c6, %c0_77] : memref<9x8xf32, #tpu.memory_space<vmem>>, vector<1x8xf32>
    %90 = vector.broadcast %89 : vector<1x8xf32> to vector<192x8xf32>
    %91 = arith.mulf %88, %90 : vector<192x8xf32>
    %92 = arith.addf %82, %91 : vector<192x8xf32>
    %c55_78 = arith.constant 55 : index
    %c0_79 = arith.constant 0 : index
    %93 = vector.load %arg11[%c55_78, %c0_79] : memref<256x8xf32, #tpu.memory_space<vmem>>, vector<192x8xf32>
    %c6_80 = arith.constant 6 : index
    %c0_81 = arith.constant 0 : index
    %94 = vector.load %arg7[%c6_80, %c0_81] : memref<9x8xf32, #tpu.memory_space<vmem>>, vector<1x8xf32>
    %95 = vector.broadcast %94 : vector<1x8xf32> to vector<192x8xf32>
    %96 = arith.mulf %93, %95 : vector<192x8xf32>
    %97 = arith.addf %87, %96 : vector<192x8xf32>
    %c56 = arith.constant 56 : index
    %c0_82 = arith.constant 0 : index
    %98 = vector.load %arg10[%c56, %c0_82] : memref<256x8xf32, #tpu.memory_space<vmem>>, vector<192x8xf32>
    %c7_83 = arith.constant 7 : index
    %c0_84 = arith.constant 0 : index
    %99 = vector.load %arg6[%c7_83, %c0_84] : memref<9x8xf32, #tpu.memory_space<vmem>>, vector<1x8xf32>
    %100 = vector.broadcast %99 : vector<1x8xf32> to vector<192x8xf32>
    %101 = arith.mulf %98, %100 : vector<192x8xf32>
    %102 = arith.addf %92, %101 : vector<192x8xf32>
    %c56_85 = arith.constant 56 : index
    %c0_86 = arith.constant 0 : index
    %103 = vector.load %arg11[%c56_85, %c0_86] : memref<256x8xf32, #tpu.memory_space<vmem>>, vector<192x8xf32>
    %c7_87 = arith.constant 7 : index
    %c0_88 = arith.constant 0 : index
    %104 = vector.load %arg7[%c7_87, %c0_88] : memref<9x8xf32, #tpu.memory_space<vmem>>, vector<1x8xf32>
    %105 = vector.broadcast %104 : vector<1x8xf32> to vector<192x8xf32>
    %106 = arith.mulf %103, %105 : vector<192x8xf32>
    %107 = arith.addf %97, %106 : vector<192x8xf32>
    %c57 = arith.constant 57 : index
    %c0_89 = arith.constant 0 : index
    %108 = vector.load %arg10[%c57, %c0_89] : memref<256x8xf32, #tpu.memory_space<vmem>>, vector<192x8xf32>
    %c8_90 = arith.constant 8 : index
    %c0_91 = arith.constant 0 : index
    %109 = vector.load %arg6[%c8_90, %c0_91] : memref<9x8xf32, #tpu.memory_space<vmem>>, vector<1x8xf32>
    %110 = vector.broadcast %109 : vector<1x8xf32> to vector<192x8xf32>
    %111 = arith.mulf %108, %110 : vector<192x8xf32>
    %112 = arith.addf %102, %111 : vector<192x8xf32>
    %c57_92 = arith.constant 57 : index
    %c0_93 = arith.constant 0 : index
    %113 = vector.load %arg11[%c57_92, %c0_93] : memref<256x8xf32, #tpu.memory_space<vmem>>, vector<192x8xf32>
    %c8_94 = arith.constant 8 : index
    %c0_95 = arith.constant 0 : index
    %114 = vector.load %arg7[%c8_94, %c0_95] : memref<9x8xf32, #tpu.memory_space<vmem>>, vector<1x8xf32>
    %115 = vector.broadcast %114 : vector<1x8xf32> to vector<192x8xf32>
    %116 = arith.mulf %113, %115 : vector<192x8xf32>
    %117 = arith.addf %107, %116 : vector<192x8xf32>
    %118 = arith.mulf %112, %112 : vector<192x8xf32>
    %119 = arith.mulf %112, %118 : vector<192x8xf32>
    %cst_96 = arith.constant 4.471500e-02 : f32
    %120 = vector.broadcast %cst_96 : f32 to vector<192x8xf32>
    %121 = arith.mulf %120, %119 : vector<192x8xf32>
    %122 = arith.addf %112, %121 : vector<192x8xf32>
    %cst_97 = arith.constant 0.797884583 : f32
    %123 = vector.broadcast %cst_97 : f32 to vector<192x8xf32>
    %124 = arith.mulf %123, %122 : vector<192x8xf32>
    %125 = math.tanh %124 : vector<192x8xf32>
    %cst_98 = arith.constant 1.000000e+00 : f32
    %126 = vector.broadcast %cst_98 : f32 to vector<192x8xf32>
    %127 = arith.addf %126, %125 : vector<192x8xf32>
    %cst_99 = arith.constant 5.000000e-01 : f32
    %128 = vector.broadcast %cst_99 : f32 to vector<192x8xf32>
    %129 = arith.mulf %128, %127 : vector<192x8xf32>
    %130 = arith.mulf %112, %129 : vector<192x8xf32>
    %131 = arith.mulf %130, %117 : vector<192x8xf32>
    %132 = arith.truncf %131 : vector<192x8xf32> to vector<192x8xbf16>
    %c0_100 = arith.constant 0 : index
    %c0_101 = arith.constant 0 : index
    %133 = vector.load %arg8[%c0_100, %c0_101] : memref<8x4xbf16, #tpu.memory_space<vmem>>, vector<8x4xbf16>
    %cst_102 = arith.constant dense<0.000000e+00> : vector<192x4xf32>
    %134 = tpu.matmul %132, %133, %cst_102 {dimension_numbers = #tpu.dot_dimension_numbers<[1], [0], [0], [1], [0, 0, 1, 1], [], []>} : vector<192x8xbf16>, vector<8x4xbf16>, vector<192x4xf32> -> vector<192x4xf32>
    %c0_103 = arith.constant 0 : index
    %c0_104 = arith.constant 0 : index
    %c0_105 = arith.constant 0 : index
    %c0_106 = arith.constant 0 : index
    %135 = vector.load %arg9[%c0_103, %c0_104, %c0_105, %c0_106] : memref<1x1x192x4xf32, #tpu.memory_space<vmem>>, vector<1x1x192x4xf32>
    %136 = vector.shape_cast %135 : vector<1x1x192x4xf32> to vector<192x4xf32>
    %137 = vector.shape_cast %134 : vector<192x4xf32> to vector<1x1x192x4xf32>
    tpu.vector_store %arg9[%c0_103, %c0_104, %c0_105, %c0_106], %137 {strides = array<i32>} : memref<1x1x192x4xf32, #tpu.memory_space<vmem>>, vector<1x1x192x4xf32>,
    return
  }
  func.func @transform_0(%arg0: i32, %arg1: i32) -> (i32, i32, i32, i32) {
    %c0_i32 = arith.constant 0 : i32
    %c0_i32_0 = arith.constant 0 : i32
    %c0_i32_1 = arith.constant 0 : i32
    return %arg0, %arg1, %c0_i32, %c0_i32_0 : i32, i32, i32, i32
  }
  func.func @transform_1(%arg0: i32, %arg1: i32) -> (i32, i32, i32, i32) {
    %c0_i32 = arith.constant 0 : i32
    %c0_i32_0 = arith.constant 0 : i32
    %c0_i32_1 = arith.constant 0 : i32
    return %arg0, %arg1, %c0_i32, %c0_i32_0 : i32, i32, i32, i32
  }
  func.func @transform_2(%arg0: i32, %arg1: i32) -> (i32, i32, i32, i32) {
    %c0_i32 = arith.constant 0 : i32
    %c0_i32_0 = arith.constant 0 : i32
    %c0_i32_1 = arith.constant 0 : i32
    return %arg0, %arg1, %c0_i32, %c0_i32_0 : i32, i32, i32, i32
  }
  func.func @transform_3(%arg0: i32, %arg1: i32) -> (i32, i32) {
    %c0_i32 = arith.constant 0 : i32
    %c0_i32_0 = arith.constant 0 : i32
    %c0_i32_1 = arith.constant 0 : i32
    return %c0_i32, %c0_i32_0 : i32, i32
  }
  func.func @transform_4(%arg0: i32, %arg1: i32) -> (i32, i32) {
    %c0_i32 = arith.constant 0 : i32
    %c0_i32_0 = arith.constant 0 : i32
    %c0_i32_1 = arith.constant 0 : i32
    return %c0_i32, %c0_i32_0 : i32, i32
  }
  func.func @transform_5(%arg0: i32, %arg1: i32) -> (i32, i32) {
    %c0_i32 = arith.constant 0 : i32
    %c0_i32_0 = arith.constant 0 : i32
    %c0_i32_1 = arith.constant 0 : i32
    return %c0_i32, %c0_i32_0 : i32, i32
  }
  func.func @transform_6(%arg0: i32, %arg1: i32) -> (i32, i32) {
    %c0_i32 = arith.constant 0 : i32
    %c0_i32_0 = arith.constant 0 : i32
    %c0_i32_1 = arith.constant 0 : i32
    return %c0_i32, %c0_i32_0 : i32, i32
  }
  func.func @transform_7(%arg0: i32, %arg1: i32) -> (i32, i32, i32, i32) {
    %c0_i32 = arith.constant 0 : i32
    %c0_i32_0 = arith.constant 0 : i32
    %c0_i32_1 = arith.constant 0 : i32
    return %arg0, %arg1, %c0_i32, %c0_i32_0 : i32, i32, i32, i32
  }
}

</mosaic_0001>

<bundles_post_ra>
// kernel: tpu_custom_call.1
= control target key start
LH: loop header
LB: loop body
LE: loop exit
PB: predicated region body
PF: predicated region fallthrough
CT: control target
= control target key end

     0   :  { %s2817_s24 = smov 0   ;;  %s2819_s25 = smov 0   ;;  %s4896_s0 = inlined_call_operand.vmem [shape: bf16[2,2,192,4], index: 0, kind: input, shape index: {}]   ;;  %s4897_s1 = inlined_call_operand.vmem [shape: bf16[2,2,24,4], index: 1, kind: input, shape index: {}]   ;;  %s4898_s2 = inlined_call_operand.vmem [shape: bf16[2,2,24,4], index: 2, kind: input, shape index: {}]   ;;  %s4899_s3 = inlined_call_operand.vmem [shape: bf16[4,16], index: 3, kind: input, shape index: {}]   ;;  %s4900_s4 = inlined_call_operand.vmem [shape: f32[9,8], index: 4, kind: input, shape index: {}]   ;;  %s4901_s5 = inlined_call_operand.vmem [shape: f32[9,8], index: 5, kind: input, shape index: {}]   ;;  %s4902_s6 = inlined_call_operand.vmem [shape: bf16[8,4], index: 6, kind: input, shape index: {}]   ;;  %s4903_s7 = inlined_call_operand.vmem [shape: f32[2,2,192,4], index: 7, kind: output, shape index: {}]  }
   0x1   :  { %s2821_s26 = smov 0   ;;  %s2823_s27 = smov 0  }
   0x2   :  { %s2825_s28 = smov 0  }
   0x3 LB: > { %s26_s29 = sadd.s32 1, %s2765_s26  ;;  %s29_s30 = sadd.s32 1, %s2769_s27  ;;  %s2773_s28 = sphi %s2825_s28, %s17_s28   ;;  %s2769_s27 = sphi %s2823_s27, %s5231_s27   ;;  %s2765_s26 = sphi %s2821_s26, %s5230_s26   ;;  %s2761_s25 = sphi %s2819_s25, %s5229_s25   ;;  %s2757_s24 = sphi %s2817_s24, %s5228_s24  }
   0x4   : > { %p27_p0 = scmp.ge.s32.totalorder %s26_s29, 2  ;;  %p2450_p1 = scmp.ge.s32.totalorder %s2773_s28, 1 }
   0x5   : > { %p289_p2 = scmp.lt.s32.totalorder %s2773_s28, 5 }
   0x6   : > { %s5233_s29 = smov (%p27_p0, %s26_s29), 0  ;;  %s5235_s30 = smov (!%p27_p0, %s29_s30), %s2769_s27 }
   0x7   : > { %p290_p3 = pnand %p2450_p1, %p289_p2  ;;  %p31_p4 = scmp.ge.s32.totalorder %s5235_s30, 2 }
   0x9   : > { %s5237_s30 = smov (%p31_p4, %s5235_s30), 0  ;;  %293 = sbr.rel (%p290_p3) target bundleno = 724 (0x2d4), region = 48 }
   0xe   : > { %v384_v0 = vld [vmem:[%s4899_s3] sm:$0x3]  ;;  %vm403_vm0 = vcmask 1041408   ;;  %p347_p5 = scmp.lt.s32.totalorder %s2761_s25, 1  ;;  %p349_p6 = scmp.lt.s32.totalorder %s2757_s24, 1  ;;  %vm396_vm1 = vcmask 31744  }
   0xf   : > { %425 = vst [vmem:[#allocation1] ss:$4 sm:$0xff] %v384_v0  ;;  %v405_v1 = vsel %vm403_vm0, %v384_v0, 0  ;;  %s2775_s20 = smov 120   ;;  %vm451_vm2 = vcmask 64512   ;;  %v2776_v51 = vmov 0.0  }
  0x10   : > { %2571 = vmatpush.bf16.msra.mxu2 %v405_v1  ;;  %s5239_s25 = smov (!%p347_p5, %s2761_s25), 1  ;;  %414 = vmatpush.bf16.msra.mxu0 %v405_v1  ;;  %s5241_s24 = smov (!%p349_p6, %s2757_s24), 1  ;;  %v2956_v41 = vld [vmem:[%s4900_s4] ss:$0 sm:$0xff]  ;;  %v2961_v42 = vld [vmem:[%s4900_s4 + $0x1] ss:$0 sm:$0xff] }
  0x11   : > { %s2575_s10 = smul.u32 48, %s5239_s25  ;;  %v2978_v49 = vld [vmem:[%s4900_s4 + $0x2] ss:$0 sm:$0xff]  ;;  %840 = vst.msk [vmem:[#allocation3] sm:$0xff] %vm451_vm2, %v2776_v51  ;;  %vm2212_vm3 = vcmask 1043456  }
  0x12   : > { %s2574_s11 = smul.u32 24, %s5241_s24  ;;  %839 = vst.msk [vmem:[#allocation2] sm:$0xff] %vm451_vm2, %v2776_v51 }
  0x13   : > { %s2576_s17 = smul.u32 3, %s5241_s24  ;;  %841 = vst.msk [vmem:[#allocation2 + $0xf8] sm:$0xff] %vm451_vm2, %v2776_v51 }
  0x14   : > { %796 = vmatpush.bf16.msrb.mxu0 %v405_v1  ;;  %s2851_s12 = sadd.s32 %s2575_s10, %s2574_s11  ;;  %s2577_s18 = smul.u32 6, %s5239_s25  ;;  %842 = vst.msk [vmem:[#allocation3 + $0xf8] sm:$0xff] %vm451_vm2, %v2776_v51 }
  0x15   : > { %s2451_s13 = sshll.u32 %s2851_s12, 2 }
  0x16   : > { %v426_v2 = vld.sshfl [vmem:[#allocation1] sm:$0xff pattern:$0x73625140]  ;;  %s2857_s16 = scalar_lea.vmem %s4896_s0, %s2451_s13  ;;  %s2861_s19 = sadd.s32 %s2577_s18, %s2576_s17 }
  0x17   : > { %647 = vst [vmem:[#allocation1] ss:$4 sm:$0xff] %v384_v0  ;;  %v2559_v3 = vld [vmem:[%s2857_s16 + $0x8] sm:$0xff]  ;;  %v2560_v5 = vld [vmem:[%s2857_s16 + $0x10] sm:$0xff]  ;;  %v2561_v6 = vld [vmem:[%s2857_s16 + $0x18] sm:$0xff]  ;;  %s2452_s21 = sshll.u32 %s2861_s19, 2 }
  0x18   : > { %2512 = vmatmul.msk.bf16.vlgmr.msra.gmra.mxu2 %vm396_vm1, %v2559_v3  ;;  %v2562_v7 = vld [vmem:[%s2857_s16 + $0x20] sm:$0xff]  ;;  %v2563_v8 = vld [vmem:[%s2857_s16 + $0x28] sm:$0xff]  ;;  %v2874_v9 = vld [vmem:[%s2857_s16 + $0x30] sm:$0xff]  ;;  %s364_s24 = scalar_lea.vmem %s4897_s1, %s2452_s21  ;;  %s373_s9 = scalar_lea.vmem %s4898_s2, %s2452_s21 }
  0x19   : > { %v2880_v10 = vld [vmem:[%s2857_s16 + $0x38] sm:$0xff]  ;;  %v2557_v11 = vld [vmem:[%s364_s24] sm:$0xff]  ;;  %v387_v13 = vld [vmem:[%s364_s24 + $0x8] sm:$0xf]  ;;  %s2454_s19 = sshll.u32 %s2851_s12, 3 }
  0x1a   : > { %2459 = vmatmul.msk.bf16.vlgmr.msra.gmra.mxu0 %vm396_vm1, %v2557_v11  ;;  %v2891_v12 = vld [vmem:[%s2857_s16 + $0x40] sm:$0xff]  ;;  %v393_v14 = vunpack.c.l.b16 %v387_v13  ;;  %v2899_v18 = vld [vmem:[%s2857_s16 + $0x48] sm:$0xff]  ;;  %v2910_v24 = vld [vmem:[%s2857_s16 + $0x50] sm:$0xff]  ;;  %s4725_s11 = scalar_lea.vmem %s4903_s7, %s2454_s19 }
  0x1b   : > { %v2919_v27 = vld [vmem:[%s2857_s16 + $0x58] sm:$0xff]  ;;  %v2558_v28 = vld [vmem:[%s2857_s16] sm:$0xff]  ;;  %v774_v34 = vld [vmem:[%s373_s9 + $0x8] sm:$0xf] }
  0x1c   : > { %v395_v15 = vpack.c.b16 %v393_v14, %v393_v14  ;;  %v2931_v30 = vld [vmem:[%s373_s9] sm:$0xff]  ;;  %v780_v35 = vunpack.c.l.b16 %v774_v34 }
  0x1e   : > { %v648_v4 = vld.sshfl [vmem:[#allocation1] sm:$0xff pattern:$0x73625140]  ;;  %v2941_v36 = vpack.c.b16 %v780_v35, %v780_v35 }
  0x1f   : > { %650 = vrot.lane.b32.xlu0 %v648_v4, %s2775_s20  ;;  %807 = vst [vmem:[#allocation1] ss:$4 sm:$0xff] %v384_v0 }
  0x26   : > { %v808_v22 = vld.sshfl [vmem:[#allocation1] sm:$0xff pattern:$0x73625140] }
  0x27   : > { %428 = vrot.lane.b32.xlu0 %v426_v2, %s2775_s20  ;;  %810 = vrot.lane.b32.xlu1 %v808_v22, %s2775_s20 }
  0x28   : > { %2513 = vmatmul.msk.bf16.gmra.mxu2 %vm396_vm1, %v2560_v5 }
  0x2a   : > { %2460 = vmatmul.msk.bf16.gmra.mxu0 %vm396_vm1, %v395_v15 }
  0x38   : > { %2514 = vmatmul.msk.bf16.gmra.mxu2 %vm396_vm1, %v2561_v6 }
  0x3a   : > { %2539 = vmatmul.msk.bf16.vlgmr.msrb.gmra.mxu0 %vm396_vm1, %v2931_v30 }
  0x48   : > { %2515 = vmatmul.msk.bf16.gmra.mxu2 %vm396_vm1, %v2562_v7 }
  0x4a   : > { %2540 = vmatmul.msk.bf16.gmra.mxu0 %vm396_vm1, %v2941_v36 }
  0x58   : > { %2516 = vmatmul.msk.bf16.gmra.mxu2 %vm396_vm1, %v2563_v8 }
  0x68   : > { %2517 = vmatmul.msk.bf16.gmra.mxu2 %vm396_vm1, %v2874_v9 }
  0x78   : > { %2518 = vmatmul.msk.bf16.gmra.mxu2 %vm396_vm1, %v2880_v10 }
  0x88   : > { %2519 = vmatmul.msk.bf16.gmra.mxu2 %vm396_vm1, %v2891_v12 }
  0x91   : > { %v651_v16 = vpop.permute.xlu0 %650 }
  0x92   : > { %v653_v17 = vsel %vm403_vm0, %v651_v16, 0 }
  0x93   : > { %2572 = vmatpush.bf16.msra.mxu3 %v653_v17 }
  0x96   : > { %2524 = vmatmul.msk.bf16.vlgmr.msra.gmra.mxu3 %vm396_vm1, %v2559_v3 }
  0x98   : > { %2520 = vmatmul.msk.bf16.gmra.mxu2 %vm396_vm1, %v2899_v18 }
  0x99   : > { %v429_v19 = vpop.permute.xlu0 %428 }
  0x9a   : > { %v431_v20 = vsel %vm403_vm0, %v429_v19, 0 }
  0x9b   : > { %440 = vmatpush.bf16.msra.mxu1 %v431_v20  ;;  %v592_v21 = vpop.f32.mrf.mxu2  ;;  %v416_v20 = vpop.f32.mrf.mxu0 }
  0x9c   : > { %726 = vst.msk [vmem:[#allocation2 + $0x30] sm:$0xff] %vm451_vm2, %v592_v21  ;;  %v3047_v21 = vld [vmem:[%s4900_s4 + $0x5] ss:$0 sm:$0xff] }
  0x9d   : > { %452 = vst.msk [vmem:[#allocation2 + $0x8] sm:$0xff] %vm451_vm2, %v416_v20 }
  0x9e   : > { %2461 = vmatmul.msk.bf16.vlgmr.msra.gmra.mxu1 %vm396_vm1, %v2557_v11 }
  0x9f   : > { %585 = vmatpush.bf16.msrb.mxu1 %v405_v1 }
  0xa3   : > { %662 = vmatpush.bf16.msra.mxu1 %v653_v17  ;;  %v594_v23 = vpop.f32.mrf.mxu2 }
  0xa4   : > { %727 = vst.msk [vmem:[#allocation2 + $0x38] sm:$0xff] %vm451_vm2, %v594_v23 }
  0xa6   : > { %2525 = vmatmul.msk.bf16.gmra.mxu3 %vm396_vm1, %v2560_v5 }
  0xa8   : > { %2521 = vmatmul.msk.bf16.gmra.mxu2 %vm396_vm1, %v2910_v24 }
  0xab   : > { %v597_v25 = vpop.f32.mrf.mxu2  ;;  %v2989_v55 = vld [vmem:[#allocation2 + $0x37] sm:$0xff] }
  0xac   : > { %728 = vst.msk [vmem:[#allocation2 + $0x40] sm:$0xff] %vm451_vm2, %v597_v25  ;;  %v2991_v56 = vld [vmem:[#allocation2 + $0x38] sm:$0xff]  ;;  %v875_v1 = vmul.f32 %v2956_v41, %v2989_v55 }
  0xad   : > { %v1023_v2 = vmul.f32 %v2961_v42, %v2991_v56 }
  0xae   : > { %2462 = vmatmul.msk.bf16.gmra.mxu1 %vm396_vm1, %v395_v15 }
  0xb3   : > { %v599_v26 = vpop.f32.mrf.mxu2  ;;  %v2999_v61 = vld [vmem:[#allocation2 + $0x3f] sm:$0xff] }
  0xb4   : > { %729 = vst.msk [vmem:[#allocation2 + $0x48] sm:$0xff] %vm451_vm2, %v599_v26  ;;  %v3001_v62 = vld [vmem:[#allocation2 + $0x40] sm:$0xff]  ;;  %v876_v5 = vmul.f32 %v2956_v41, %v2999_v61 }
  0xb5   : > { %v3011_v3 = vld [vmem:[#allocation2 + $0x39] sm:$0xff] }
  0xb6   : > { %2526 = vmatmul.msk.bf16.gmra.mxu3 %vm396_vm1, %v2561_v6  ;;  %v1024_v6 = vmul.f32 %v2961_v42, %v3001_v62  ;;  %v1171_v11 = vmul.f32 %v2978_v49, %v3011_v3 }
  0xb8   : > { %2522 = vmatmul.msk.bf16.gmra.mxu2 %vm396_vm1, %v2919_v27  ;;  %v1048_v14 = vadd.f32 %v1024_v6, %v876_v5 }
  0xbb   : > { %v602_v29 = vpop.f32.mrf.mxu2  ;;  %v3110_v20 = vld [vmem:[#allocation2 + $0x48] sm:$0xff] }
  0xbc   : > { %730 = vst.msk [vmem:[#allocation2 + $0x50] sm:$0xff] %vm451_vm2, %v602_v29 }
  0xbe   : > { %2511 = vmatmul.msk.bf16.vlgmr.msrb.gmra.mxu1 %vm396_vm1, %v2558_v28 }
  0xc3   : > { %v604_v31 = vpop.f32.mrf.mxu2  ;;  %v3031_v13 = vld [vmem:[#allocation2 + $0x4f] sm:$0xff] }
  0xc4   : > { %731 = vst.msk [vmem:[#allocation2 + $0x58] sm:$0xff] %vm451_vm2, %v604_v31  ;;  %v3042_v19 = vld [vmem:[#allocation2 + $0x50] sm:$0xff]  ;;  %v3060_v31 = vld [vmem:[%s4900_s4 + $0x6] ss:$0 sm:$0xff] }
  0xc6   : > { %2527 = vmatmul.msk.bf16.gmra.mxu3 %vm396_vm1, %v2562_v7 }
  0xcb   : > { %v607_v32 = vpop.f32.mrf.mxu2  ;;  %v2963_v43 = vld [vmem:[#allocation2 + $0x57] sm:$0xff] }
  0xcc   : > { %732 = vst.msk [vmem:[#allocation2 + $0x60] sm:$0xff] %vm451_vm2, %v607_v32  ;;  %v2965_v44 = vld [vmem:[#allocation2 + $0x58] sm:$0xff]  ;;  %v879_v46 = vmul.f32 %v2956_v41, %v2963_v43 }
  0xcd   : > { %v1027_v47 = vmul.f32 %v2961_v42, %v2965_v44  ;;  %v3052_v26 = vld [vmem:[#allocation2 + $0x51] sm:$0xff] }
  0xce   : > { %2523 = vmatmul.msk.bf16.vlgmr.msra.gmra.mxu1 %vm396_vm1, %v2558_v28  ;;  %v1510_v32 = vmul.f32 %v3047_v21, %v3052_v26 }
  0xcf   : > { %v1051_v57 = vadd.f32 %v1027_v47, %v879_v46 }
  0xd3   : > { %v609_v33 = vpop.f32.mrf.mxu2  ;;  %v2967_v45 = vld [vmem:[#allocation2 + $0x5f] sm:$0xff] }
  0xd4   : > { %733 = vst.msk [vmem:[#allocation2 + $0x68] sm:$0xff] %vm451_vm2, %v609_v33  ;;  %v880_v48 = vmul.f32 %v2956_v41, %v2967_v45  ;;  %v2981_v52 = vld [vmem:[#allocation2 + $0x60] sm:$0xff] }
  0xd5   : > { %v1028_v53 = vmul.f32 %v2961_v42, %v2981_v52  ;;  %v2986_v54 = vld [vmem:[#allocation2 + $0x59] sm:$0xff] }
  0xd6   : > { %2528 = vmatmul.msk.bf16.gmra.mxu3 %vm396_vm1, %v2563_v8  ;;  %v1175_v58 = vmul.f32 %v2978_v49, %v2986_v54  ;;  %v3019_v8 = vld [vmem:[#allocation2 + $0x41] sm:$0xff] }
  0xd7   : > { %v1052_v59 = vadd.f32 %v1028_v53, %v880_v48  ;;  %v1172_v15 = vmul.f32 %v2978_v49, %v3019_v8  ;;  %v3081_v48 = vld [vmem:[%s4900_s4 + $0x8] ss:$0 sm:$0xff] }
  0xd8   : > { %v3005_v0 = vadd.f32 %v1175_v58, %v1051_v57 }
  0xd9   : > { %v1196_v23 = vadd.f32 %v1172_v15, %v1048_v14 }
  0xda   : > { %4974 = vst [vmem:[#allocation4_spill] sm:$0xff] %v3005_v0 }
  0xdb   : > { %v612_v37 = vpop.f32.mrf.mxu2  ;;  %v2996_v60 = vld [vmem:[#allocation2 + $0x61] sm:$0xff] }
  0xdc   : > { %734 = vst.msk [vmem:[#allocation2 + $0x70] sm:$0xff] %vm451_vm2, %v612_v37  ;;  %v1176_v63 = vmul.f32 %v2978_v49, %v2996_v60  ;;  %v3066_v35 = vld [vmem:[#allocation2 + $0x67] sm:$0xff]  ;;  %v1511_v37 = vmul.f32 %v3047_v21, %v2986_v54 }
  0xdd   : > { %v1616_v57 = vmul.f32 %v3060_v31, %v3066_v35 }
  0xde   : > { %v3013_v4 = vadd.f32 %v1176_v63, %v1052_v59 }
  0xe0   : > { %4975 = vst [vmem:[#allocation5_spill] sm:$0xff] %v3013_v4 }
  0xe3   : > { %v614_v38 = vpop.f32.mrf.mxu2  ;;  %v3075_v46 = vld [vmem:[#allocation2 + $0x6f] sm:$0xff] }
  0xe4   : > { %735 = vst.msk [vmem:[#allocation2 + $0x78] sm:$0xff] %vm451_vm2, %v614_v38  ;;  %v3087_v59 = vld [vmem:[#allocation2 + $0x70] sm:$0xff]  ;;  %v1617_v5 = vmul.f32 %v3060_v31, %v3075_v46 }
  0xe5   : > { %v3089_v63 = vld [vmem:[#allocation2 + $0x69] sm:$0xff] }
  0xe6   : > { %2529 = vmatmul.msk.bf16.gmra.mxu3 %vm396_vm1, %v2874_v9  ;;  %v3026_v9 = vld [vmem:[%s4900_s4 + $0x3] ss:$0 sm:$0xff]  ;;  %v1828_v14 = vmul.f32 %v3081_v48, %v3089_v63 }
  0xe7   : > { %v1298_v16 = vmul.f32 %v3026_v9, %v3031_v13  ;;  %v1299_v22 = vmul.f32 %v3026_v9, %v2963_v43 }
  0xe9   : > { %v1323_v34 = vadd.f32 %v1299_v22, %v1196_v23 }
  0xeb   : > { %v617_v39 = vpop.f32.mrf.mxu2 }
  0xec   : > { %736 = vst.msk [vmem:[#allocation2 + $0x80] sm:$0xff] %vm451_vm2, %v617_v39  ;;  %v811_v39 = vpop.permute.xlu1 %810 }
  0xed   : > { %v813_v47 = vsel %vm403_vm0, %v811_v39, 0  ;;  %v3130_v39 = vld [vmem:[#allocation2 + $0x49] sm:$0xff] }
  0xee   : > { %822 = vmatpush.bf16.msrb.mxu1 %v813_v47 }
  0xf1   : > { %2541 = vmatmul.msk.bf16.vlgmr.msrb.gmra.mxu1 %vm396_vm1, %v2931_v30 }
  0xf3   : > { %v619_v40 = vpop.f32.mrf.mxu2 }
  0xf4   : > { %737 = vst.msk [vmem:[#allocation2 + $0x88] sm:$0xff] %vm451_vm2, %v619_v40  ;;  %v3073_v40 = vld [vmem:[%s4900_s4 + $0x7] ss:$0 sm:$0xff] }
  0xf6   : > { %2530 = vmatmul.msk.bf16.gmra.mxu3 %vm396_vm1, %v2880_v10  ;;  %v1047_v10 = vadd.f32 %v1023_v2, %v875_v1  ;;  %v418_v1 = vpop.f32.mrf.mxu0 }
  0xf7   : > { %453 = vst.msk [vmem:[#allocation2 + $0x10] sm:$0xff] %vm451_vm2, %v418_v1 }
  0xf8   : > { %v1195_v17 = vadd.f32 %v1171_v11, %v1047_v10 }
  0xfa   : > { %v1322_v29 = vadd.f32 %v1298_v16, %v1195_v17  ;;  %v3107_v16 = vld [vmem:[#allocation2 + $0x47] sm:$0xff] }
  0xfb   : > { %v622_v50 = vpop.f32.mrf.mxu2 }
  0xfc   : > { %738 = vst.msk [vmem:[#allocation2 + $0x90] sm:$0xff] %vm451_vm2, %v622_v50  ;;  %v3083_v50 = vld [vmem:[#allocation2 + $0x68] sm:$0xff] }
  0xfd   : > { %v1722_v10 = vmul.f32 %v3073_v40, %v3083_v50 }
 0x101   : > { %2542 = vmatmul.msk.bf16.gmra.mxu1 %vm396_vm1, %v2941_v36 }
 0x103   : > { %v624_v7 = vpop.f32.mrf.mxu2 }
 0x104   : > { %739 = vst.msk [vmem:[#allocation2 + $0x98] sm:$0xff] %vm451_vm2, %v624_v7  ;;  %v3097_v7 = vld [vmem:[#allocation2 + $0x71] sm:$0xff] }
 0x105   : > { %v1829_v23 = vmul.f32 %v3081_v48, %v3097_v7 }
 0x106   : > { %2531 = vmatmul.msk.bf16.gmra.mxu3 %vm396_vm1, %v2891_v12  ;;  %v3038_v12 = vld [vmem:[%s4900_s4 + $0x4] ss:$0 sm:$0xff] }
 0x107   : > { %v1404_v28 = vmul.f32 %v3038_v12, %v3042_v19  ;;  %v1405_v33 = vmul.f32 %v3038_v12, %v2965_v44  ;;  %v3203_v36 = vmul.f32 %v3038_v12, %v2991_v56 }
 0x109   : > { %v1428_v38 = vadd.f32 %v1404_v28, %v1322_v29  ;;  %v1429_v51 = vadd.f32 %v1405_v33, %v1323_v34  ;;  %v877_v28 = vmul.f32 %v2956_v41, %v3107_v16  ;;  %v878_v33 = vmul.f32 %v2956_v41, %v3031_v13  ;;  %4985 = vst [vmem:[#allocation15_spill] sm:$0xff] %v3203_v36 }
 0x10a   : > { %v1025_v34 = vmul.f32 %v2961_v42, %v3110_v20  ;;  %v3269_v36 = vmul.f32 %v3047_v21, %v3130_v39 }
 0x10b   : > { %v627_v25 = vpop.f32.mrf.mxu2  ;;  %v1534_v53 = vadd.f32 %v1510_v32, %v1428_v38  ;;  %v1535_v2 = vadd.f32 %v1511_v37, %v1429_v51  ;;  %v1026_v37 = vmul.f32 %v2961_v42, %v3042_v19  ;;  %v421_v51 = vpop.f32.mrf.mxu0 }
 0x10c   : > { %740 = vst.msk [vmem:[#allocation2 + $0xa0] sm:$0xff] %vm451_vm2, %v627_v25  ;;  %v1049_v1 = vadd.f32 %v1025_v34, %v877_v28  ;;  %v1144_v28 = vld [vmem:[#allocation2 + $0x31] sm:$0xff] }
 0x10d   : > { %v1640_v6 = vadd.f32 %v1616_v57, %v1534_v53  ;;  %v1641_v11 = vadd.f32 %v1617_v5, %v1535_v2  ;;  %454 = vst.msk [vmem:[#allocation2 + $0x18] sm:$0xff] %vm451_vm2, %v421_v51  ;;  %v1050_v2 = vadd.f32 %v1026_v37, %v878_v33  ;;  %v1173_v5 = vmul.f32 %v2978_v49, %v3130_v39 }
 0x10e   : > { %v3172_v51 = vmul.f32 %v3073_v40, %v2991_v56  ;;  %v3206_v0 = vmul.f32 %v3047_v21, %v1144_v28  ;;  %v3225_v56 = vmul.f32 %v3038_v12, %v2981_v52  ;;  %4996 = vst [vmem:[#allocation26_spill] sm:$0xff] %v3269_v36 }
 0x10f   : > { %v1746_v17 = vadd.f32 %v1722_v10, %v1640_v6  ;;  %v1174_v6 = vmul.f32 %v2978_v49, %v3052_v26 }
 0x110   : > { %4978 = vst [vmem:[#allocation8_spill] sm:$0xff] %v3172_v51 }
 0x111   : > { %v3114_v25 = vadd.f32 %v1828_v14, %v1746_v17  ;;  %v3145_v17 = vld [vmem:[#allocation2 + $0x78] sm:$0xff]  ;;  %v3157_v33 = vadd.f32 %v1174_v6, %v1050_v2  ;;  %4986 = vst [vmem:[#allocation16_spill] sm:$0xff] %v3206_v0  ;;  %v1139_v0 = vld [vmem:[#allocation2 + $0x9] sm:$0xff] }
 0x112   : > { %v1031_v37 = vmul.f32 %v2961_v42, %v3145_v17 }
 0x113   : > { %v629_v58 = vpop.f32.mrf.mxu2  ;;  %v1929_v38 = vmul.f32 %v3114_v25, %v3114_v25 }
 0x114   : > { %741 = vst.msk [vmem:[#allocation2 + $0xa8] sm:$0xff] %vm451_vm2, %v629_v58 }
 0x115   : > { %v1953_v53 = vmul.f32 %v1929_v38, %v3114_v25  ;;  %v3163_v38 = vld [vmem:[#allocation2 + $0x7f] sm:$0xff] }
 0x116   : > { %2532 = vmatmul.msk.bf16.gmra.mxu3 %vm396_vm1, %v2899_v18  ;;  %v1723_v18 = vmul.f32 %v3073_v40, %v3087_v59 }
 0x118   : > { %v1747_v22 = vadd.f32 %v1723_v18, %v1641_v11  ;;  %v996_v11 = vld [vmem:[#allocation2 + $0x30] sm:$0xff]  ;;  %v1977_v18 = vmul.f32 0.044715, %v1953_v53  ;;  %v884_v53 = vmul.f32 %v2956_v41, %v3163_v38 }
 0x119   : > { %v669_v15 = vpop.f32.mrf.mxu3  ;;  %v3183_v2 = vmul.f32 %v2961_v42, %v996_v11  ;;  %v3199_v4 = vmul.f32 %v3038_v12, %v996_v11  ;;  %v3221_v11 = vmul.f32 %v3026_v9, %v2967_v45 }
 0x11a   : > { %750 = vst.msk [vmem:[#allocation3 + $0x30] sm:$0xff] %vm451_vm2, %v669_v15  ;;  %v3119_v29 = vadd.f32 %v1829_v23, %v1747_v22  ;;  %v3143_v15 = vld [vmem:[#allocation2 + $0x77] sm:$0xff]  ;;  %v3149_v23 = vmul.f32 %v3060_v31, %v2989_v55  ;;  %v2001_v6 = vadd.f32 %v1977_v18, %v3114_v25 }
 0x11b   : > { %v442_v30 = vpop.f32.mrf.mxu1  ;;  %v632_v32 = vpop.f32.mrf.mxu2  ;;  %v883_v34 = vmul.f32 %v2956_v41, %v3143_v15  ;;  %4980 = vst [vmem:[#allocation10_spill] sm:$0xff] %v3183_v2  ;;  %v844_v2 = vld [vmem:[#allocation2 + $0xf] sm:$0xff] }
 0x11c   : > { %455 = vst.msk [vmem:[#allocation3 + $0x8] sm:$0xff] %vm451_vm2, %v442_v30  ;;  %v1930_v47 = vmul.f32 %v3119_v29, %v3119_v29  ;;  %v3153_v30 = vmul.f32 %v3060_v31, %v2999_v61 }
 0x11d   : > { %742 = vst.msk [vmem:[#allocation2 + $0xb0] sm:$0xff] %vm451_vm2, %v632_v32  ;;  %v3155_v32 = vadd.f32 %v1173_v5, %v1049_v1  ;;  %v3180_v1 = vmul.f32 %v3081_v48, %v3011_v3  ;;  %v3192_v5 = vmul.f32 %v3026_v9, %v2989_v55  ;;  %v3210_v55 = vmul.f32 %v3047_v21, %v3011_v3 }
 0x11e   : > { %v1954_v57 = vmul.f32 %v1930_v47, %v3119_v29  ;;  %4976 = vst [vmem:[#allocation6_spill] sm:$0xff] %v3149_v23  ;;  %v3165_v47 = vld [vmem:[#allocation2 + $0x80] sm:$0xff]  ;;  %v3212_v18 = vadd.f32 %v1031_v37, %v883_v34  ;;  %v991_v34 = vld [vmem:[#allocation2 + $0x8] sm:$0xff]  ;;  %v3231_v37 = vmul.f32 %v3073_v40, %v3001_v62 }
 0x11f   : > { %4977 = vst [vmem:[#allocation7_spill] sm:$0xff] %v3153_v30  ;;  %v3265_v30 = vld [vmem:[#allocation2 + $0x81] sm:$0xff] }
 0x120   : > { %v1978_v14 = vmul.f32 0.044715, %v1954_v57  ;;  %v1032_v57 = vmul.f32 %v2961_v42, %v3165_v47  ;;  %4979 = vst [vmem:[#allocation9_spill] sm:$0xff] %v3180_v1  ;;  %v1178_v1 = vmul.f32 %v2978_v49, %v3097_v7  ;;  %v3277_v51 = vmul.f32 %v2978_v49, %v3265_v30 }
 0x121   : > { %v671_v58 = vpop.f32.mrf.mxu3  ;;  %4982 = vst [vmem:[#allocation12_spill] sm:$0xff] %v3192_v5 }
 0x122   : > { %751 = vst.msk [vmem:[#allocation3 + $0x38] sm:$0xff] %vm451_vm2, %v671_v58  ;;  %v423_v58 = vpop.f32.mrf.mxu0 }
 0x123   : > { %v444_v10 = vpop.f32.mrf.mxu1  ;;  %v634_v22 = vpop.f32.mrf.mxu2  ;;  %4984 = vst [vmem:[#allocation14_spill] sm:$0xff] %v3199_v4  ;;  %v3282_v4 = vmul.f32 %v3060_v31, %v3031_v13  ;;  %v917_v5 = vld [vmem:[#allocation3 + $0x7] sm:$0xff]  ;;  %v1165_v13 = vmul.f32 %v2978_v49, %v1139_v0 }
 0x124   : > { %456 = vst.msk [vmem:[#allocation3 + $0x10] sm:$0xff] %vm451_vm2, %v444_v10  ;;  %v2002_v10 = vadd.f32 %v1978_v14, %v3119_v29  ;;  %v1065_v23 = vld [vmem:[#allocation3 + $0x8] sm:$0xff] }
 0x125   : > { %743 = vst.msk [vmem:[#allocation2 + $0xb8] sm:$0xff] %vm451_vm2, %v634_v22  ;;  %v3196_v22 = vld [vmem:[#allocation2 + $0x79] sm:$0xff] }
 0x126   : > { %2533 = vmatmul.msk.bf16.gmra.mxu3 %vm396_vm1, %v2910_v24  ;;  %v3188_v24 = vmul.f32 %v2978_v49, %v1144_v28  ;;  %4983 = vst [vmem:[#allocation13_spill] sm:$0xff] %v3196_v22  ;;  %v3216_v14 = vmul.f32 %v2978_v49, %v3196_v22  ;;  %v3227_v28 = vadd.f32 %v1032_v57, %v884_v53 }
 0x127   : > { %4987 = vst [vmem:[#allocation17_spill] sm:$0xff] %v3210_v55  ;;  %v3244_v53 = vmul.f32 %v3026_v9, %v3107_v16  ;;  %v881_v57 = vmul.f32 %v2956_v41, %v3066_v35  ;;  %v1017_v55 = vmul.f32 %v2961_v42, %v991_v34 }
 0x128   : > { %4981 = vst [vmem:[#allocation11_spill] sm:$0xff] %v3188_v24  ;;  %v843_v24 = vld [vmem:[#allocation2 + $0x7] sm:$0xff] }
 0x129   : > { %v674_v58 = vpop.f32.mrf.mxu3  ;;  %4988 = vst [vmem:[#allocation18_spill] sm:$0xff] %v3212_v18  ;;  %v2026_v18 = vmul.f32 0.7978846, %v2002_v10  ;;  %v3261_v10 = vmul.f32 %v3038_v12, %v3110_v20 }
 0x12a   : > { %4989 = vst [vmem:[#allocation19_spill] sm:$0xff] %v3216_v14  ;;  %v3239_v14 = vmul.f32 %v3026_v9, %v2999_v61  ;;  %v1029_v61 = vmul.f32 %v2961_v42, %v3083_v50 }
 0x12b   : > { %752 = vst.msk [vmem:[#allocation3 + $0x40] sm:$0xff] %vm451_vm2, %v674_v58  ;;  %v447_v3 = vpop.f32.mrf.mxu1  ;;  %v3235_v58 = vmul.f32 %v3081_v48, %v3019_v8 }
 0x12c   : > { %4990 = vst [vmem:[#allocation20_spill] sm:$0xff] %v3227_v28  ;;  %v2025_v28 = vmul.f32 0.7978846, %v2001_v6  ;;  %v992_v6 = vld [vmem:[#allocation2 + $0x10] sm:$0xff]  ;;  %v1053_v34 = vadd.f32 %v1029_v61, %v881_v57 }
 0x12d   : > { %4991 = vst [vmem:[#allocation21_spill] sm:$0xff] %v3231_v37  ;;  %v637_v37 = vpop.f32.mrf.mxu2  ;;  %v1018_v22 = vmul.f32 %v2961_v42, %v992_v6  ;;  %v3319_v6 = vmul.f32 %v3073_v40, %v3042_v19  ;;  %v3336_v19 = vmul.f32 %v3081_v48, %v3052_v26 }
 0x12e   : > { %4992 = vst [vmem:[#allocation22_spill] sm:$0xff] %v3235_v58  ;;  %v882_v58 = vmul.f32 %v2956_v41, %v3075_v46  ;;  %2638 = vtanh.f32 %v2025_v28  ;;  %v3299_v28 = vld [vmem:[%s4901_s5] ss:$0 sm:$0xff] }
 0x12f   : > { %4993 = vst [vmem:[#allocation23_spill] sm:$0xff] %v3239_v14  ;;  %v1177_v14 = vmul.f32 %v2978_v49, %v3089_v63  ;;  %2640 = vtanh.f32 %v2026_v18 }
 0x130   : > { %457 = vst.msk [vmem:[#allocation3 + $0x18] sm:$0xff] %vm451_vm2, %v447_v3  ;;  %v1030_v3 = vmul.f32 %v2961_v42, %v3087_v59 }
 0x131   : > { %4994 = vst [vmem:[#allocation24_spill] sm:$0xff] %v3244_v53  ;;  %v869_v53 = vmul.f32 %v2956_v41, %v843_v24  ;;  %v3273_v24 = vmul.f32 %v3060_v31, %v3107_v16  ;;  %v676_v36 = vpop.f32.mrf.mxu3  ;;  %v3288_v16 = vld [vmem:[%s4901_s5 + $0x1] ss:$0 sm:$0xff] }
 0x132   : > { %744 = vst.msk [vmem:[#allocation2 + $0xc0] sm:$0xff] %vm451_vm2, %v637_v37  ;;  %v1054_v37 = vadd.f32 %v1030_v3, %v882_v58  ;;  %v3290_v58 = vadd.f32 %v1177_v14, %v1053_v34  ;;  %v3304_v3 = vld [vmem:[%s4901_s5 + $0x4] ss:$0 sm:$0xff]  ;;  %v1140_v14 = vld [vmem:[#allocation2 + $0x11] sm:$0xff]  ;;  %v3323_v34 = vmul.f32 %v3038_v12, %v3001_v62 }
 0x133   : > { %4995 = vst [vmem:[#allocation25_spill] sm:$0xff] %v3261_v10  ;;  %v870_v10 = vmul.f32 %v2956_v41, %v844_v2  ;;  %v860_v2 = vld [vmem:[#allocation2 + $0x8f] sm:$0xff]  ;;  %v1041_v61 = vadd.f32 %v1017_v55, %v869_v53  ;;  %v3312_v55 = vmul.f32 %v3081_v48, %v3130_v39  ;;  %v449_v18 = vpop.f32.mrf.mxu1 }
 0x134   : > { %4997 = vst [vmem:[#allocation27_spill] sm:$0xff] %v3277_v51  ;;  %v3292_v57 = vadd.f32 %v1178_v1, %v1054_v37  ;;  %v3308_v1 = vmul.f32 %v3073_v40, %v3110_v20  ;;  %v3315_v0 = vmul.f32 %v3026_v9, %v860_v2  ;;  %v1070_v53 = vld [vmem:[#allocation3 + $0x30] sm:$0xff]  ;;  %v3327_v20 = vmul.f32 %v3047_v21, %v2996_v60  ;;  %v993_v2 = vld [vmem:[#allocation2 + $0x18] sm:$0xff] }
 0x135   : > { %4998 = vst [vmem:[#allocation28_spill] sm:$0xff] %v3282_v4  ;;  %v845_v37 = vld [vmem:[#allocation2 + $0x17] sm:$0xff]  ;;  %v943_v18 = vmul.f32 %v3299_v28, %v917_v5  ;;  %v639_v51 = vpop.f32.mrf.mxu2  ;;  %v3346_v5 = vmul.f32 %v3026_v9, %v3075_v46  ;;  %v3350_v26 = vadd.f32 %v1165_v13, %v1041_v61  ;;  %v3365_v46 = vmul.f32 %v3288_v16, %v1070_v53  ;;  %v3375_v13 = vld [vmem:[%s4901_s5 + $0x7] ss:$0 sm:$0xff] }
 0x136   : > { %4999 = vst [vmem:[#allocation29_spill] sm:$0xff] %v3290_v58  ;;  %v918_v58 = vld [vmem:[#allocation3 + $0xf] sm:$0xff]  ;;  %2534 = vmatmul.msk.bf16.gmra.mxu3 %vm396_vm1, %v2919_v27  ;;  %v923_v61 = vld [vmem:[#allocation3 + $0x37] sm:$0xff] }
 0x137   : > { %5000 = vst [vmem:[#allocation30_spill] sm:$0xff] %v3292_v57  ;;  %v1091_v57 = vmul.f32 %v3288_v16, %v1065_v23  ;;  %v1066_v62 = vld [vmem:[#allocation3 + $0x10] sm:$0xff]  ;;  %v2639_v23 = vpop.eup %2638 }
 0x138   : > { %753 = vst.msk [vmem:[#allocation3 + $0x48] sm:$0xff] %vm451_vm2, %v676_v36  ;;  %v861_v36 = vld [vmem:[#allocation2 + $0x97] sm:$0xff]  ;;  %v2641_v27 = vpop.eup %2640 }
 0x139   : > { %5001 = vst [vmem:[#allocation31_spill] sm:$0xff] %v3308_v1  ;;  %v3330_v39 = vmul.f32 %v3026_v9, %v861_v36  ;;  %v1301_v36 = vmul.f32 %v3026_v9, %v3066_v35  ;;  %v3362_v35 = vld [vmem:[%s4901_s5 + $0x6] ss:$0 sm:$0xff]  ;;  %v3389_v1 = vld [vmem:[%s4901_s5 + $0x5] ss:$0 sm:$0xff] }
 0x13a   : > { %5002 = vst [vmem:[#allocation32_spill] sm:$0xff] %v3312_v55  ;;  %v1092_v55 = vmul.f32 %v3288_v16, %v1066_v62  ;;  %v2073_v62 = vadd.f32 1.0, %v2639_v23  ;;  %v3428_v23 = vld [vmem:[%s4901_s5 + $0x8] ss:$0 sm:$0xff] }
 0x13b   : > { %5003 = vst [vmem:[#allocation33_spill] sm:$0xff] %v3315_v0  ;;  %v1042_v0 = vadd.f32 %v1018_v22, %v870_v10  ;;  %v1166_v22 = vmul.f32 %v2978_v49, %v1140_v14  ;;  %v1213_v10 = vld [vmem:[#allocation3 + $0x9] sm:$0xff]  ;;  %v871_v14 = vmul.f32 %v2956_v41, %v845_v37  ;;  %v1218_v37 = vld [vmem:[#allocation3 + $0x31] sm:$0xff]  ;;  %v587_v4 = vpop.f32.mrf.mxu1 }
 0x13c   : > { %5004 = vst [vmem:[#allocation34_spill] sm:$0xff] %v3319_v6  ;;  %v1115_v6 = vadd.f32 %v1091_v57, %v943_v18  ;;  %v3406_v57 = vmul.f32 %v3073_v40, %v2965_v44  ;;  %v1324_v44 = vadd.f32 %v3221_v11, %v3155_v32  ;;  %v924_v11 = vld [vmem:[#allocation3 + $0x3f] sm:$0xff] }
 0x13d   : > { %5005 = vst [vmem:[#allocation35_spill] sm:$0xff] %v3323_v34  ;;  %v3340_v34 = vmul.f32 %v3047_v21, %v3019_v8  ;;  %v3357_v8 = vld [vmem:[%s4901_s5 + $0x2] ss:$0 sm:$0xff]  ;;  %v3409_v18 = vadd.f32 %v1166_v22, %v1042_v0  ;;  %v642_v32 = vpop.f32.mrf.mxu2 }
 0x13e   : > { %5006 = vst [vmem:[#allocation36_spill] sm:$0xff] %v3330_v39  ;;  %v3380_v39 = vmul.f32 %v3304_v3, %v1070_v53  ;;  %v679_v53 = vpop.f32.mrf.mxu3  ;;  %v919_v22 = vld [vmem:[#allocation3 + $0x17] sm:$0xff] }
 0x13f   : > { %5007 = vst [vmem:[#allocation37_spill] sm:$0xff] %v3336_v19  ;;  %v1071_v19 = vld [vmem:[#allocation3 + $0x38] sm:$0xff] }
 0x140   : > { %5008 = vst [vmem:[#allocation38_spill] sm:$0xff] %v3340_v34  ;;  %v1407_v34 = vmul.f32 %v3038_v12, %v3083_v50  ;;  %v3398_v50 = vmul.f32 %v3060_v31, %v2963_v43  ;;  %v1214_v43 = vld [vmem:[#allocation3 + $0x11] sm:$0xff] }
 0x141   : > { %5009 = vst [vmem:[#allocation39_spill] sm:$0xff] %v3346_v5  ;;  %v1019_v5 = vmul.f32 %v2961_v42, %v993_v2  ;;  %v3393_v2 = vmul.f32 %v3047_v21, %v3089_v63  ;;  %v3412_v63 = vmul.f32 %v3362_v35, %v923_v61 }
 0x142   : > { %745 = vst.msk [vmem:[#allocation2 + $0xc8] sm:$0xff] %vm451_vm2, %v639_v51  ;;  %v3370_v51 = vld [vmem:[%s4901_s5 + $0x3] ss:$0 sm:$0xff] }
 0x143   : > { %5010 = vst [vmem:[#allocation40_spill] sm:$0xff] %v3362_v35 }
 0x144   : > { %5011 = vst [vmem:[#allocation41_spill] sm:$0xff] %v3365_v46  ;;  %v944_v46 = vmul.f32 %v3299_v28, %v918_v58  ;;  %v3402_v58 = vmul.f32 %v3060_v31, %v2967_v45  ;;  %v3417_v45 = vadd.f32 %v1019_v5, %v871_v14  ;;  %v3434_v5 = vmul.f32 %v3304_v3, %v1071_v19 }
 0x145   : > { %5012 = vst [vmem:[#allocation42_spill] sm:$0xff] %v3375_v13  ;;  %v3437_v14 = vmul.f32 %v3389_v1, %v1218_v37 }
 0x146   : > { %5013 = vst [vmem:[#allocation43_spill] sm:$0xff] %v3380_v39  ;;  %v1239_v39 = vmul.f32 %v3357_v8, %v1213_v10  ;;  %v2074_v10 = vadd.f32 1.0, %v2641_v27  ;;  %v1116_v0 = vadd.f32 %v1092_v55, %v944_v46  ;;  %v1067_v27 = vld [vmem:[#allocation3 + $0x18] sm:$0xff] }
 0x147   : > { %5014 = vst [vmem:[#allocation44_spill] sm:$0xff] %v3398_v50  ;;  %v3415_v50 = vmul.f32 %v3375_v13, %v1071_v19  ;;  %v1219_v55 = vld [vmem:[#allocation3 + $0x39] sm:$0xff] }
 0x148   : > { %5015 = vst [vmem:[#allocation45_spill] sm:$0xff] %v3402_v58  ;;  %v3420_v58 = vmul.f32 %v3357_v8, %v1218_v37  ;;  %v3439_v46 = vadd.f32 %v1239_v39, %v1115_v6  ;;  %v3448_v37 = vmul.f32 %v3038_v12, %v3087_v59  ;;  %v1093_v6 = vmul.f32 %v3288_v16, %v1067_v27  ;;  %v1073_v27 = vld [vmem:[#allocation3 + $0x48] sm:$0xff] }
 0x149   : > { %5016 = vst [vmem:[#allocation46_spill] sm:$0xff] %v3406_v57  ;;  %v949_v57 = vmul.f32 %v3299_v28, %v923_v61  ;;  %v3454_v39 = vmul.f32 %v3081_v48, %v2986_v54  ;;  %v3464_v59 = vmul.f32 %v3428_v23, %v1219_v55 }
 0x14a   : > { %754 = vst.msk [vmem:[#allocation3 + $0x50] sm:$0xff] %vm451_vm2, %v679_v53  ;;  %v3431_v53 = vmul.f32 %v3370_v51, %v923_v61  ;;  %v3467_v61 = vmul.f32 %v3389_v1, %v1219_v55 }
 0x14b   : > { %5017 = vst [vmem:[#allocation47_spill] sm:$0xff] %v3412_v63  ;;  %v945_v63 = vmul.f32 %v3299_v28, %v919_v22  ;;  %v925_v22 = vld [vmem:[#allocation3 + $0x47] sm:$0xff] }
 0x14c   : > { %5018 = vst [vmem:[#allocation48_spill] sm:$0xff] %v3415_v50  ;;  %v1325_v50 = vadd.f32 %v1301_v36, %v3157_v33  ;;  %v1430_v33 = vadd.f32 %v3225_v56, %v1324_v44 }
 0x14d   : > { %5019 = vst [vmem:[#allocation49_spill] sm:$0xff] %v3420_v58  ;;  %v1097_v58 = vmul.f32 %v3288_v16, %v1071_v19  ;;  %v3458_v19 = vmul.f32 %v3362_v35, %v924_v11 }
 0x14e   : > { %724 = vst.msk [vmem:[#allocation2 + $0x20] sm:$0xff] %vm451_vm2, %v587_v4  ;;  %v1072_v4 = vld [vmem:[#allocation3 + $0x40] sm:$0xff] }
 0x14f   : > { %5020 = vst [vmem:[#allocation50_spill] sm:$0xff] %v3431_v53  ;;  %v1240_v53 = vmul.f32 %v3357_v8, %v1214_v43  ;;  %v3461_v36 = vmul.f32 %v3375_v13, %v1072_v4  ;;  %v3473_v54 = vmul.f32 %v3304_v3, %v1072_v4  ;;  %v3475_v56 = vadd.f32 %v1097_v58, %v949_v57  ;;  %v589_v57 = vpop.f32.mrf.mxu1 }
 0x150   : > { %5021 = vst [vmem:[#allocation51_spill] sm:$0xff] %v3434_v5  ;;  %v2098_v5 = vmul.f32 0.5, %v2074_v10  ;;  %v3470_v10 = vmul.f32 %v3370_v51, %v924_v11  ;;  %v1431_v43 = vadd.f32 %v1407_v34, %v1325_v50  ;;  %v3490_v34 = vadd.f32 %v1093_v6, %v945_v63 }
 0x151   : > { %5022 = vst [vmem:[#allocation52_spill] sm:$0xff] %v3437_v14  ;;  %v2097_v14 = vmul.f32 0.5, %v2073_v62  ;;  %v681_v62 = vpop.f32.mrf.mxu3  ;;  %v3478_v44 = vadd.f32 %v1240_v53, %v1116_v0  ;;  %v3494_v50 = vmul.f32 %v3073_v40, %v2981_v52  ;;  %v1536_v0 = vadd.f32 %v3327_v20, %v1430_v33  ;;  %v1220_v53 = vld [vmem:[#allocation3 + $0x41] sm:$0xff]  ;;  %v644_v52 = vpop.f32.mrf.mxu2 }
 0x152   : > { %746 = vst.msk [vmem:[#allocation2 + $0xd0] sm:$0xff] %vm451_vm2, %v642_v32  ;;  %v3482_v32 = vmul.f32 %v3047_v21, %v3097_v7  ;;  %v1618_v7 = vmul.f32 %v3060_v31, %v3143_v15  ;;  %v1098_v63 = vmul.f32 %v3288_v16, %v1072_v4  ;;  %v1245_v6 = vmul.f32 %v3357_v8, %v1219_v55 }
 0x153   : > { %5023 = vst [vmem:[#allocation53_spill] sm:$0xff] %v3448_v37  ;;  %v3485_v37 = vmul.f32 %v2097_v14, %v3114_v25  ;;  %v950_v14 = vmul.f32 %v3299_v28, %v924_v11  ;;  %v951_v20 = vmul.f32 %v3299_v28, %v925_v22  ;;  %v1099_v15 = vmul.f32 %v3288_v16, %v1073_v27 }
 0x154   : > { %5024 = vst [vmem:[#allocation54_spill] sm:$0xff] %v3454_v39  ;;  %v3488_v39 = vmul.f32 %v2098_v5, %v3119_v29  ;;  %v798_v29 = vpop.f32.mrf.mxu0  ;;  %v1537_v33 = vadd.f32 %v3393_v2, %v1431_v43  ;;  %v1724_v2 = vmul.f32 %v3073_v40, %v3145_v17  ;;  %v3540_v17 = vmul.f32 %v3389_v1, %v1220_v53 }
 0x155   : > { %5025 = vst [vmem:[#allocation55_spill] sm:$0xff] %v3470_v10  ;;  %v846_v58 = vld [vmem:[#allocation2 + $0x1f] sm:$0xff] }
 0x156   : > { %5026 = vst [vmem:[#allocation56_spill] sm:$0xff] %v3473_v54  ;;  %v994_v54 = vld [vmem:[#allocation2 + $0x20] sm:$0xff]  ;;  %v1292_v25 = vmul.f32 %v3026_v9, %v846_v58  ;;  %v872_v4 = vmul.f32 %v2956_v41, %v846_v58  ;;  %v3533_v58 = vadd.f32 %v1099_v15, %v951_v20 }
 0x157   : > { %755 = vst.msk [vmem:[#allocation3 + $0x58] sm:$0xff] %vm451_vm2, %v681_v62  ;;  %v1141_v5 = vld [vmem:[#allocation2 + $0x19] sm:$0xff]  ;;  %v1619_v62 = vmul.f32 %v3060_v31, %v3163_v38  ;;  %v1020_v55 = vmul.f32 %v2961_v42, %v994_v54  ;;  %v3522_v31 = vmul.f32 %v3370_v51, %v925_v22  ;;  %v3525_v38 = vmul.f32 %v3304_v3, %v1073_v27  ;;  %v664_v10 = vpop.f32.mrf.mxu1 }
 0x158   : > { %5027 = vst [vmem:[#allocation57_spill] sm:$0xff] %v3482_v32  ;;  %v1316_v11 = vadd.f32 %v1292_v25, %v3350_v26  ;;  %v1167_v32 = vmul.f32 %v2978_v49, %v1141_v5  ;;  %v3528_v26 = vmul.f32 %v3362_v35, %v925_v22  ;;  %v1725_v5 = vmul.f32 %v3073_v40, %v3165_v47 }
 0x159   : > { %5028 = vst [vmem:[#allocation58_spill] sm:$0xff] %v3485_v37  ;;  %v1642_v37 = vadd.f32 %v1618_v7, %v1536_v0  ;;  %v684_v43 = vpop.f32.mrf.mxu3  ;;  %v3542_v7 = vadd.f32 %v1098_v63, %v950_v14 }
 0x15a   : > { %5029 = vst [vmem:[#allocation59_spill] sm:$0xff] %v3488_v39  ;;  %v5034_v39 = vld [vmem:[#allocation13_spill] sm:$0xff]  ;;  %v1191_v14 = vadd.f32 %v1167_v32, %v3417_v45 }
 0x15b   : > { %725 = vst.msk [vmem:[#allocation2 + $0x28] sm:$0xff] %vm451_vm2, %v589_v57  ;;  %v1398_v57 = vmul.f32 %v3038_v12, %v994_v54  ;;  %v3531_v54 = vmul.f32 %v3375_v13, %v1073_v27  ;;  %v1044_v27 = vadd.f32 %v1020_v55, %v872_v4  ;;  %v1830_v20 = vmul.f32 %v3081_v48, %v5034_v39 }
 0x15c   : > { %833 = vst.msk [vmem:[#allocation2 + $0xe0] sm:$0xff] %vm451_vm2, %v798_v29  ;;  %v3516_v29 = vmul.f32 %v3428_v23, %v1220_v53  ;;  %v1748_v47 = vadd.f32 %v1724_v2, %v1642_v37  ;;  %v3570_v4 = vmul.f32 %v3357_v8, %v1220_v53  ;;  %v3573_v55 = vadd.f32 %v1245_v6, %v3475_v56 }
 0x15d   : > { %747 = vst.msk [vmem:[#allocation2 + $0xd8] sm:$0xff] %vm451_vm2, %v644_v52  ;;  %v1422_v22 = vadd.f32 %v1398_v57, %v1316_v11  ;;  %v1643_v52 = vadd.f32 %v1619_v62, %v1537_v33  ;;  %v800_v62 = vpop.f32.mrf.mxu0 }
 0x15e   : > { %5030 = vst [vmem:[#allocation60_spill] sm:$0xff] %v3525_v38  ;;  %v3535_v25 = vld [vmem:[#allocation3 + $0x57] sm:$0xff]  ;;  %v3588_v56 = vadd.f32 %v1830_v20, %v1748_v47 }
 0x15f   : > { %5031 = vst [vmem:[#allocation61_spill] sm:$0xff] %v3531_v54  ;;  %v3537_v0 = vld [vmem:[#allocation3 + $0x58] sm:$0xff]  ;;  %v953_v63 = vmul.f32 %v3299_v28, %v3535_v25 }
 0x160   : > { %5032 = vst [vmem:[#allocation62_spill] sm:$0xff] %v3537_v0  ;;  %v1101_v40 = vmul.f32 %v3288_v16, %v3537_v0  ;;  %v3586_v0 = vadd.f32 %v1725_v5, %v1643_v52  ;;  %v5038_v52 = vld [vmem:[#allocation14_spill] sm:$0xff] }
 0x161   : > { %5033 = vst [vmem:[#allocation63_spill] sm:$0xff] %v3540_v17 }
 0x162   : > { %756 = vst.msk [vmem:[#allocation3 + $0x60] sm:$0xff] %vm451_vm2, %v684_v43  ;;  %v3549_v15 = vld [vmem:[#allocation2 + $0x27] sm:$0xff]  ;;  %v848_v11 = vld [vmem:[#allocation2 + $0x2f] sm:$0xff]  ;;  %v3584_v53 = vadd.f32 %v1101_v40, %v953_v63 }
 0x163   : > { %v3551_v38 = vld [vmem:[#allocation2 + $0x28] sm:$0xff]  ;;  %v1293_v33 = vmul.f32 %v3026_v9, %v3549_v15  ;;  %748 = vst.msk [vmem:[#allocation3 + $0x20] sm:$0xff] %vm451_vm2, %v664_v10  ;;  %v1294_v37 = vmul.f32 %v3026_v9, %v848_v11  ;;  %v1074_v43 = vld [vmem:[#allocation3 + $0x50] sm:$0xff]  ;;  %v5041_v40 = vld [vmem:[#allocation8_spill] sm:$0xff] }
 0x164   : > { %v1142_v54 = vld [vmem:[#allocation2 + $0x21] sm:$0xff]  ;;  %v1399_v39 = vmul.f32 %v3038_v12, %v3551_v38  ;;  %v3565_v32 = vld [vmem:[#allocation2 + $0x29] sm:$0xff]  ;;  %834 = vst.msk [vmem:[#allocation2 + $0xe8] sm:$0xff] %vm451_vm2, %v800_v62  ;;  %v3577_v12 = vmul.f32 %v3081_v48, %v3265_v30  ;;  %v3582_v62 = vmul.f32 %v3081_v48, %v2996_v60  ;;  %v2175_v60 = vld [vmem:[%s4902_s6] sm:$0xf]  ;;  %v1100_v5 = vmul.f32 %v3288_v16, %v1074_v43 }
 0x165   : > { %v1504_v57 = vmul.f32 %v3047_v21, %v1142_v54  ;;  %v1168_v45 = vmul.f32 %v2978_v49, %v1142_v54  ;;  %5035 = vst [vmem:[#allocation13_spill] sm:$0xff] %v3573_v55  ;;  %v1317_v10 = vadd.f32 %v1293_v33, %v3409_v18  ;;  %v926_v54 = vld [vmem:[#allocation3 + $0x4f] sm:$0xff]  ;;  %v1318_v9 = vadd.f32 %v1294_v37, %v1191_v14 }
 0x166   : > { %v1505_v30 = vmul.f32 %v3047_v21, %v3565_v32  ;;  %v5036_v18 = vld [vmem:[#allocation6_spill] sm:$0xff]  ;;  %v952_v48 = vmul.f32 %v3299_v28, %v926_v54  ;;  %v2214_v63 = vsel %vm2212_vm3, %v2175_v60, 0 }
 0x167   : > { %v1528_v2 = vadd.f32 %v1504_v57, %v1422_v22  ;;  %v1192_v17 = vadd.f32 %v1168_v45, %v1044_v27  ;;  %v1423_v6 = vadd.f32 %v1399_v39, %v1317_v10  ;;  %v3593_v33 = vld [vmem:[#allocation3 + $0x49] sm:$0xff]  ;;  %v5037_v27 = vld [vmem:[#allocation12_spill] sm:$0xff]  ;;  %v686_v45 = vpop.f32.mrf.mxu3  ;;  %v1424_v20 = vadd.f32 %v5038_v52, %v1318_v9  ;;  %v5042_v39 = vld [vmem:[#allocation15_spill] sm:$0xff]  ;;  %v666_v10 = vpop.f32.mrf.mxu1  ;;  %2223 = vmatpush.bf16.msra.mxu0 %v2214_v63 }
 0x168   : > { %757 = vst.msk [vmem:[#allocation3 + $0x68] sm:$0xff] %vm451_vm2, %v686_v45  ;;  %2573 = vmatpush.bf16.msra.mxu1 %v2214_v63  ;;  %v5044_v45 = vld [vmem:[#allocation7_spill] sm:$0xff]  ;;  %v3628_v63 = vmul.f32 %v3304_v3, %v1074_v43 }
 0x169   : > { %v1634_v22 = vadd.f32 %v5036_v18, %v1528_v2  ;;  %v1319_v57 = vadd.f32 %v5037_v27, %v1192_v17  ;;  %v3602_v14 = vld [vmem:[#allocation3 + $0x5f] sm:$0xff]  ;;  %v1529_v17 = vadd.f32 %v1505_v30, %v1423_v6  ;;  %749 = vst.msk [vmem:[#allocation3 + $0x28] sm:$0xff] %vm451_vm2, %v666_v10  ;;  %v5045_v6 = vld [vmem:[#allocation9_spill] sm:$0xff] }
 0x16a   : > { %5039 = vst [vmem:[#allocation6_spill] sm:$0xff] %v3602_v14  ;;  %v3604_v21 = vld [vmem:[#allocation3 + $0x60] sm:$0xff]  ;;  %v954_v9 = vmul.f32 %v3299_v28, %v3602_v14 }
 0x16b   : > { %5040 = vst [vmem:[#allocation12_spill] sm:$0xff] %v3604_v21  ;;  %v1740_v47 = vadd.f32 %v5041_v40, %v1634_v22  ;;  %v1425_v37 = vadd.f32 %v5042_v39, %v1319_v57  ;;  %v5043_v2 = vld [vmem:[#allocation16_spill] sm:$0xff]  ;;  %v1102_v27 = vmul.f32 %v3288_v16, %v3604_v21  ;;  %v1635_v60 = vadd.f32 %v5044_v45, %v1529_v17  ;;  %v5048_v40 = vld [vmem:[#allocation17_spill] sm:$0xff]  ;;  %v5054_v21 = vld [vmem:[#allocation22_spill] sm:$0xff] }
 0x16c   : > { %v1530_v18 = vadd.f32 %v5043_v2, %v1424_v20  ;;  %v3621_v22 = vmul.f32 %v3357_v8, %v3593_v33  ;;  %v3624_v57 = vmul.f32 %v3370_v51, %v926_v54  ;;  %v920_v52 = vld [vmem:[#allocation3 + $0x1f] sm:$0xff]  ;;  %v874_v20 = vmul.f32 %v2956_v41, %v848_v11  ;;  %5047 = vst [vmem:[#allocation8_spill] sm:$0xff] %v3628_v63 }
 0x16d   : > { %v3617_v30 = vadd.f32 %v5045_v6, %v1740_v47  ;;  %v1531_v39 = vadd.f32 %v5048_v40, %v1425_v37  ;;  %v3633_v17 = vmul.f32 %v3389_v1, %v3593_v33  ;;  %v5050_v47 = vld [vmem:[#allocation21_spill] sm:$0xff]  ;;  %v3640_v6 = vmul.f32 %v3362_v35, %v926_v54  ;;  %v3642_v11 = vld [vmem:[#allocation3 + $0x59] sm:$0xff] }
 0x16e   : > { %5046 = vst [vmem:[#allocation14_spill] sm:$0xff] %v3624_v57  ;;  %v1741_v10 = vadd.f32 %v5050_v47, %v1635_v60  ;;  %v1636_v45 = vadd.f32 %v3273_v24, %v1530_v18  ;;  %v803_v57 = vpop.f32.mrf.mxu0  ;;  %v5052_v63 = vld [vmem:[#allocation28_spill] sm:$0xff]  ;;  %v3646_v37 = vmul.f32 %v3375_v13, %v1074_v43  ;;  %v873_v40 = vmul.f32 %v2956_v41, %v3549_v15  ;;  %v5055_v18 = vld [vmem:[#allocation31_spill] sm:$0xff]  ;;  %v5057_v41 = vld [vmem:[#allocation10_spill] sm:$0xff] }
 0x16f   : > { %5049 = vst [vmem:[#allocation15_spill] sm:$0xff] %v3633_v17  ;;  %v1923_v2 = vmul.f32 %v3617_v30, %v3617_v30  ;;  %v1637_v55 = vadd.f32 %v5052_v63, %v1531_v39  ;;  %v3650_v60 = vadd.f32 %v1102_v27, %v954_v9  ;;  %v1345_v47 = vmul.f32 %v3370_v51, %v920_v52  ;;  %v689_v63 = vpop.f32.mrf.mxu3  ;;  %v5056_v39 = vld [vmem:[#allocation34_spill] sm:$0xff] }
 0x170   : > { %5051 = vst [vmem:[#allocation16_spill] sm:$0xff] %v3642_v11  ;;  %v3654_v24 = vadd.f32 %v5054_v21, %v1741_v10  ;;  %v1742_v17 = vadd.f32 %v5055_v18, %v1636_v45  ;;  %v1021_v13 = vmul.f32 %v2961_v42, %v3551_v38  ;;  %v1046_v15 = vadd.f32 %v5057_v41, %v874_v20  ;;  %v1068_v21 = vld [vmem:[#allocation3 + $0x20] sm:$0xff]  ;;  %v3674_v42 = vld [vmem:[#allocation3 + $0x28] sm:$0xff] }
 0x171   : > { %5053 = vst [vmem:[#allocation7_spill] sm:$0xff] %v3646_v37  ;;  %v1947_v54 = vmul.f32 %v1923_v2, %v3617_v30  ;;  %v1743_v43 = vadd.f32 %v5056_v39, %v1637_v55  ;;  %v1249_v9 = vmul.f32 %v3357_v8, %v3642_v11  ;;  %v3668_v10 = vadd.f32 %v1100_v5, %v952_v48  ;;  %v3672_v2 = vld [vmem:[#allocation3 + $0x27] sm:$0xff]  ;;  %v1215_v20 = vld [vmem:[#allocation3 + $0x19] sm:$0xff] }
 0x172   : > { %835 = vst.msk [vmem:[#allocation2 + $0xf0] sm:$0xff] %vm451_vm2, %v803_v57  ;;  %v1924_v27 = vmul.f32 %v3654_v24, %v3654_v24  ;;  %v1169_v55 = vmul.f32 %v2978_v49, %v3565_v32  ;;  %v1451_v38 = vmul.f32 %v3304_v3, %v1068_v21  ;;  %v5059_v45 = vld [vmem:[#allocation32_spill] sm:$0xff]  ;;  %v1346_v49 = vmul.f32 %v3370_v51, %v3672_v2  ;;  %v3692_v11 = vld [vmem:[#allocation3 + $0x29] sm:$0xff] }
 0x173   : > { %758 = vst.msk [vmem:[#allocation3 + $0x70] sm:$0xff] %vm451_vm2, %v689_v63  ;;  %v1971_v57 = vmul.f32 0.044715, %v1947_v54  ;;  %v3678_v18 = vadd.f32 %v5059_v45, %v1742_v17  ;;  %v5060_v63 = vld [vmem:[#allocation37_spill] sm:$0xff]  ;;  %v3684_v54 = vadd.f32 %v1249_v9, %v3584_v53  ;;  %v1369_v32 = vadd.f32 %v1345_v47, %v3439_v46  ;;  %v5062_v53 = vld [vmem:[#allocation11_spill] sm:$0xff] }
 0x174   : > { %5058 = vst [vmem:[#allocation9_spill] sm:$0xff] %v3668_v10  ;;  %v3681_v39 = vadd.f32 %v5060_v63, %v1743_v43  ;;  %v1216_v48 = vld [vmem:[#allocation3 + $0x21] sm:$0xff]  ;;  %v1452_v5 = vmul.f32 %v3304_v3, %v3674_v42  ;;  %v1948_v41 = vmul.f32 %v1924_v27, %v3654_v24  ;;  %v946_v43 = vmul.f32 %v3299_v28, %v920_v52  ;;  %v922_v27 = vld [vmem:[#allocation3 + $0x2f] sm:$0xff] }
 0x175   : > { %5061 = vst [vmem:[#allocation17_spill] sm:$0xff] %v3684_v54  ;;  %v1995_v17 = vadd.f32 %v1971_v57, %v3617_v30  ;;  %v1045_v45 = vadd.f32 %v1021_v13, %v873_v40  ;;  %v1194_v9 = vadd.f32 %v5062_v53, %v1046_v15  ;;  %v1370_v63 = vadd.f32 %v1346_v49, %v3478_v44 }
 0x176   : > { %v1972_v54 = vmul.f32 0.044715, %v1948_v41  ;;  %v1094_v14 = vmul.f32 %v3288_v16, %v1068_v21  ;;  %v1241_v46 = vmul.f32 %v3357_v8, %v1215_v20  ;;  %v1557_v47 = vmul.f32 %v3389_v1, %v1216_v48  ;;  %v805_v13 = vpop.f32.mrf.mxu0 }
 0x177   : > { %v2019_v35 = vmul.f32 0.7978846, %v1995_v17  ;;  %v1925_v10 = vmul.f32 %v3678_v18, %v3678_v18  ;;  %v1926_v52 = vmul.f32 %v3681_v39, %v3681_v39  ;;  %v1475_v40 = vadd.f32 %v1451_v38, %v1369_v32  ;;  %v691_v57 = vpop.f32.mrf.mxu3 }
 0x178   : > { %v1476_v15 = vadd.f32 %v1452_v5, %v1370_v63  ;;  %v1558_v44 = vmul.f32 %v3389_v1, %v3692_v11  ;;  %v1996_v21 = vadd.f32 %v1972_v54, %v3654_v24  ;;  %v1242_v20 = vmul.f32 %v3357_v8, %v1216_v48  ;;  %759 = vst.msk [vmem:[#allocation3 + $0x78] sm:$0xff] %vm451_vm2, %v691_v57  ;;  %v3713_v5 = vld [vmem:[#allocation3 + $0x61] sm:$0xff] }
 0x179   : > { %2642 = vtanh.f32 %v2019_v35  ;;  %v1949_v49 = vmul.f32 %v1925_v10, %v3678_v18  ;;  %v1950_v41 = vmul.f32 %v1926_v52, %v3681_v39  ;;  %v1118_v53 = vadd.f32 %v1094_v14, %v946_v43 }
 0x17a   : > { %v2020_v17 = vmul.f32 0.7978846, %v1996_v21  ;;  %v1347_v38 = vmul.f32 %v3370_v51, %v922_v27  ;;  %v1193_v32 = vadd.f32 %v1169_v55, %v1045_v45  ;;  %v1581_v63 = vadd.f32 %v1557_v47, %v1475_v40  ;;  %v5065_v21 = vld [vmem:[#allocation23_spill] sm:$0xff] }
 0x17b   : > { %v1582_v13 = vadd.f32 %v1558_v44, %v1476_v15  ;;  %v1973_v54 = vmul.f32 0.044715, %v1949_v49  ;;  %v1974_v37 = vmul.f32 0.044715, %v1950_v41  ;;  %v1265_v35 = vadd.f32 %v1241_v46, %v3490_v34  ;;  %v5063_v34 = vld [vmem:[#allocation24_spill] sm:$0xff]  ;;  %v5066_v41 = vld [vmem:[#allocation50_spill] sm:$0xff] }
 0x17c   : > { %2644 = vtanh.f32 %v2020_v17  ;;  %v3718_v10 = vadd.f32 %v3621_v22, %v3533_v58  ;;  %v3722_v48 = vmul.f32 %v3428_v23, %v3593_v33  ;;  %v1266_v14 = vadd.f32 %v1242_v20, %v1118_v53  ;;  %v5064_v33 = vld [vmem:[#allocation47_spill] sm:$0xff] }
 0x17d   : > { %v1997_v55 = vadd.f32 %v1973_v54, %v3678_v18  ;;  %v1998_v43 = vadd.f32 %v1974_v37, %v3681_v39  ;;  %v1250_v45 = vmul.f32 %v3357_v8, %v3713_v5  ;;  %v948_v47 = vmul.f32 %v3299_v28, %v922_v27 }
 0x17e   : > { %v1371_v52 = vadd.f32 %v1347_v38, %v1265_v35  ;;  %v1321_v46 = vadd.f32 %v5063_v34, %v1194_v9  ;;  %v3732_v58 = vadd.f32 %v3577_v12, %v3586_v0  ;;  %v1687_v40 = vadd.f32 %v5064_v33, %v1581_v63  ;;  %v5068_v38 = vld [vmem:[#allocation43_spill] sm:$0xff] }
 0x17f   : > { %v2643_v22 = vpop.eup %2642  ;;  %v1688_v15 = vadd.f32 %v3458_v19, %v1582_v13  ;;  %v2022_v44 = vmul.f32 0.7978846, %v1998_v43  ;;  %v1320_v37 = vadd.f32 %v5065_v21, %v1193_v32  ;;  %v2021_v20 = vmul.f32 0.7978846, %v1997_v55  ;;  %v694_v49 = vpop.f32.mrf.mxu3  ;;  %v5070_v13 = vld [vmem:[#allocation48_spill] sm:$0xff]  ;;  %v5072_v55 = vld [vmem:[#allocation25_spill] sm:$0xff] }
 0x180   : > { %v2067_v57 = vadd.f32 1.0, %v2643_v22  ;;  %v947_v27 = vmul.f32 %v3299_v28, %v3672_v2  ;;  %v1095_v9 = vmul.f32 %v3288_v16, %v3674_v42  ;;  %v1372_v0 = vadd.f32 %v5066_v41, %v1266_v14  ;;  %760 = vst.msk [vmem:[#allocation3 + $0x80] sm:$0xff] %vm451_vm2, %v694_v49  ;;  %v5069_v42 = vld [vmem:[#allocation41_spill] sm:$0xff]  ;;  %v5071_v14 = vld [vmem:[#allocation35_spill] sm:$0xff]  ;;  %v5078_v49 = vld [vmem:[#allocation44_spill] sm:$0xff] }
 0x181   : > { %v3743_v12 = vadd.f32 %v1250_v45, %v3650_v60  ;;  %v3747_v19 = vadd.f32 %v3570_v4, %v3542_v7  ;;  %v1931_v17 = vmul.f32 %v3588_v56, %v3588_v56  ;;  %v1477_v32 = vadd.f32 %v5068_v38, %v1371_v52  ;;  %v1222_v22 = vld [vmem:[#allocation3 + $0x51] sm:$0xff]  ;;  %v5079_v38 = vld [vmem:[#allocation45_spill] sm:$0xff] }
 0x182   : > { %v2645_v53 = vpop.eup %2644  ;;  %v2091_v2 = vmul.f32 0.5, %v2067_v57  ;;  %2646 = vtanh.f32 %v2022_v44  ;;  %v1120_v63 = vadd.f32 %v5069_v42, %v948_v47  ;;  %v1793_v54 = vadd.f32 %v5070_v13, %v1687_v40  ;;  %v5073_v47 = vld [vmem:[#allocation51_spill] sm:$0xff]  ;;  %v5074_v40 = vld [vmem:[#allocation38_spill] sm:$0xff] }
 0x183   : > { %5067 = vst [vmem:[#allocation21_spill] sm:$0xff] %v3743_v12  ;;  %v1794_v60 = vadd.f32 %v3461_v36, %v1688_v15  ;;  %v2068_v35 = vadd.f32 1.0, %v2645_v53  ;;  %v1426_v7 = vadd.f32 %v5071_v14, %v1320_v37  ;;  %2648 = vtanh.f32 %v2021_v20  ;;  %v5075_v36 = vld [vmem:[#allocation52_spill] sm:$0xff]  ;;  %v5076_v37 = vld [vmem:[#allocation49_spill] sm:$0xff] }
 0x184   : > { %v1119_v4 = vadd.f32 %v1095_v9, %v947_v27  ;;  %v1427_v43 = vadd.f32 %v5072_v55, %v1321_v46  ;;  %v3760_v45 = vmul.f32 %v3732_v58, %v3732_v58  ;;  %v2115_v52 = vmul.f32 %v2091_v2, %v3617_v30  ;;  %v5077_v46 = vld [vmem:[#allocation26_spill] sm:$0xff] }
 0x185   : > { %v2092_v34 = vmul.f32 0.5, %v2068_v35  ;;  %v1478_v33 = vadd.f32 %v5073_v47, %v1372_v0  ;;  %v1532_v44 = vadd.f32 %v5074_v40, %v1426_v7  ;;  %v1583_v15 = vadd.f32 %v5075_v36, %v1477_v32  ;;  %v5080_v35 = vld [vmem:[#allocation46_spill] sm:$0xff]  ;;  %v3788_v7 = vld [vmem:[#allocation3 + $0x67] sm:$0xff] }
 0x186   : > { %v1243_v21 = vmul.f32 %v3357_v8, %v3692_v11  ;;  %v1268_v57 = vadd.f32 %v5076_v37, %v1120_v63  ;;  %v1533_v20 = vadd.f32 %v5077_v46, %v1427_v43  ;;  %v1899_v27 = vadd.f32 %v3464_v59, %v1793_v54  ;;  %v5082_v47 = vld [vmem:[#allocation62_spill] sm:$0xff] }
 0x187   : > { %v1900_v9 = vadd.f32 %v3516_v29, %v1794_v60  ;;  %v2116_v30 = vmul.f32 %v2092_v34, %v3654_v24  ;;  %v1638_v41 = vadd.f32 %v5078_v49, %v1532_v44  ;;  %v1248_v53 = vmul.f32 %v3357_v8, %v1222_v22  ;;  %v696_v42 = vpop.f32.mrf.mxu3  ;;  %v3808_v44 = vld [vmem:[#allocation3 + $0x68] sm:$0xff]  ;;  %v3820_v46 = vld [vmem:[#allocation3 + $0x71] sm:$0xff] }
 0x188   : > { %v2647_v0 = vpop.eup %2646  ;;  %v1267_v2 = vadd.f32 %v1243_v21, %v1119_v4  ;;  %v1639_v32 = vadd.f32 %v5079_v38, %v1533_v20  ;;  %v3777_v11 = vmul.f32 %v1931_v17, %v3588_v56  ;;  %v2139_v63 = vmul.f32 %v2115_v52, %v1899_v27  ;;  %761 = vst.msk [vmem:[#allocation3 + $0x88] sm:$0xff] %vm451_vm2, %v696_v42  ;;  %v3790_v4 = vld [vmem:[#allocation3 + $0x6f] sm:$0xff]  ;;  %v5081_v52 = vld [vmem:[#allocation55_spill] sm:$0xff]  ;;  %v5085_v27 = vld [vmem:[#allocation60_spill] sm:$0xff] }
 0x189   : > { %v2140_v13 = vmul.f32 %v2116_v30, %v1900_v9  ;;  %v3780_v59 = vmul.f32 %v3389_v1, %v1222_v22  ;;  %v1584_v29 = vadd.f32 %v3467_v61, %v1478_v33  ;;  %v2649_v24 = vpop.eup %2648  ;;  %v1689_v54 = vadd.f32 %v3528_v26, %v1583_v15  ;;  %v5083_v33 = vld [vmem:[#allocation54_spill] sm:$0xff]  ;;  %v5086_v38 = vld [vmem:[#allocation56_spill] sm:$0xff] }
 0x18a   : > { %v1374_v60 = vadd.f32 %v3522_v31, %v1268_v57  ;;  %v1744_v14 = vadd.f32 %v5080_v35, %v1638_v41  ;;  %v1745_v17 = vadd.f32 %v3494_v50, %v1639_v32  ;;  %v1878_v43 = vmul.f32 %v3428_v23, %v1222_v22  ;;  %v3810_v22 = vld [vmem:[#allocation3 + $0x70] sm:$0xff] }
 0x18b   : > { %v2163_v55 = vpack.c.bf16 %v2140_v13, %v2139_v63  ;;  %v2070_v34 = vadd.f32 1.0, %v2647_v0  ;;  %v3795_v61 = vmul.f32 %v3370_v51, %v3535_v25  ;;  %v1373_v26 = vadd.f32 %v5081_v52, %v1267_v2  ;;  %v3812_v36 = vld [vmem:[#allocation3 + $0x69] sm:$0xff] }
 0x18c   : > { %v3800_v31 = vmul.f32 %v3304_v3, %v5082_v47  ;;  %v3803_v50 = vadd.f32 %v5083_v33, %v1744_v14  ;;  %v3806_v40 = vadd.f32 %v3582_v62, %v1745_v17  ;;  %v1690_v15 = vadd.f32 %v3640_v6, %v1584_v29  ;;  %v5084_v62 = vld [vmem:[#allocation61_spill] sm:$0xff] }
 0x18d   : > { %2543 = vmatmul.msk.bf16.vlgmr.msra.gmra.mxu0 %vm451_vm2, %v2163_v55  ;;  %v2069_v21 = vadd.f32 1.0, %v2649_v24  ;;  %v955_v37 = vmul.f32 %v3299_v28, %v3788_v7  ;;  %v956_v57 = vmul.f32 %v3299_v28, %v3790_v4  ;;  %v1795_v20 = vadd.f32 %v5084_v62, %v1689_v54  ;;  %v5087_v24 = vld [vmem:[#allocation7_spill] sm:$0xff]  ;;  %v5088_v17 = vld [vmem:[#allocation9_spill] sm:$0xff] }
 0x18e   : > { %v1480_v9 = vadd.f32 %v5085_v27, %v1374_v60  ;;  %v1927_v30 = vmul.f32 %v3803_v50, %v3803_v50  ;;  %v1928_v49 = vmul.f32 %v3806_v40, %v3806_v40  ;;  %v2094_v6 = vmul.f32 0.5, %v2070_v34  ;;  %v5089_v34 = vld [vmem:[#allocation40_spill] sm:$0xff]  ;;  %v5090_v27 = vld [vmem:[#allocation6_spill] sm:$0xff] }
 0x18f   : > { %v1103_v41 = vmul.f32 %v3288_v16, %v3808_v44  ;;  %v1104_v0 = vmul.f32 %v3288_v16, %v3810_v22  ;;  %v1251_v2 = vmul.f32 %v3357_v8, %v3812_v36  ;;  %v1479_v32 = vadd.f32 %v5086_v38, %v1373_v26  ;;  %v699_v29 = vpop.f32.mrf.mxu3 }
 0x190   : > { %v1951_v42 = vmul.f32 %v1927_v30, %v3803_v50  ;;  %v1952_v63 = vmul.f32 %v1928_v49, %v3806_v40  ;;  %v1252_v13 = vmul.f32 %v3357_v8, %v3820_v46  ;;  %v1796_v54 = vadd.f32 %v5087_v24, %v1690_v15  ;;  %762 = vst.msk [vmem:[#allocation3 + $0x90] sm:$0xff] %vm451_vm2, %v699_v29  ;;  %v5094_v49 = vld [vmem:[#allocation15_spill] sm:$0xff] }
 0x191   : > { %v2093_v60 = vmul.f32 0.5, %v2069_v21  ;;  %v1127_v35 = vadd.f32 %v1103_v41, %v955_v37  ;;  %v1128_v14 = vadd.f32 %v1104_v0, %v956_v57  ;;  %v3842_v55 = vadd.f32 %v1248_v53, %v5088_v17  ;;  %v5093_v37 = vld [vmem:[#allocation63_spill] sm:$0xff]  ;;  %v5101_v17 = vld [vmem:[#allocation42_spill] sm:$0xff] }
 0x192   : > { %v1667_v52 = vmul.f32 %v5089_v34, %v3535_v25  ;;  %v1975_v26 = vmul.f32 0.044715, %v1951_v42  ;;  %v1976_v33 = vmul.f32 0.044715, %v1952_v63  ;;  %v2118_v62 = vmul.f32 %v2094_v6, %v3681_v39  ;;  %v5095_v6 = vld [vmem:[#allocation12_spill] sm:$0xff] }
 0x193   : > { %v3849_v30 = vmul.f32 %v3370_v51, %v5090_v27  ;;  %v3851_v15 = vadd.f32 %v1251_v2, %v1127_v35  ;;  %v3853_v21 = vadd.f32 %v1252_v13, %v1128_v14  ;;  %v1585_v57 = vadd.f32 %v5093_v37, %v1479_v32  ;;  %v5096_v2 = vld [vmem:[#allocation16_spill] sm:$0xff] }
 0x194   : > { %v1586_v53 = vadd.f32 %v5094_v49, %v1480_v9  ;;  %v1999_v41 = vadd.f32 %v1975_v26, %v3803_v50  ;;  %v2000_v25 = vadd.f32 %v1976_v33, %v3806_v40  ;;  %v1901_v0 = vadd.f32 %v3722_v48, %v1795_v20  ;;  %v5097_v48 = vld [vmem:[#allocation18_spill] sm:$0xff]  ;;  %v5099_v20 = vld [vmem:[#allocation20_spill] sm:$0xff] }
 0x195   : > { %5091 = vst [vmem:[#allocation28_spill] sm:$0xff] %v3851_v15  ;;  %v1902_v38 = vadd.f32 %v1878_v43, %v1796_v54  ;;  %v2117_v39 = vmul.f32 %v2093_v60, %v3678_v18  ;;  %v3863_v42 = vmul.f32 %v3304_v3, %v5095_v6  ;;  %v1564_v63 = vmul.f32 %v3389_v1, %v5096_v2  ;;  %v5098_v43 = vld [vmem:[#allocation19_spill] sm:$0xff]  ;;  %v3879_v33 = vld [vmem:[#allocation2 + $0x90] sm:$0xff] }
 0x196   : > { %5092 = vst [vmem:[#allocation22_spill] sm:$0xff] %v3853_v21  ;;  %v1668_v32 = vmul.f32 %v5089_v34, %v5090_v27  ;;  %v2023_v9 = vmul.f32 0.7978846, %v1999_v41  ;;  %v2024_v13 = vmul.f32 0.7978846, %v2000_v25  ;;  %v3871_v24 = vmul.f32 %v3389_v1, %v3713_v5  ;;  %v5100_v54 = vld [vmem:[#allocation27_spill] sm:$0xff] }
 0x197   : > { %v2142_v29 = vmul.f32 %v2118_v62, %v1902_v38  ;;  %v1203_v18 = vadd.f32 %v5098_v43, %v5097_v48  ;;  %v1204_v60 = vadd.f32 %v5100_v54, %v5099_v20  ;;  %v1691_v35 = vadd.f32 %v1667_v52, %v1585_v57  ;;  %v3881_v27 = vld [vmem:[#allocation2 + $0x98] sm:$0xff]  ;;  %v701_v62 = vpop.f32.mrf.mxu3  ;;  %v5103_v52 = vld [vmem:[#allocation13_spill] sm:$0xff] }
 0x198   : > { %v1692_v14 = vadd.f32 %v1668_v32, %v1586_v53  ;;  %v1773_v26 = vmul.f32 %v5101_v17, %v5082_v47  ;;  %2650 = vtanh.f32 %v2023_v9  ;;  %5102 = vst [vmem:[#allocation31_spill] sm:$0xff] %v3881_v27  ;;  %v2141_v37 = vmul.f32 %v2117_v39, %v1901_v0  ;;  %v3887_v25 = vld [vmem:[#allocation2 + $0x91] sm:$0xff]  ;;  %v3894_v38 = vld [vmem:[#allocation2 + $0xa7] sm:$0xff]  ;;  %v3907_v43 = vld [vmem:[%s4900_s4 + $0x4] ss:$0 sm:$0xff] }
 0x199   : > { %v1774_v49 = vmul.f32 %v5101_v17, %v5095_v6  ;;  %v1879_v41 = vmul.f32 %v3428_v23, %v5096_v2  ;;  %2652 = vtanh.f32 %v2024_v13  ;;  %763 = vst.msk [vmem:[#allocation3 + $0x98] sm:$0xff] %vm451_vm2, %v701_v62  ;;  %v5104_v47 = vld [vmem:[#allocation14_spill] sm:$0xff]  ;;  %v1376_v53 = vadd.f32 %v3795_v61, %v3747_v19  ;;  %v5107_v39 = vld [vmem:[#allocation33_spill] sm:$0xff]  ;;  %v5108_v32 = vld [vmem:[#allocation36_spill] sm:$0xff] }
 0x19a   : > { %v1375_v57 = vadd.f32 %v5104_v47, %v5103_v52  ;;  %5105 = vst [vmem:[#allocation34_spill] sm:$0xff] %v3894_v38  ;;  %v3896_v0 = vld [vmem:[#allocation2 + $0xaf] sm:$0xff]  ;;  %v1330_v6 = vadd.f32 %v5107_v39, %v1203_v18  ;;  %v1331_v9 = vadd.f32 %v5108_v32, %v1204_v60  ;;  %v3900_v2 = vld [vmem:[#allocation2 + $0x99] sm:$0xff]  ;;  %v2164_v13 = vpack.c.bf16 %v2142_v29, %v2141_v37 }
 0x19b   : > { %5106 = vst [vmem:[#allocation10_spill] sm:$0xff] %v3896_v0  ;;  %v3902_v48 = vld [vmem:[#allocation2 + $0xa8] sm:$0xff]  ;;  %v1412_v19 = vmul.f32 %v3907_v43, %v3879_v33  ;;  %v1413_v61 = vmul.f32 %v3907_v43, %v3881_v27  ;;  %v3916_v18 = vld [vmem:[%s4900_s4 + $0x5] ss:$0 sm:$0xff]  ;;  %v1797_v20 = vadd.f32 %v1773_v26, %v1691_v35  ;;  %v1798_v54 = vadd.f32 %v1774_v49, %v1692_v14  ;;  %v3922_v62 = vld [vmem:[#allocation2 + $0xb0] sm:$0xff] }
 0x19c   : > { %5109 = vst [vmem:[#allocation32_spill] sm:$0xff] %v3900_v2  ;;  %v1518_v29 = vmul.f32 %v3916_v18, %v3887_v25  ;;  %v1880_v60 = vmul.f32 %v3428_v23, %v3713_v5  ;;  %v1519_v37 = vmul.f32 %v3916_v18, %v3900_v2  ;;  %v3927_v52 = vld [vmem:[#allocation2 + $0xa9] sm:$0xff]  ;;  %v3932_v32 = vld [vmem:[%s4900_s4 + $0x6] ss:$0 sm:$0xff]  ;;  %v5113_v26 = vld [vmem:[#allocation8_spill] sm:$0xff] }
 0x19d   : > { %5110 = vst [vmem:[#allocation37_spill] sm:$0xff] %v3902_v48  ;;  %2544 = vmatmul.msk.bf16.gmra.mxu0 %vm451_vm2, %v2164_v13  ;;  %v1436_v47 = vadd.f32 %v1412_v19, %v1330_v6  ;;  %v1437_v39 = vadd.f32 %v1413_v61, %v1331_v9  ;;  %v1624_v35 = vmul.f32 %v3932_v32, %v3894_v38  ;;  %v3942_v9 = vld [vmem:[#allocation2 + $0xb1] sm:$0xff]  ;;  %v3947_v19 = vld [vmem:[%s4900_s4 + $0x7] ss:$0 sm:$0xff]  ;;  %v3958_v27 = vld [vmem:[%s4900_s4 + $0x8] ss:$0 sm:$0xff] }
 0x19e   : > { %5111 = vst [vmem:[#allocation11_spill] sm:$0xff] %v3922_v62  ;;  %v1625_v5 = vmul.f32 %v3932_v32, %v3896_v0  ;;  %v2651_v14 = vpop.eup %2650  ;;  %v1481_v49 = vadd.f32 %v5113_v26, %v1375_v57  ;;  %v1482_v13 = vadd.f32 %v3800_v31, %v1376_v53  ;;  %v1670_v6 = vmul.f32 %v5089_v34, %v3790_v4 }
 0x19f   : > { %5112 = vst [vmem:[#allocation24_spill] sm:$0xff] %v3927_v52  ;;  %v1730_v61 = vmul.f32 %v3947_v19, %v3902_v48  ;;  %v2653_v21 = vpop.eup %2652  ;;  %v2071_v15 = vadd.f32 1.0, %v2651_v14  ;;  %v1542_v0 = vadd.f32 %v1518_v29, %v1436_v47  ;;  %v1543_v2 = vadd.f32 %v1519_v37, %v1437_v39  ;;  %v704_v48 = vpop.f32.mrf.mxu3 }
 0x1a0   : > { %5114 = vst [vmem:[#allocation47_spill] sm:$0xff] %v3942_v9  ;;  %v1731_v31 = vmul.f32 %v3947_v19, %v3922_v62  ;;  %v2072_v57 = vadd.f32 1.0, %v2653_v21  ;;  %v1588_v53 = vadd.f32 %v1564_v63, %v1482_v13  ;;  %v1669_v26 = vmul.f32 %v5089_v34, %v3788_v7  ;;  %v3966_v13 = vld [vmem:[#allocation3 + $0x77] sm:$0xff] }
 0x1a1   : > { %5115 = vst [vmem:[#allocation23_spill] sm:$0xff] %v3947_v19  ;;  %v1836_v12 = vmul.f32 %v3958_v27, %v3927_v52  ;;  %v2095_v14 = vmul.f32 0.5, %v2071_v15  ;;  %v1648_v29 = vadd.f32 %v1624_v35, %v1542_v0  ;;  %v1649_v37 = vadd.f32 %v1625_v5, %v1543_v2  ;;  %v3968_v62 = vld [vmem:[#allocation3 + $0x78] sm:$0xff] }
 0x1a2   : > { %5116 = vst [vmem:[#allocation50_spill] sm:$0xff] %v3958_v27  ;;  %v1837_v47 = vmul.f32 %v3958_v27, %v3942_v9  ;;  %v1903_v21 = vadd.f32 %v1879_v41, %v1797_v20  ;;  %v2096_v63 = vmul.f32 0.5, %v2072_v57  ;;  %v1587_v34 = vadd.f32 %v3780_v59, %v1481_v49  ;;  %v3990_v49 = vld [vmem:[#allocation3 + $0x7f] sm:$0xff] }
 0x1a3   : > { %764 = vst.msk [vmem:[#allocation3 + $0xa0] sm:$0xff] %vm451_vm2, %v704_v48  ;;  %v1694_v39 = vadd.f32 %v1670_v6, %v1588_v53  ;;  %v1904_v38 = vadd.f32 %v1880_v60, %v1798_v54  ;;  %v2119_v52 = vmul.f32 %v2095_v14, %v3803_v50  ;;  %v1754_v15 = vadd.f32 %v1730_v61, %v1648_v29  ;;  %v3992_v6 = vld [vmem:[#allocation3 + $0x80] sm:$0xff]  ;;  %v4006_v29 = vld [vmem:[#allocation3 + $0x8f] sm:$0xff] }
 0x1a4   : > { %5117 = vst [vmem:[#allocation43_spill] sm:$0xff] %v3966_v13  ;;  %v1755_v0 = vadd.f32 %v1731_v31, %v1649_v37  ;;  %v2120_v2 = vmul.f32 %v2096_v63, %v3806_v40  ;;  %v1354_v35 = vmul.f32 %v3370_v51, %v3788_v7  ;;  %v1693_v48 = vadd.f32 %v1669_v26, %v1587_v34 }
 0x1a5   : > { %5118 = vst [vmem:[#allocation41_spill] sm:$0xff] %v3968_v62  ;;  %v1776_v41 = vmul.f32 %v5101_v17, %v3810_v22  ;;  %v1882_v59 = vmul.f32 %v3428_v23, %v3820_v46  ;;  %v3978_v20 = vadd.f32 %v1836_v12, %v1754_v15  ;;  %v1956_v50 = vmul.f32 %v3760_v45, %v3732_v58 }
 0x1a6   : > { %v3980_v5 = vadd.f32 %v1837_v47, %v1755_v0  ;;  %v1775_v40 = vmul.f32 %v5101_v17, %v3808_v44  ;;  %v957_v7 = vmul.f32 %v3299_v28, %v3966_v13  ;;  %v1105_v60 = vmul.f32 %v3288_v16, %v3968_v62  ;;  %5119 = vst [vmem:[#allocation48_spill] sm:$0xff] %v3990_v49 }
 0x1a7   : > { %v1800_v54 = vadd.f32 %v1776_v41, %v1694_v39  ;;  %5120 = vst [vmem:[#allocation35_spill] sm:$0xff] %v3992_v6  ;;  %v2143_v12 = vmul.f32 %v2119_v52, %v1903_v21  ;;  %v2144_v61 = vmul.f32 %v2120_v2, %v1904_v38  ;;  %v1937_v31 = vmul.f32 %v3978_v20, %v3978_v20  ;;  %v706_v53 = vpop.f32.mrf.mxu3  ;;  %v4027_v39 = vld [vmem:[#allocation3 + $0x79] sm:$0xff] }
 0x1a8   : > { %v1938_v45 = vmul.f32 %v3980_v5, %v3980_v5  ;;  %v1460_v17 = vmul.f32 %v3304_v3, %v3808_v44  ;;  %v1799_v57 = vadd.f32 %v1775_v40, %v1693_v48  ;;  %v1881_v28 = vmul.f32 %v3428_v23, %v3812_v36  ;;  %765 = vst.msk [vmem:[#allocation3 + $0xa8] sm:$0xff] %vm451_vm2, %v706_v53  ;;  %v4011_v3 = vld [vmem:[%s4901_s5] ss:$0 sm:$0xff] }
 0x1a9   : > { %v1979_v16 = vmul.f32 0.044715, %v3777_v11  ;;  %v1906_v26 = vadd.f32 %v1882_v59, %v1800_v54  ;;  %v1961_v52 = vmul.f32 %v1937_v31, %v3978_v20  ;;  %v1980_v14 = vmul.f32 0.044715, %v1956_v50  ;;  %v4018_v11 = vld [vmem:[%s4901_s5 + $0x1] ss:$0 sm:$0xff]  ;;  %v824_v59 = vpop.f32.mrf.mxu1 }
 0x1aa   : > { %v1962_v38 = vmul.f32 %v1938_v45, %v3980_v5  ;;  %v958_v23 = vmul.f32 %v4011_v3, %v3990_v49  ;;  %v1106_v44 = vmul.f32 %v4018_v11, %v3992_v6  ;;  %v1377_v37 = vadd.f32 %v3849_v30, %v3718_v10  ;;  %5121 = vst [vmem:[#allocation25_spill] sm:$0xff] %v4027_v39  ;;  %v5122_v10 = vld [vmem:[#allocation59_spill] sm:$0xff]  ;;  %v4038_v30 = vld [vmem:[#allocation3 + $0x81] sm:$0xff] }
 0x1ab   : > { %v1378_v47 = vadd.f32 %v1354_v35, %v3842_v55  ;;  %v2165_v21 = vpack.c.bf16 %v2144_v61, %v2143_v12  ;;  %v1566_v63 = vmul.f32 %v3389_v1, %v3812_v36  ;;  %v1129_v34 = vadd.f32 %v1105_v60, %v957_v7  ;;  %5123 = vst [vmem:[#allocation51_spill] sm:$0xff] %v4038_v30  ;;  %v4047_v7 = vld [vmem:[#allocation3 + $0x97] sm:$0xff]  ;;  %v5125_v45 = vld [vmem:[#allocation4_spill] sm:$0xff] }
 0x1ac   : > { %v1985_v15 = vmul.f32 0.044715, %v1961_v52  ;;  %v4029_v0 = vadd.f32 %v1881_v28, %v1799_v57  ;;  %v1253_v2 = vmul.f32 %v3357_v8, %v4027_v39  ;;  %v1986_v48 = vmul.f32 0.044715, %v1962_v38  ;;  %836 = vst.msk [vmem:[#allocation3 + $0xe0] sm:$0xff] %vm451_vm2, %v824_v59  ;;  %v2694_v61 = vld [vmem:[#allocation2 + $0x77] sm:$0xff] }
 0x1ad   : > { %v2003_v41 = vadd.f32 %v1979_v16, %v3588_v56  ;;  %2545 = vmatmul.msk.bf16.gmra.mxu0 %vm451_vm2, %v2165_v21  ;;  %v4036_v55 = vmul.f32 %v5122_v10, %v1906_v26  ;;  %v1359_v1 = vmul.f32 %v3370_v51, %v4006_v29  ;;  %v2004_v35 = vadd.f32 %v1980_v14, %v3732_v58  ;;  %v4052_v51 = vld [vmem:[%s4900_s4 + $0x3] ss:$0 sm:$0xff]  ;;  %v4057_v16 = vld [vmem:[#allocation3 + $0x90] sm:$0xff]  ;;  %v4071_v52 = vld [vmem:[%s4901_s5 + $0x6] ss:$0 sm:$0xff] }
 0x1ae   : > { %v2009_v36 = vadd.f32 %v1985_v15, %v3978_v20  ;;  %v1130_v50 = vadd.f32 %v1106_v44, %v958_v23  ;;  %v2010_v8 = vadd.f32 %v1986_v48, %v3980_v5  ;;  %v1483_v40 = vadd.f32 %v3863_v42, %v1377_v37  ;;  %5124 = vst [vmem:[#allocation38_spill] sm:$0xff] %v4047_v7  ;;  %v5126_v57 = vld [vmem:[#allocation39_spill] sm:$0xff] }
 0x1af   : > { %v1484_v54 = vadd.f32 %v1460_v17, %v1378_v47  ;;  %v1277_v60 = vadd.f32 %v1253_v2, %v1129_v34  ;;  %v1303_v31 = vmul.f32 %v2694_v61, %v4052_v51  ;;  %v1326_v28 = vadd.f32 %v5126_v57, %v5125_v45  ;;  %v4059_v42 = vld [vmem:[#allocation3 + $0x91] sm:$0xff]  ;;  %v4064_v17 = vld [vmem:[%s4901_s5 + $0x2] ss:$0 sm:$0xff]  ;;  %5127 = vst [vmem:[#allocation52_spill] sm:$0xff] %v4071_v52  ;;  %v709_v23 = vpop.f32.mrf.mxu3  ;;  %v4079_v34 = vld [vmem:[#allocation3 + $0xa7] sm:$0xff] }
 0x1b0   : > { %v2033_v12 = vmul.f32 0.7978846, %v2009_v36  ;;  %v1254_v53 = vmul.f32 %v4064_v17, %v4038_v30  ;;  %v2034_v26 = vmul.f32 0.7978846, %v2010_v8  ;;  %v1671_v38 = vmul.f32 %v4071_v52, %v3966_v13  ;;  %766 = vst.msk [vmem:[#allocation3 + $0xb0] sm:$0xff] %vm451_vm2, %v709_v23  ;;  %v4107_v61 = vld [vmem:[#allocation3 + $0x99] sm:$0xff] }
 0x1b1   : > { %v2027_v14 = vmul.f32 0.7978846, %v2003_v41  ;;  %v1383_v44 = vadd.f32 %v1359_v1, %v1277_v60  ;;  %v1589_v37 = vadd.f32 %v3871_v24, %v1483_v40  ;;  %v1672_v47 = vmul.f32 %v4071_v52, %v3990_v49  ;;  %5128 = vst [vmem:[#allocation49_spill] sm:$0xff] %v4079_v34  ;;  %v4084_v15 = vld [vmem:[%s4901_s5 + $0x3] ss:$0 sm:$0xff] }
 0x1b2   : > { %v2028_v21 = vmul.f32 0.7978846, %v2004_v35  ;;  %v1360_v2 = vmul.f32 %v4084_v15, %v4047_v7  ;;  %2654 = vtanh.f32 %v2033_v12  ;;  %v1590_v48 = vadd.f32 %v1566_v63, %v1484_v54  ;;  %v2698_v41 = vld [vmem:[#allocation2 + $0x78] sm:$0xff]  ;;  %v5130_v63 = vld [vmem:[#allocation5_spill] sm:$0xff]  ;;  %5133 = vst [vmem:[#allocation45_spill] sm:$0xff] %v4107_v61 }
 0x1b3   : > { %v1409_v24 = vmul.f32 %v2698_v41, %v3907_v43  ;;  %v4092_v10 = vld [vmem:[%s4901_s5 + $0x4] ss:$0 sm:$0xff]  ;;  %v4099_v36 = vld [vmem:[%s4901_s5 + $0x5] ss:$0 sm:$0xff]  ;;  %2656 = vtanh.f32 %v2034_v26  ;;  %v1327_v59 = vadd.f32 %v1303_v31, %v5130_v63  ;;  %v1278_v8 = vadd.f32 %v1254_v53, %v1130_v50  ;;  %v5131_v54 = vld [vmem:[#allocation53_spill] sm:$0xff]  ;;  %v826_v41 = vpop.f32.mrf.mxu1 }
 0x1b4   : > { %5129 = vst [vmem:[#allocation26_spill] sm:$0xff] %v4092_v10  ;;  %v1465_v1 = vmul.f32 %v4092_v10, %v4057_v16  ;;  %v1571_v35 = vmul.f32 %v4099_v36, %v4059_v42  ;;  %v1695_v40 = vadd.f32 %v1671_v38, %v1589_v37  ;;  %2658 = vtanh.f32 %v2027_v14  ;;  %v4105_v12 = vld [vmem:[#allocation3 + $0x98] sm:$0xff]  ;;  %v4123_v53 = vld [vmem:[%s4901_s5 + $0x8] ss:$0 sm:$0xff] }
 0x1b5   : > { %v1432_v60 = vadd.f32 %v5131_v54, %v1326_v28  ;;  %5132 = vst [vmem:[#allocation44_spill] sm:$0xff] %v4105_v12  ;;  %v1677_v57 = vmul.f32 %v4071_v52, %v4079_v34  ;;  %v1696_v23 = vadd.f32 %v1672_v47, %v1590_v48  ;;  %2660 = vtanh.f32 %v2028_v21  ;;  %v4114_v50 = vld [vmem:[%s4901_s5 + $0x7] ss:$0 sm:$0xff] }
 0x1b6   : > { %v1489_v45 = vadd.f32 %v1465_v1, %v1383_v44  ;;  %v1384_v49 = vadd.f32 %v1360_v2, %v1278_v8  ;;  %5134 = vst [vmem:[#allocation46_spill] sm:$0xff] %v4114_v50  ;;  %v1777_v31 = vmul.f32 %v4114_v50, %v3968_v62  ;;  %v1778_v28 = vmul.f32 %v4114_v50, %v3992_v6  ;;  %v2703_v37 = vld [vmem:[#allocation2 + $0x79] sm:$0xff]  ;;  %v5135_v2 = vld [vmem:[#allocation58_spill] sm:$0xff]  ;;  %v4133_v1 = vld [vmem:[#allocation3 + $0xa8] sm:$0xff] }
 0x1b7   : > { %v1883_v26 = vmul.f32 %v4123_v53, %v4027_v39  ;;  %837 = vst.msk [vmem:[#allocation3 + $0xe8] sm:$0xff] %vm451_vm2, %v826_v41  ;;  %v1884_v14 = vmul.f32 %v4123_v53, %v4038_v30  ;;  %v1433_v44 = vadd.f32 %v1409_v24, %v1327_v59  ;;  %v1515_v47 = vmul.f32 %v2703_v37, %v3916_v18  ;;  %v711_v24 = vpop.f32.mrf.mxu3  ;;  %v4149_v41 = vld [vmem:[#allocation3 + $0xaf] sm:$0xff] }
 0x1b8   : > { %v1595_v38 = vadd.f32 %v1571_v35, %v1489_v45  ;;  %v2655_v21 = vpop.eup %2654  ;;  %v2145_v48 = vmul.f32 %v5135_v2, %v4029_v0  ;;  %5136 = vst [vmem:[#allocation55_spill] sm:$0xff] %v4133_v1  ;;  %v1466_v63 = vmul.f32 %v4092_v10, %v4105_v12  ;;  %v1572_v8 = vmul.f32 %v4099_v36, %v4107_v61  ;;  %v4139_v45 = vld [vmem:[#allocation2 + $0x87] sm:$0xff] }
 0x1b9   : > { %v1801_v35 = vadd.f32 %v1777_v31, %v1695_v40  ;;  %v2657_v54 = vpop.eup %2656  ;;  %5137 = vst [vmem:[#allocation62_spill] sm:$0xff] %v4139_v45  ;;  %v4143_v59 = vmul.f32 %v4084_v15, %v3790_v4  ;;  %v4147_v0 = vmul.f32 %v4092_v10, %v3810_v22  ;;  %v1802_v2 = vadd.f32 %v1778_v28, %v1696_v23  ;;  %v4153_v31 = vld [vmem:[#allocation3 + $0xa9] sm:$0xff] }
 0x1ba   : > { %5140 = vst [vmem:[#allocation60_spill] sm:$0xff] %v4149_v41  ;;  %v1701_v37 = vadd.f32 %v1677_v57, %v1595_v38  ;;  %v2659_v30 = vpop.eup %2658  ;;  %v2166_v40 = vpack.c.bf16 %v4036_v55, %v2145_v48  ;;  %v1490_v6 = vadd.f32 %v1466_v63, %v1384_v49  ;;  %v1678_v4 = vmul.f32 %v4071_v52, %v4149_v41  ;;  %v5142_v57 = vld [vmem:[#allocation57_spill] sm:$0xff]  ;;  %v4168_v55 = vld [vmem:[#allocation3 + $0xb0] sm:$0xff] }
 0x1bb   : > { %5138 = vst [vmem:[#allocation54_spill] sm:$0xff] %v4143_v59  ;;  %v4157_v61 = vadd.f32 %v1883_v26, %v1801_v35  ;;  %v2661_v9 = vpop.eup %2660  ;;  %v1783_v22 = vmul.f32 %v4114_v50, %v4133_v1  ;;  %v4161_v12 = vadd.f32 %v1884_v14, %v1802_v2  ;;  %v4164_v23 = vadd.f32 %v5142_v57, %v1432_v60  ;;  %v4174_v63 = vld [vmem:[#allocation2 + $0x88] sm:$0xff]  ;;  %v4206_v57 = vld [vmem:[#allocation2 + $0xc0] sm:$0xff] }
 0x1bc   : > { %5139 = vst [vmem:[#allocation61_spill] sm:$0xff] %v4147_v0  ;;  %v4166_v28 = vadd.f32 %v1515_v47, %v1433_v44  ;;  %v1596_v38 = vadd.f32 %v1572_v8, %v1490_v6  ;;  %v2081_v49 = vadd.f32 1.0, %v2655_v21  ;;  %v2082_v48 = vadd.f32 1.0, %v2657_v54  ;;  %v4179_v47 = vld [vmem:[#allocation2 + $0xb7] sm:$0xff]  ;;  %v4181_v6 = vld [vmem:[#allocation2 + $0xbf] sm:$0xff]  ;;  %v2706_v2 = vld [vmem:[#allocation2 + $0x8f] sm:$0xff] }
 0x1bd   : > { %767 = vst.msk [vmem:[#allocation3 + $0xb8] sm:$0xff] %vm451_vm2, %v711_v24  ;;  %v4172_v26 = vmul.f32 %v3932_v32, %v4139_v45  ;;  %2546 = vmatmul.msk.bf16.gmra.mxu0 %vm451_vm2, %v2166_v40  ;;  %v1807_v14 = vadd.f32 %v1783_v22, %v1701_v37  ;;  %v1889_v60 = vmul.f32 %v4123_v53, %v4153_v31  ;;  %v2075_v35 = vadd.f32 1.0, %v2659_v30  ;;  %v4186_v21 = vld [vmem:[%s4900_s4] ss:$0 sm:$0xff] }
 0x1be   : > { %5141 = vst [vmem:[#allocation56_spill] sm:$0xff] %v4153_v31  ;;  %v2076_v44 = vadd.f32 1.0, %v2661_v9  ;;  %v1702_v24 = vadd.f32 %v1678_v4, %v1596_v38  ;;  %v885_v8 = vmul.f32 %v4186_v21, %v4139_v45  ;;  %v891_v54 = vmul.f32 %v4186_v21, %v4179_v47  ;;  %v4195_v9 = vld [vmem:[%s4900_s4 + $0x1] ss:$0 sm:$0xff] }
 0x1bf   : > { %5143 = vst [vmem:[#allocation7_spill] sm:$0xff] %v4168_v55  ;;  %v1033_v30 = vmul.f32 %v4195_v9, %v4174_v63  ;;  %v1784_v37 = vmul.f32 %v4114_v50, %v4168_v55  ;;  %v886_v40 = vmul.f32 %v2706_v2, %v4186_v21  ;;  %v892_v4 = vmul.f32 %v4186_v21, %v4181_v6  ;;  %v4204_v22 = vld [vmem:[#allocation2 + $0xb8] sm:$0xff]  ;;  %v714_v39 = vpop.f32.mrf.mxu3 }
 0x1c0   : > { %5144 = vst [vmem:[#allocation9_spill] sm:$0xff] %v4174_v63  ;;  %v1034_v38 = vmul.f32 %v4195_v9, %v3879_v33  ;;  %v2105_v45 = vmul.f32 0.5, %v2081_v49  ;;  %v2106_v41 = vmul.f32 0.5, %v2082_v48  ;;  %v1039_v7 = vmul.f32 %v4195_v9, %v4204_v22 }
 0x1c1   : > { %5145 = vst [vmem:[#allocation40_spill] sm:$0xff] %v4186_v21  ;;  %v1040_v55 = vmul.f32 %v4195_v9, %v4206_v57  ;;  %v1913_v62 = vadd.f32 %v1889_v60, %v1807_v14  ;;  %v2099_v21 = vmul.f32 0.5, %v2075_v35  ;;  %v2100_v59 = vmul.f32 0.5, %v2076_v44  ;;  %v4228_v44 = vld [vmem:[#allocation2 + $0x89] sm:$0xff] }
 0x1c2   : > { %5146 = vst [vmem:[#allocation6_spill] sm:$0xff] %v4195_v9  ;;  %v1621_v52 = vmul.f32 %v2706_v2, %v3932_v32  ;;  %v1808_v49 = vadd.f32 %v1784_v37, %v1702_v24  ;;  %v1063_v1 = vadd.f32 %v1039_v7, %v891_v54  ;;  %v1057_v10 = vadd.f32 %v1033_v30, %v885_v8  ;;  %v4232_v24 = vld [vmem:[#allocation2 + $0xb9] sm:$0xff]  ;;  %v4242_v54 = vld [vmem:[#allocation2 + $0xc1] sm:$0xff] }
 0x1c3   : > { %5147 = vst [vmem:[#allocation63_spill] sm:$0xff] %v4206_v57  ;;  %v1058_v14 = vadd.f32 %v1034_v38, %v886_v40  ;;  %v1064_v60 = vadd.f32 %v1040_v55, %v892_v4  ;;  %v2129_v2 = vmul.f32 %v2105_v45, %v3978_v20  ;;  %v4237_v37 = vld [vmem:[%s4900_s4 + $0x2] ss:$0 sm:$0xff]  ;;  %v2124_v55 = vmul.f32 %v2100_v59, %v3732_v58  ;;  %v4252_v38 = vld [vmem:[#allocation2 + $0x9f] sm:$0xff] }
 0x1c4   : > { %v4214_v0 = vld [vmem:[#allocation3 + $0xb1] sm:$0xff]  ;;  %768 = vst.msk [vmem:[#allocation3 + $0xc0] sm:$0xff] %vm451_vm2, %v714_v39  ;;  %v2130_v39 = vmul.f32 %v2106_v41, %v3980_v5  ;;  %v1181_v7 = vmul.f32 %v4237_v37, %v4228_v44  ;;  %v1182_v20 = vmul.f32 %v4237_v37, %v3887_v25  ;;  %v1187_v5 = vmul.f32 %v4237_v37, %v4232_v24 }
 0x1c5   : > { %5148 = vst [vmem:[#allocation15_spill] sm:$0xff] %v4214_v0  ;;  %v4216_v13 = vld [vmem:[#allocation3 + $0xb7] sm:$0xff]  ;;  %v1890_v48 = vmul.f32 %v4123_v53, %v4214_v0  ;;  %v2153_v45 = vmul.f32 %v2129_v2, %v1913_v62  ;;  %v2123_v30 = vmul.f32 %v2099_v21, %v3588_v56  ;;  %v1188_v40 = vmul.f32 %v4237_v37, %v4242_v54 }
 0x1c6   : > { %v4218_v50 = vld [vmem:[#allocation3 + $0xb8] sm:$0xff]  ;;  %v965_v31 = vmul.f32 %v4011_v3, %v4216_v13  ;;  %5149 = vst [vmem:[#allocation12_spill] sm:$0xff] %v4228_v44  ;;  %v2148_v4 = vmul.f32 %v2124_v55, %v4161_v12  ;;  %v1205_v58 = vadd.f32 %v1181_v7, %v1057_v10  ;;  %v1206_v59 = vadd.f32 %v1182_v20, %v1058_v14  ;;  %v5153_v14 = vld [vmem:[#allocation34_spill] sm:$0xff]  ;;  %v4281_v7 = vld [vmem:[#allocation3 + $0x88] sm:$0xff] }
 0x1c7   : > { %v1113_v35 = vmul.f32 %v4018_v11, %v4218_v50  ;;  %v1914_v57 = vadd.f32 %v1890_v48, %v1808_v49  ;;  %5150 = vst [vmem:[#allocation16_spill] sm:$0xff] %v4252_v38  ;;  %v4256_v48 = vld [vmem:[#allocation3 + $0x87] sm:$0xff]  ;;  %v1308_v62 = vmul.f32 %v4052_v51, %v4252_v38  ;;  %v1726_v56 = vmul.f32 %v3947_v19, %v4174_v63  ;;  %v716_v21 = vpop.f32.mrf.mxu3 }
 0x1c8   : > { %v2147_v12 = vmul.f32 %v2123_v30, %v4157_v61  ;;  %v1309_v2 = vmul.f32 %v4052_v51, %v5153_v14  ;;  %769 = vst.msk [vmem:[#allocation3 + $0xc8] sm:$0xff] %vm451_vm2, %v716_v21  ;;  %v4292_v30 = vld [vmem:[#allocation2 + $0xa0] sm:$0xff]  ;;  %v4317_v14 = vmul.f32 %v3958_v27, %v4228_v44  ;;  %v4370_v0 = vmul.f32 %v4052_v51, %v4179_v47 }
 0x1c9   : > { %v1137_v8 = vadd.f32 %v1113_v35, %v965_v31  ;;  %v2154_v41 = vmul.f32 %v2130_v39, %v1914_v57  ;;  %v4254_v31 = vadd.f32 %v1187_v5, %v1063_v1  ;;  %v4258_v35 = vadd.f32 %v1188_v40, %v1064_v60  ;;  %5154 = vst [vmem:[#allocation20_spill] sm:$0xff] %v4292_v30 }
 0x1ca   : > { %v1644_v60 = vadd.f32 %v4172_v26, %v4164_v23  ;;  %v1727_v39 = vmul.f32 %v3947_v19, %v3879_v33  ;;  %v2167_v5 = vpack.c.bf16 %v2148_v4, %v2147_v12  ;;  %v1332_v23 = vadd.f32 %v1308_v62, %v1205_v58  ;;  %v5156_v58 = vld [vmem:[#allocation37_spill] sm:$0xff] }
 0x1cb   : > { %5151 = vst [vmem:[#allocation18_spill] sm:$0xff] %v4254_v31  ;;  %v2170_v49 = vpack.c.bf16 %v2154_v41, %v2153_v45  ;;  %v4265_v57 = vld [vmem:[#allocation3 + $0xbf] sm:$0xff]  ;;  %v1333_v26 = vadd.f32 %v1309_v2, %v1206_v59  ;;  %v1645_v33 = vadd.f32 %v1621_v52, %v4166_v28  ;;  %v959_v45 = vmul.f32 %v4011_v3, %v4256_v48 }
 0x1cc   : > { %5152 = vst [vmem:[#allocation19_spill] sm:$0xff] %v4258_v35  ;;  %v4267_v10 = vld [vmem:[#allocation3 + $0xc0] sm:$0xff]  ;;  %v966_v61 = vmul.f32 %v4011_v3, %v4265_v57  ;;  %v960_v41 = vmul.f32 %v4011_v3, %v4006_v29  ;;  %v1107_v4 = vmul.f32 %v4018_v11, %v4281_v7  ;;  %v1108_v52 = vmul.f32 %v4018_v11, %v4057_v16 }
 0x1cd   : > { %v4269_v1 = vld [vmem:[#allocation3 + $0xb9] sm:$0xff]  ;;  %2550 = vmatmul.msk.bf16.vlgmr.msra.gmra.mxu1 %vm451_vm2, %v2170_v49  ;;  %v1114_v55 = vmul.f32 %v4018_v11, %v4267_v10  ;;  %v4294_v49 = vld [vmem:[#allocation3 + $0x89] sm:$0xff]  ;;  %2547 = vmatmul.msk.bf16.gmra.mxu0 %vm451_vm2, %v2167_v5  ;;  %v1414_v28 = vmul.f32 %v3907_v43, %v4292_v30  ;;  %v1415_v59 = vmul.f32 %v3907_v43, %v5156_v58 }
 0x1ce   : > { %v1261_v20 = vmul.f32 %v4064_v17, %v4269_v1  ;;  %v4309_v62 = vmul.f32 %v4099_v36, %v3820_v46  ;;  %v4313_v12 = vadd.f32 %v1726_v56, %v1644_v60  ;;  %v4321_v2 = vmul.f32 %v3958_v27, %v3887_v25  ;;  %v4335_v60 = vld [vmem:[#allocation3 + $0xa1] sm:$0xff] }
 0x1cf   : > { %v1138_v40 = vadd.f32 %v1114_v55, %v966_v61  ;;  %v4323_v61 = vld [vmem:[#allocation3 + $0x9f] sm:$0xff]  ;;  %v1255_v46 = vmul.f32 %v4064_v17, %v4294_v49  ;;  %v1439_v5 = vadd.f32 %v1415_v59, %v1333_v26  ;;  %v4329_v58 = vadd.f32 %v1727_v39, %v1645_v33  ;;  %5159 = vst [vmem:[#allocation14_spill] sm:$0xff] %v4335_v60  ;;  %v719_v44 = vpop.f32.mrf.mxu3 }
 0x1d0   : > { %v4296_v21 = vadd.f32 %v1261_v20, %v1137_v8  ;;  %v4311_v8 = vld [vmem:[#allocation3 + $0xa0] sm:$0xff]  ;;  %v1438_v20 = vadd.f32 %v1414_v28, %v1332_v23  ;;  %v4333_v56 = vmul.f32 %v4195_v9, %v4292_v30  ;;  %v1256_v25 = vmul.f32 %v4064_v17, %v4059_v42  ;;  %770 = vst.msk [vmem:[#allocation3 + $0xd0] sm:$0xff] %vm451_vm2, %v719_v44 }
 0x1d1   : > { %5157 = vst [vmem:[#allocation42_spill] sm:$0xff] %v4311_v8  ;;  %v4325_v55 = vld [vmem:[#allocation2 + $0xa1] sm:$0xff]  ;;  %v4345_v39 = vmul.f32 %v4018_v11, %v4311_v8  ;;  %v1131_v23 = vadd.f32 %v1107_v4, %v959_v45  ;;  %v1132_v26 = vadd.f32 %v1108_v52, %v960_v41  ;;  %v4360_v45 = vmul.f32 %v4064_v17, %v4335_v60 }
 0x1d2   : > { %5155 = vst [vmem:[#allocation27_spill] sm:$0xff] %v4296_v21  ;;  %v1520_v21 = vmul.f32 %v3916_v18, %v4325_v55  ;;  %v5160_v35 = vld [vmem:[#allocation24_spill] sm:$0xff]  ;;  %v4349_v33 = vmul.f32 %v4237_v37, %v4325_v55  ;;  %v1362_v4 = vmul.f32 %v4084_v15, %v4079_v34  ;;  %v1626_v52 = vmul.f32 %v3932_v32, %v4179_v47 }
 0x1d3   : > { %5158 = vst [vmem:[#allocation13_spill] sm:$0xff] %v4325_v55  ;;  %v1521_v31 = vmul.f32 %v3916_v18, %v5160_v35  ;;  %v4351_v28 = vld [vmem:[#allocation3 + $0xc1] sm:$0xff]  ;;  %v1361_v35 = vmul.f32 %v4084_v15, %v4323_v61  ;;  %v1279_v41 = vadd.f32 %v1255_v46, %v1131_v23  ;;  %v1280_v44 = vadd.f32 %v1256_v25, %v1132_v26 }
 0x1d4   : > { %v1262_v59 = vmul.f32 %v4064_v17, %v4351_v28  ;;  %v1544_v30 = vadd.f32 %v1520_v21, %v1438_v20  ;;  %v4376_v21 = vmul.f32 %v4052_v51, %v4181_v6  ;;  %v1732_v20 = vmul.f32 %v3947_v19, %v4204_v22 }
 0x1d5   : > { %v1545_v63 = vadd.f32 %v1521_v31, %v1439_v5  ;;  %v1627_v31 = vmul.f32 %v3932_v32, %v4181_v6  ;;  %v5163_v5 = vld [vmem:[#allocation63_spill] sm:$0xff]  ;;  %v4388_v47 = vmul.f32 %v4084_v15, %v4265_v57  ;;  %v1385_v23 = vadd.f32 %v1361_v35, %v1279_v41 }
 0x1d6   : > { %v4366_v55 = vadd.f32 %v1262_v59, %v1138_v40  ;;  %5162 = vst [vmem:[#allocation36_spill] sm:$0xff] %v4376_v21  ;;  %v1650_v46 = vadd.f32 %v1626_v52, %v1544_v30  ;;  %v1733_v25 = vmul.f32 %v3947_v19, %v5163_v5  ;;  %v4384_v40 = vmul.f32 %v4084_v15, %v4216_v13  ;;  %v5166_v21 = vld [vmem:[#allocation26_spill] sm:$0xff] }
 0x1d7   : > { %5165 = vst [vmem:[#allocation59_spill] sm:$0xff] %v4388_v47  ;;  %v1651_v26 = vadd.f32 %v1627_v31, %v1545_v63  ;;  %v1386_v59 = vadd.f32 %v1362_v4, %v1280_v44  ;;  %v1838_v30 = vmul.f32 %v3958_v27, %v4232_v24  ;;  %v1839_v52 = vmul.f32 %v3958_v27, %v4242_v54  ;;  %v721_v63 = vpop.f32.mrf.mxu3  ;;  %v5168_v4 = vld [vmem:[#allocation55_spill] sm:$0xff]  ;;  %v5169_v31 = vld [vmem:[#allocation56_spill] sm:$0xff] }
 0x1d8   : > { %5161 = vst [vmem:[#allocation33_spill] sm:$0xff] %v4366_v55  ;;  %v1756_v6 = vadd.f32 %v1732_v20, %v1650_v46  ;;  %v4396_v55 = vmul.f32 %v3907_v43, %v4204_v22  ;;  %v1467_v34 = vmul.f32 %v5166_v21, %v4311_v8  ;;  %v1573_v47 = vmul.f32 %v4099_v36, %v4335_v60 }
 0x1d9   : > { %5164 = vst [vmem:[#allocation8_spill] sm:$0xff] %v4384_v40  ;;  %v1757_v35 = vadd.f32 %v1733_v25, %v1651_v26  ;;  %v4404_v41 = vmul.f32 %v3907_v43, %v5163_v5  ;;  %v1468_v44 = vmul.f32 %v5166_v21, %v5168_v4  ;;  %v1574_v46 = vmul.f32 %v4099_v36, %v5169_v31  ;;  %v5171_v26 = vld [vmem:[#allocation52_spill] sm:$0xff] }
 0x1da   : > { %v4410_v22 = vadd.f32 %v1838_v30, %v1756_v6  ;;  %771 = vst.msk [vmem:[#allocation3 + $0xd8] sm:$0xff] %vm451_vm2, %v721_v63  ;;  %v4415_v20 = vmul.f32 %v5166_v21, %v4218_v50  ;;  %v1491_v25 = vadd.f32 %v1467_v34, %v1385_v23  ;;  %v1679_v60 = vmul.f32 %v5171_v26, %v4216_v13  ;;  %v829_v63 = vpop.f32.mrf.mxu1 }
 0x1db   : > { %5167 = vst [vmem:[#allocation4_spill] sm:$0xff] %v4404_v41  ;;  %v4419_v5 = vadd.f32 %v1839_v52, %v1757_v35  ;;  %v4423_v8 = vmul.f32 %v5166_v21, %v4267_v10  ;;  %v1492_v41 = vadd.f32 %v1468_v44, %v1386_v59  ;;  %v1680_v6 = vmul.f32 %v5171_v26, %v4265_v57  ;;  %v5174_v57 = vld [vmem:[#allocation46_spill] sm:$0xff] }
 0x1dc   : > { %5170 = vst [vmem:[#allocation39_spill] sm:$0xff] %v4415_v20  ;;  %v1939_v30 = vmul.f32 %v4410_v22, %v4410_v22  ;;  %v4431_v34 = vmul.f32 %v3916_v18, %v4232_v24  ;;  %v4435_v13 = vmul.f32 %v3916_v18, %v4242_v54  ;;  %v1597_v23 = vadd.f32 %v1573_v47, %v1491_v25  ;;  %v5181_v20 = vld [vmem:[#allocation61_spill] sm:$0xff] }
 0x1dd   : > { %5172 = vst [vmem:[#allocation5_spill] sm:$0xff] %v4423_v8  ;;  %v1940_v52 = vmul.f32 %v4419_v5, %v4419_v5  ;;  %v1598_v59 = vadd.f32 %v1574_v46, %v1492_v41  ;;  %v1785_v35 = vmul.f32 %v5174_v57, %v4218_v50  ;;  %v4445_v24 = vadd.f32 %v4317_v14, %v4313_v12  ;;  %v5177_v50 = vld [vmem:[#allocation54_spill] sm:$0xff] }
 0x1de   : > { %5173 = vst [vmem:[#allocation53_spill] sm:$0xff] %v4435_v13  ;;  %v1963_v44 = vmul.f32 %v1939_v30, %v4410_v22  ;;  %v1703_v8 = vadd.f32 %v1679_v60, %v1597_v23  ;;  %v5175_v13 = vld [vmem:[#allocation43_spill] sm:$0xff]  ;;  %v4452_v25 = vadd.f32 %v4321_v2, %v4329_v58  ;;  %v1786_v12 = vmul.f32 %v5174_v57, %v4267_v10  ;;  %v5180_v10 = vld [vmem:[#allocation21_spill] sm:$0xff] }
 0x1df   : > { %838 = vst.msk [vmem:[#allocation3 + $0xf0] sm:$0xff] %vm451_vm2, %v829_v63  ;;  %v1964_v54 = vmul.f32 %v1940_v52, %v4419_v5  ;;  %v1356_v47 = vmul.f32 %v4084_v15, %v5175_v13  ;;  %v1704_v41 = vadd.f32 %v1680_v6, %v1598_v59  ;;  %v5176_v63 = vld [vmem:[#allocation17_spill] sm:$0xff]  ;;  %v1933_v30 = vmul.f32 %v4445_v24, %v4445_v24  ;;  %v5178_v13 = vld [vmem:[#allocation40_spill] sm:$0xff] }
 0x1e0   : > { %v1987_v46 = vmul.f32 0.044715, %v1963_v44  ;;  %v1379_v31 = vadd.f32 %v5177_v50, %v5176_v63  ;;  %v1934_v60 = vmul.f32 %v4452_v25, %v4452_v25  ;;  %v888_v23 = vmul.f32 %v5178_v13, %v4252_v38  ;;  %v5179_v6 = vld [vmem:[#allocation41_spill] sm:$0xff]  ;;  %v4473_v50 = vld [vmem:[#allocation2 + $0x97] sm:$0xff] }
 0x1e1   : > { %v1988_v14 = vmul.f32 0.044715, %v1964_v54  ;;  %v1891_v2 = vmul.f32 %v4123_v53, %v4269_v1  ;;  %v1462_v52 = vmul.f32 %v5166_v21, %v5179_v6  ;;  %v1957_v59 = vmul.f32 %v1933_v30, %v4445_v24 }
 0x1e2   : > { %v2011_v58 = vadd.f32 %v1987_v46, %v4410_v22  ;;  %v1380_v54 = vadd.f32 %v1356_v47, %v5180_v10  ;;  %v1958_v63 = vmul.f32 %v1934_v60, %v4452_v25  ;;  %v887_v4 = vmul.f32 %v4473_v50, %v5178_v13  ;;  %v5182_v46 = vld [vmem:[#allocation25_spill] sm:$0xff]  ;;  %v831_v21 = vpop.f32.mrf.mxu1  ;;  %v5185_v13 = vld [vmem:[#allocation10_spill] sm:$0xff] }
 0x1e3   : > { %v2012_v44 = vadd.f32 %v1988_v14, %v4419_v5  ;;  %v1485_v27 = vadd.f32 %v5181_v20, %v1379_v31  ;;  %v1568_v40 = vmul.f32 %v4099_v36, %v5182_v46  ;;  %v1981_v6 = vmul.f32 0.044715, %v1957_v59  ;;  %v5183_v14 = vld [vmem:[#allocation31_spill] sm:$0xff]  ;;  %v5184_v46 = vld [vmem:[#allocation32_spill] sm:$0xff] }
 0x1e4   : > { %v2035_v38 = vmul.f32 0.7978846, %v2011_v58  ;;  %v1982_v19 = vmul.f32 0.044715, %v1958_v63  ;;  %v1035_v47 = vmul.f32 %v4195_v9, %v5183_v14  ;;  %v1060_v60 = vadd.f32 %v4333_v56, %v888_v23 }
 0x1e5   : > { %v2036_v30 = vmul.f32 0.7978846, %v2012_v44  ;;  %v1673_v10 = vmul.f32 %v5171_v26, %v4256_v48  ;;  %v1674_v58 = vmul.f32 %v5171_v26, %v4006_v29  ;;  %v2005_v31 = vadd.f32 %v1981_v6, %v4445_v24 }
 0x1e6   : > { %2662 = vtanh.f32 %v2035_v38  ;;  %v1486_v20 = vadd.f32 %v1462_v52, %v1380_v54  ;;  %v2006_v21 = vadd.f32 %v1982_v19, %v4452_v25  ;;  %v1059_v59 = vadd.f32 %v1035_v47, %v887_v4 }
 0x1e7   : > { %2664 = vtanh.f32 %v2036_v30  ;;  %v1591_v44 = vadd.f32 %v4309_v62, %v1485_v27  ;;  %v2029_v63 = vmul.f32 0.7978846, %v2005_v31  ;;  %v1183_v56 = vmul.f32 %v4237_v37, %v5184_v46 }
 0x1e8   : > { %v1208_v38 = vadd.f32 %v4349_v33, %v1060_v60  ;;  %v1809_v23 = vadd.f32 %v1785_v35, %v1703_v8  ;;  %v1592_v14 = vadd.f32 %v1568_v40, %v1486_v20  ;;  %v2030_v9 = vmul.f32 0.7978846, %v2006_v21 }
 0x1e9   : > { %v1310_v29 = vmul.f32 %v4052_v51, %v5185_v13  ;;  %v1892_v52 = vmul.f32 %v4123_v53, %v4351_v28  ;;  %v1697_v54 = vadd.f32 %v1673_v10, %v1591_v44  ;;  %2666 = vtanh.f32 %v2029_v63  ;;  %v5187_v44 = vld [vmem:[#allocation38_spill] sm:$0xff] }
 0x1ea   : > { %v1207_v19 = vadd.f32 %v1183_v56, %v1059_v59  ;;  %v1810_v4 = vadd.f32 %v1786_v12, %v1704_v41  ;;  %v1698_v27 = vadd.f32 %v1674_v58, %v1592_v14  ;;  %2668 = vtanh.f32 %v2030_v9  ;;  %v5186_v9 = vld [vmem:[#allocation11_spill] sm:$0xff] }
 0x1eb   : > { %v1335_v62 = vadd.f32 %v4370_v0, %v1208_v38  ;;  %v1915_v30 = vadd.f32 %v1891_v2, %v1809_v23  ;;  %v1779_v8 = vmul.f32 %v5174_v57, %v4281_v7  ;;  %v1780_v33 = vmul.f32 %v5174_v57, %v4057_v16  ;;  %v5189_v56 = vld [vmem:[#allocation47_spill] sm:$0xff] }
 0x1ec   : > { %v2663_v6 = vpop.eup %2662  ;;  %v1334_v40 = vadd.f32 %v1310_v29, %v1207_v19  ;;  %v1885_v47 = vmul.f32 %v4123_v53, %v4294_v49  ;;  %v1886_v41 = vmul.f32 %v4123_v53, %v4059_v42  ;;  %v1416_v0 = vmul.f32 %v3907_v43, %v5186_v9  ;;  %v5188_v42 = vld [vmem:[#allocation44_spill] sm:$0xff] }
 0x1ed   : > { %v2665_v35 = vpop.eup %2664  ;;  %v2083_v13 = vadd.f32 1.0, %v2663_v6  ;;  %v1916_v12 = vadd.f32 %v1892_v52, %v1810_v4  ;;  %v1803_v60 = vadd.f32 %v1779_v8, %v1697_v54  ;;  %v962_v10 = vmul.f32 %v4011_v3, %v4323_v61  ;;  %v1287_v6 = vld [vmem:[#allocation2 + $0xc7] sm:$0xff]  ;;  %v1288_v8 = vld [vmem:[#allocation2 + $0xcf] sm:$0xff] }
 0x1ee   : > { %v2084_v2 = vadd.f32 1.0, %v2665_v35  ;;  %v1804_v16 = vadd.f32 %v1780_v33, %v1698_v27  ;;  %v1440_v31 = vadd.f32 %v1416_v0, %v1334_v40  ;;  %v1441_v20 = vadd.f32 %v4396_v55, %v1335_v62  ;;  %v5190_v27 = vld [vmem:[#allocation45_spill] sm:$0xff] }
 0x1ef   : > { %v2107_v58 = vmul.f32 0.5, %v2083_v13  ;;  %v2667_v21 = vpop.eup %2666  ;;  %v961_v63 = vmul.f32 %v4011_v3, %v5187_v44  ;;  %v1109_v46 = vmul.f32 %v4018_v11, %v5188_v42  ;;  %v1522_v38 = vmul.f32 %v3916_v18, %v5189_v56  ;;  %v1393_v0 = vld [vmem:[#allocation2 + $0xc8] sm:$0xff] }
 0x1f0   : > { %v2108_v59 = vmul.f32 0.5, %v2084_v2  ;;  %v2669_v23 = vpop.eup %2668  ;;  %v4519_v14 = vmul.f32 %v4099_v36, %v4269_v1  ;;  %v1909_v29 = vadd.f32 %v1885_v47, %v1803_v60  ;;  %v1910_v52 = vadd.f32 %v1886_v41, %v1804_v16  ;;  %v1394_v60 = vld [vmem:[#allocation2 + $0xd0] sm:$0xff] }
 0x1f1   : > { %v2077_v54 = vadd.f32 1.0, %v2667_v21  ;;  %v2131_v55 = vmul.f32 %v2107_v58, %v4410_v22  ;;  %v2078_v4 = vadd.f32 1.0, %v2669_v23  ;;  %v1257_v62 = vmul.f32 %v4064_v17, %v5190_v27 }
 0x1f2   : > { %v2132_v19 = vmul.f32 %v2108_v59, %v4419_v5  ;;  %v1134_v40 = vadd.f32 %v4345_v39, %v962_v10  ;;  %v1546_v35 = vadd.f32 %v1522_v38, %v1440_v31  ;;  %v1547_v1 = vadd.f32 %v4431_v34, %v1441_v20  ;;  %v5191_v5 = vld [vmem:[#allocation60_spill] sm:$0xff]  ;;  %v4534_v31 = vld [vmem:[#allocation2 + $0xd1] sm:$0xff] }
 0x1f3   : > { %v2101_v33 = vmul.f32 0.5, %v2077_v54  ;;  %v2155_v13 = vmul.f32 %v2131_v55, %v1915_v30  ;;  %v2102_v41 = vmul.f32 0.5, %v2078_v4  ;;  %v1133_v9 = vadd.f32 %v1109_v46, %v961_v63  ;;  %v1499_v30 = vld [vmem:[#allocation2 + $0xc9] sm:$0xff]  ;;  %v5192_v59 = vld [vmem:[#allocation23_spill] sm:$0xff] }
 0x1f4   : > { %v2156_v47 = vmul.f32 %v2132_v19, %v1916_v12  ;;  %v1363_v2 = vmul.f32 %v4084_v15, %v5191_v5  ;;  %v1628_v58 = vmul.f32 %v3932_v32, %v1287_v6  ;;  %v1629_v16 = vmul.f32 %v3932_v32, %v1288_v8  ;;  %v1340_v38 = vld [vmem:[#allocation3 + $0xc7] sm:$0xff]  ;;  %v5194_v19 = vld [vmem:[#allocation50_spill] sm:$0xff] }
 0x1f5   : > { %v2125_v22 = vmul.f32 %v2101_v33, %v4445_v24  ;;  %v2126_v39 = vmul.f32 %v2102_v41, %v4452_v25  ;;  %v1281_v10 = vadd.f32 %v1257_v62, %v1133_v9  ;;  %v1282_v34 = vadd.f32 %v4360_v45, %v1134_v40  ;;  %v4553_v40 = vld [vmem:[#allocation3 + $0xcf] sm:$0xff] }
 0x1f6   : > { %v2171_v21 = vpack.c.bf16 %v2156_v47, %v2155_v13  ;;  %v1652_v20 = vadd.f32 %v1628_v58, %v1546_v35  ;;  %v1653_v24 = vadd.f32 %v1629_v16, %v1547_v1  ;;  %v1734_v63 = vmul.f32 %v5192_v59, %v1393_v0  ;;  %v5195_v1 = vld [vmem:[#allocation7_spill] sm:$0xff]  ;;  %v5196_v13 = vld [vmem:[#allocation26_spill] sm:$0xff] }
 0x1f7   : > { %v2149_v12 = vmul.f32 %v2125_v22, %v1909_v29  ;;  %v4539_v46 = vmul.f32 %v4099_v36, %v4351_v28  ;;  %v2150_v56 = vmul.f32 %v2126_v39, %v1910_v52  ;;  %v4543_v25 = vmul.f32 %v4052_v51, %v1287_v6  ;;  %v5193_v29 = vld [vmem:[#allocation8_spill] sm:$0xff]  ;;  %v5198_v16 = vld [vmem:[#allocation62_spill] sm:$0xff]  ;;  %v5199_v39 = vld [vmem:[#allocation39_spill] sm:$0xff] }
 0x1f8   : > { %2551 = vmatmul.msk.bf16.gmra.mxu1 %vm451_vm2, %v2171_v21  ;;  %v1735_v45 = vmul.f32 %v5192_v59, %v1394_v60  ;;  %v1387_v23 = vadd.f32 %v1363_v2, %v1281_v10  ;;  %v1388_v54 = vadd.f32 %v5193_v29, %v1282_v34  ;;  %v1758_v55 = vadd.f32 %v1734_v63, %v1652_v20  ;;  %v2709_v2 = vld [vmem:[#allocation2 + $0x7f] sm:$0xff]  ;;  %v5200_v63 = vld [vmem:[#allocation29_spill] sm:$0xff] }
 0x1f9   : > { %v1840_v4 = vmul.f32 %v5194_v19, %v1499_v30  ;;  %v2168_v62 = vpack.c.bf16 %v2150_v56, %v2149_v12  ;;  %v4549_v33 = vmul.f32 %v4052_v51, %v1288_v8  ;;  %v1841_v52 = vmul.f32 %v5194_v19, %v4534_v31  ;;  %v5197_v8 = vld [vmem:[#allocation15_spill] sm:$0xff] }
 0x1fa   : > { %v1759_v28 = vadd.f32 %v1735_v45, %v1653_v24  ;;  %v4556_v6 = vmul.f32 %v4084_v15, %v1340_v38  ;;  %v4559_v35 = vmul.f32 %v3907_v43, %v1393_v0  ;;  %v1469_v47 = vmul.f32 %v5196_v13, %v5195_v1  ;;  %v5201_v45 = vld [vmem:[#allocation30_spill] sm:$0xff] }
 0x1fb   : > { %v4563_v41 = vadd.f32 %v1840_v4, %v1758_v55  ;;  %2548 = vmatmul.msk.bf16.gmra.mxu0 %vm451_vm2, %v2168_v62  ;;  %v1575_v9 = vmul.f32 %v4099_v36, %v5197_v8  ;;  %v1304_v58 = vmul.f32 %v2709_v2, %v4052_v51  ;;  %v1305_v21 = vmul.f32 %v4052_v51, %v5198_v16  ;;  %v5202_v55 = vld [vmem:[#allocation9_spill] sm:$0xff] }
 0x1fc   : > { %v4568_v22 = vadd.f32 %v1841_v52, %v1759_v28  ;;  %v1493_v0 = vadd.f32 %v1469_v47, %v1387_v23  ;;  %v1494_v10 = vadd.f32 %v5199_v39, %v1388_v54  ;;  %v1681_v34 = vmul.f32 %v5171_v26, %v1340_v38  ;;  %v2710_v54 = vld [vmem:[#allocation2 + $0x80] sm:$0xff] }
 0x1fd   : > { %v1941_v12 = vmul.f32 %v4563_v41, %v4563_v41  ;;  %v1682_v20 = vmul.f32 %v5171_v26, %v4553_v40  ;;  %v1328_v56 = vadd.f32 %v1304_v58, %v5200_v63  ;;  %v1329_v29 = vadd.f32 %v1305_v21, %v5201_v45  ;;  %v2711_v47 = vld [vmem:[#allocation2 + $0x81] sm:$0xff]  ;;  %v4597_v63 = vld [vmem:[#allocation3 + $0xd0] sm:$0xff] }
 0x1fe   : > { %v1942_v24 = vmul.f32 %v4568_v22, %v4568_v22  ;;  %v4584_v51 = vmul.f32 %v3907_v43, %v1394_v60  ;;  %v1410_v38 = vmul.f32 %v2710_v54, %v3907_v43  ;;  %v1411_v4 = vmul.f32 %v3907_v43, %v5202_v55  ;;  %v5203_v21 = vld [vmem:[#allocation12_spill] sm:$0xff]  ;;  %v4607_v54 = vld [vmem:[#allocation3 + $0xd1] sm:$0xff] }
 0x1ff   : > { %v1965_v23 = vmul.f32 %v1941_v12, %v4563_v41  ;;  %v1599_v62 = vadd.f32 %v1575_v9, %v1493_v0  ;;  %v1600_v28 = vadd.f32 %v4519_v14, %v1494_v10  ;;  %v1516_v2 = vmul.f32 %v2711_v47, %v3916_v18  ;;  %v4595_v12 = vld [vmem:[#allocation3 + $0xc8] sm:$0xff]  ;;  %v5204_v45 = vld [vmem:[#allocation48_spill] sm:$0xff] }
 0x200   : > { %v1966_v52 = vmul.f32 %v1942_v24, %v4568_v22  ;;  %v1434_v16 = vadd.f32 %v1410_v38, %v1328_v56  ;;  %v1435_v60 = vadd.f32 %v1411_v4, %v1329_v29  ;;  %v1517_v39 = vmul.f32 %v3916_v18, %v5203_v21  ;;  %v4602_v9 = vld [vmem:[#allocation3 + $0xc9] sm:$0xff] }
 0x201   : > { %v1989_v58 = vmul.f32 0.044715, %v1965_v23  ;;  %v4600_v43 = vmul.f32 %v3916_v18, %v1499_v30  ;;  %v1705_v14 = vadd.f32 %v1681_v34, %v1599_v62  ;;  %v1706_v0 = vadd.f32 %v1682_v20, %v1600_v28  ;;  %v5205_v34 = vld [vmem:[#allocation16_spill] sm:$0xff] }
 0x202   : > { %v1990_v10 = vmul.f32 0.044715, %v1966_v52  ;;  %v1357_v56 = vmul.f32 %v4084_v15, %v5204_v45  ;;  %v1540_v29 = vadd.f32 %v1516_v2, %v1434_v16  ;;  %v1541_v23 = vadd.f32 %v1517_v39, %v1435_v60  ;;  %v5207_v60 = vld [vmem:[#allocation28_spill] sm:$0xff]  ;;  %v5208_v39 = vld [vmem:[#allocation22_spill] sm:$0xff] }
 0x203   : > { %v2013_v24 = vadd.f32 %v1989_v58, %v4563_v41  ;;  %v1358_v18 = vmul.f32 %v4084_v15, %v4256_v48  ;;  %v1622_v30 = vmul.f32 %v4473_v50, %v3932_v32  ;;  %v1623_v20 = vmul.f32 %v3932_v32, %v5205_v34  ;;  %v2712_v15 = vld [vmem:[#allocation2 + $0x98] sm:$0xff]  ;;  %v5206_v58 = vld [vmem:[#allocation20_spill] sm:$0xff] }
 0x204   : > { %v2014_v38 = vadd.f32 %v1990_v10, %v4568_v22  ;;  %v1787_v55 = vmul.f32 %v5174_v57, %v4595_v12  ;;  %v1788_v4 = vmul.f32 %v5174_v57, %v4597_v63  ;;  %v1893_v62 = vmul.f32 %v4123_v53, %v4602_v9 }
 0x205   : > { %v2037_v28 = vmul.f32 0.7978846, %v2013_v24  ;;  %v1646_v47 = vadd.f32 %v1622_v30, %v1540_v29  ;;  %v1647_v2 = vadd.f32 %v1623_v20, %v1541_v23  ;;  %v1728_v48 = vmul.f32 %v2712_v15, %v5192_v59  ;;  %v2713_v23 = vld [vmem:[#allocation2 + $0x99] sm:$0xff]  ;;  %v5209_v30 = vld [vmem:[#allocation13_spill] sm:$0xff] }
 0x206   : > { %v2038_v52 = vmul.f32 0.7978846, %v2014_v38  ;;  %v1811_v50 = vadd.f32 %v1787_v55, %v1705_v14  ;;  %v1894_v32 = vmul.f32 %v4123_v53, %v4607_v54  ;;  %v1729_v16 = vmul.f32 %v5192_v59, %v5206_v58  ;;  %v5210_v20 = vld [vmem:[#allocation35_spill] sm:$0xff]  ;;  %v5213_v58 = vld [vmem:[#allocation6_spill] sm:$0xff] }
 0x207   : > { %2670 = vtanh.f32 %v2037_v28  ;;  %v1381_v21 = vadd.f32 %v1357_v56, %v5207_v60  ;;  %v1382_v10 = vadd.f32 %v1358_v18, %v5208_v39  ;;  %v1752_v24 = vadd.f32 %v1728_v48, %v1646_v47  ;;  %v2714_v28 = vld [vmem:[#allocation2 + $0xa7] sm:$0xff] }
 0x208   : > { %2672 = vtanh.f32 %v2038_v52  ;;  %v1812_v45 = vadd.f32 %v1788_v4, %v1706_v0  ;;  %v1753_v29 = vadd.f32 %v1729_v16, %v1647_v2  ;;  %v1834_v38 = vmul.f32 %v2713_v23, %v5194_v19  ;;  %v5211_v56 = vld [vmem:[#allocation40_spill] sm:$0xff]  ;;  %v2715_v4 = vld [vmem:[#allocation2 + $0xaf] sm:$0xff]  ;;  %v5215_v23 = vld [vmem:[#allocation55_spill] sm:$0xff] }
 0x209   : > { %v1835_v14 = vmul.f32 %v5194_v19, %v5209_v30  ;;  %v1917_v34 = vadd.f32 %v1893_v62, %v1811_v50  ;;  %v1463_v55 = vmul.f32 %v5196_v13, %v5210_v20  ;;  %v1464_v59 = vmul.f32 %v5196_v13, %v4281_v7  ;;  %v5212_v62 = vld [vmem:[#allocation51_spill] sm:$0xff]  ;;  %v2716_v50 = vld [vmem:[#allocation2 + $0xa8] sm:$0xff] }
 0x20a   : > { %v889_v52 = vmul.f32 %v2714_v28, %v5211_v56  ;;  %v1918_v18 = vadd.f32 %v1894_v32, %v1812_v45  ;;  %v4637_v47 = vadd.f32 %v1834_v38, %v1752_v24  ;;  %v890_v2 = vmul.f32 %v2715_v4, %v5211_v56  ;;  %v5214_v60 = vld [vmem:[#allocation49_spill] sm:$0xff]  ;;  %v2717_v24 = vld [vmem:[#allocation2 + $0xb0] sm:$0xff] }
 0x20b   : > { %v4639_v0 = vadd.f32 %v1835_v14, %v1753_v29  ;;  %v1487_v15 = vadd.f32 %v1463_v55, %v1381_v21  ;;  %v1488_v19 = vadd.f32 %v1464_v59, %v1382_v10  ;;  %v1569_v48 = vmul.f32 %v4099_v36, %v5212_v62  ;;  %v2718_v30 = vld [vmem:[#allocation2 + $0xa9] sm:$0xff] }
 0x20c   : > { %v1037_v16 = vmul.f32 %v2716_v50, %v5213_v58  ;;  %v1935_v13 = vmul.f32 %v4637_v47, %v4637_v47  ;;  %v963_v39 = vmul.f32 %v4011_v3, %v5214_v60  ;;  %v1038_v21 = vmul.f32 %v2717_v24, %v5213_v58 }
 0x20d   : > { %v2671_v7 = vpop.eup %2670  ;;  %v1936_v32 = vmul.f32 %v4639_v0, %v4639_v0  ;;  %v1111_v38 = vmul.f32 %v4018_v11, %v5215_v23  ;;  %v1185_v14 = vmul.f32 %v2718_v30, %v4237_v37  ;;  %v1570_v3 = vmul.f32 %v4099_v36, %v4294_v49  ;;  %v5219_v30 = vld [vmem:[#allocation4_spill] sm:$0xff] }
 0x20e   : > { %v2673_v10 = vpop.eup %2672  ;;  %v2085_v45 = vadd.f32 1.0, %v2671_v7  ;;  %v1061_v29 = vadd.f32 %v1037_v16, %v889_v52  ;;  %v1959_v55 = vmul.f32 %v1935_v13, %v4637_v47  ;;  %v1062_v28 = vadd.f32 %v1038_v21, %v890_v2  ;;  %v2719_v52 = vld [vmem:[#allocation2 + $0xb1] sm:$0xff] }
 0x20f   : > { %v2086_v20 = vadd.f32 1.0, %v2673_v10  ;;  %v1960_v59 = vmul.f32 %v1936_v32, %v4639_v0  ;;  %v1675_v4 = vmul.f32 %v5171_v26, %v5187_v44  ;;  %v1186_v62 = vmul.f32 %v2719_v52, %v4237_v37  ;;  %v5216_v32 = vld [vmem:[#allocation56_spill] sm:$0xff] }
 0x210   : > { %v2109_v56 = vmul.f32 0.5, %v2085_v45  ;;  %v1983_v50 = vmul.f32 0.044715, %v1959_v55  ;;  %v1209_v16 = vadd.f32 %v1185_v14, %v1061_v29  ;;  %v1135_v13 = vadd.f32 %v1111_v38, %v963_v39  ;;  %v5217_v45 = vld [vmem:[#allocation36_spill] sm:$0xff] }
 0x211   : > { %v2110_v11 = vmul.f32 0.5, %v2086_v20  ;;  %v1984_v58 = vmul.f32 0.044715, %v1960_v59  ;;  %v1210_v60 = vadd.f32 %v1186_v62, %v1062_v28  ;;  %v1259_v2 = vmul.f32 %v4064_v17, %v5216_v32  ;;  %v4675_v17 = vld [vmem:[%s4900_s4 + $0x5] ss:$0 sm:$0xff]  ;;  %v1605_v20 = vld [vmem:[#allocation2 + $0xdf] sm:$0xff] }
 0x212   : > { %v2133_v7 = vmul.f32 %v2109_v56, %v4563_v41  ;;  %v1593_v36 = vadd.f32 %v1569_v48, %v1487_v15  ;;  %v2007_v49 = vadd.f32 %v1983_v50, %v4637_v47  ;;  %v1676_v37 = vmul.f32 %v5171_v26, %v4323_v61  ;;  %v5218_v61 = vld [vmem:[#allocation59_spill] sm:$0xff]  ;;  %v5220_v28 = vld [vmem:[#allocation5_spill] sm:$0xff]  ;;  %v1711_v56 = vld [vmem:[#allocation2 + $0xe0] sm:$0xff] }
 0x213   : > { %v2134_v24 = vmul.f32 %v2110_v11, %v4568_v22  ;;  %v2008_v44 = vadd.f32 %v1984_v58, %v4639_v0  ;;  %v1283_v10 = vadd.f32 %v1259_v2, %v1135_v13  ;;  %v1336_v29 = vadd.f32 %v5217_v45, %v1209_v16  ;;  %v5222_v62 = vld [vmem:[#allocation53_spill] sm:$0xff]  ;;  %v5223_v50 = vld [vmem:[#allocation14_spill] sm:$0xff]  ;;  %v1501_v58 = vld [vmem:[#allocation2 + $0xd9] sm:$0xff] }
 0x214   : > { %v2157_v21 = vmul.f32 %v2133_v7, %v1917_v34  ;;  %v2031_v39 = vmul.f32 0.7978846, %v2007_v49  ;;  %v1337_v38 = vadd.f32 %v4543_v25, %v1210_v60  ;;  %v4679_v22 = vmul.f32 %v4675_v17, %v4534_v31  ;;  %v1395_v31 = vld [vmem:[#allocation2 + $0xd8] sm:$0xff]  ;;  %v1817_v13 = vld [vmem:[#allocation2 + $0xe1] sm:$0xff] }
 0x215   : > { %v2158_v41 = vmul.f32 %v2134_v24, %v1918_v18  ;;  %v2032_v23 = vmul.f32 0.7978846, %v2008_v44  ;;  %v1594_v34 = vadd.f32 %v1570_v3, %v1488_v19  ;;  %v1699_v15 = vadd.f32 %v1675_v4, %v1593_v36  ;;  %v1289_v18 = vld [vmem:[#allocation2 + $0xd7] sm:$0xff]  ;;  %v4718_v32 = vld [vmem:[%s4900_s4 + $0x7] ss:$0 sm:$0xff] }
 0x216   : > { %v1389_v26 = vadd.f32 %v5218_v61, %v1283_v10  ;;  %2674 = vtanh.f32 %v2031_v39  ;;  %v1442_v14 = vadd.f32 %v5219_v30, %v1336_v29  ;;  %v1443_v25 = vadd.f32 %v4559_v35, %v1337_v38  ;;  %v5221_v3 = vld [vmem:[#allocation42_spill] sm:$0xff]  ;;  %v4703_v7 = vld [vmem:[%s4900_s4 + $0x6] ss:$0 sm:$0xff]  ;;  %v2726_v10 = vld [vmem:[%s4900_s4 + $0x3] ss:$0 sm:$0xff]  ;;  %v2225_v61 = vpop.f32.mrf.mxu0 }
 0x217   : > { %v2172_v48 = vpack.c.bf16 %v2158_v41, %v2157_v21  ;;  %v1700_v55 = vadd.f32 %v1676_v37, %v1594_v34  ;;  %v1781_v59 = vmul.f32 %v5174_v57, %v5188_v42  ;;  %2676 = vtanh.f32 %v2032_v23  ;;  %v4737_v29 = vld [vmem:[%s4900_s4 + $0x8] ss:$0 sm:$0xff]  ;;  %2285 = vst.msk [vmem:[%s4725_s11] sm:$0xff] %vm396_vm1, %v2225_v61 }
 0x218   : > { %v1495_v19 = vadd.f32 %v5220_v28, %v1389_v26  ;;  %v1782_v4 = vmul.f32 %v5174_v57, %v5221_v3  ;;  %v1887_v52 = vmul.f32 %v4123_v53, %v5190_v27  ;;  %v1548_v35 = vadd.f32 %v5222_v62, %v1442_v14 }
 0x219   : > { %2552 = vmatmul.msk.bf16.gmra.mxu1 %vm451_vm2, %v2172_v48  ;;  %v1549_v11 = vadd.f32 %v4600_v43, %v1443_v25  ;;  %v1888_v42 = vmul.f32 %v4123_v53, %v5223_v50  ;;  %v1630_v57 = vmul.f32 %v4703_v7, %v1289_v18  ;;  %v1631_v27 = vmul.f32 %v4703_v7, %v1605_v20  ;;  %v2722_v43 = vld [vmem:[%s4901_s5] ss:$0 sm:$0xff] }
 0x21a   : > { %v4698_v16 = vadd.f32 %v4539_v46, %v1495_v19  ;;  %v964_v53 = vmul.f32 %v2722_v43, %v5191_v5  ;;  %v2723_v46 = vld [vmem:[%s4901_s5 + $0x1] ss:$0 sm:$0xff]  ;;  %v1736_v2 = vmul.f32 %v4718_v32, %v1395_v31  ;;  %v1737_v24 = vmul.f32 %v4718_v32, %v1711_v56 }
 0x21b   : > { %v1112_v60 = vmul.f32 %v2723_v46, %v5195_v1  ;;  %v1805_v36 = vadd.f32 %v1781_v59, %v1699_v15  ;;  %v1806_v49 = vadd.f32 %v1782_v4, %v1700_v55  ;;  %v1654_v44 = vadd.f32 %v1630_v57, %v1548_v35  ;;  %v2725_v1 = vld [vmem:[%s4901_s5 + $0x2] ss:$0 sm:$0xff]  ;;  %v5224_v59 = vld [vmem:[#allocation18_spill] sm:$0xff]  ;;  %v1606_v57 = vld [vmem:[#allocation2 + $0xe7] sm:$0xff] }
 0x21c   : > { %v1655_v21 = vadd.f32 %v1631_v27, %v1549_v11  ;;  %v2675_v5 = vpop.eup %2674  ;;  %v1260_v37 = vmul.f32 %v2725_v1, %v5197_v8  ;;  %v1315_v45 = vmul.f32 %v2726_v10, %v1289_v18  ;;  %v1842_v41 = vmul.f32 %v4737_v29, %v1501_v58  ;;  %v2728_v18 = vld [vmem:[%s4900_s4 + $0x4] ss:$0 sm:$0xff] }
 0x21d   : > { %v1843_v39 = vmul.f32 %v4737_v29, %v1817_v13  ;;  %v2677_v23 = vpop.eup %2676  ;;  %v1911_v38 = vadd.f32 %v1887_v52, %v1805_v36  ;;  %v2079_v34 = vadd.f32 1.0, %v2675_v5  ;;  %v1760_v15 = vadd.f32 %v1736_v2, %v1654_v44  ;;  %v5225_v4 = vld [vmem:[#allocation19_spill] sm:$0xff]  ;;  %v1712_v36 = vld [vmem:[#allocation2 + $0xe8] sm:$0xff] }
 0x21e   : > { %v1761_v8 = vadd.f32 %v1737_v24, %v1655_v21  ;;  %v1912_v26 = vadd.f32 %v1888_v42, %v1806_v49  ;;  %v2080_v48 = vadd.f32 1.0, %v2677_v23  ;;  %v1136_v30 = vadd.f32 %v1112_v60, %v964_v53  ;;  %v4767_v13 = vld [vmem:[%s4901_s5 + $0x4] ss:$0 sm:$0xff]  ;;  %v1658_v53 = vld [vmem:[#allocation3 + $0xdf] sm:$0xff]  ;;  %v1713_v49 = vld [vmem:[#allocation2 + $0xf0] sm:$0xff] }
 0x21f   : > { %v1421_v14 = vmul.f32 %v2728_v18, %v1395_v31  ;;  %v2103_v25 = vmul.f32 0.5, %v2079_v34  ;;  %v4746_v20 = vadd.f32 %v1842_v41, %v1760_v15  ;;  %v1338_v28 = vadd.f32 %v4549_v33, %v5224_v59  ;;  %v2730_v44 = vld [vmem:[%s4901_s5 + $0x5] ss:$0 sm:$0xff]  ;;  %v1764_v23 = vld [vmem:[#allocation3 + $0xe0] sm:$0xff]  ;;  %v1819_v15 = vld [vmem:[#allocation2 + $0xf1] sm:$0xff] }
 0x220   : > { %v4748_v55 = vadd.f32 %v1843_v39, %v1761_v8  ;;  %v2104_v19 = vmul.f32 0.5, %v2080_v48  ;;  %v1284_v56 = vadd.f32 %v1260_v37, %v1136_v30  ;;  %v1527_v3 = vmul.f32 %v4675_v17, %v1501_v58  ;;  %v1818_v39 = vld [vmem:[#allocation2 + $0xe9] sm:$0xff]  ;;  %v2732_v8 = vld [vmem:[%s4901_s5 + $0x3] ss:$0 sm:$0xff] }
 0x221   : > { %v1339_v52 = vadd.f32 %v1315_v45, %v5225_v4  ;;  %v2127_v62 = vmul.f32 %v2103_v25, %v4637_v47  ;;  %v1943_v31 = vmul.f32 %v4746_v20, %v4746_v20  ;;  %v1444_v33 = vadd.f32 %v4584_v51, %v1338_v28  ;;  %v1607_v47 = vld [vmem:[#allocation2 + $0xef] sm:$0xff]  ;;  %v1448_v28 = vld [vmem:[#allocation3 + $0xd8] sm:$0xff] }
 0x222   : > { %v1944_v35 = vmul.f32 %v4748_v55, %v4748_v55  ;;  %v2128_v11 = vmul.f32 %v2104_v19, %v4639_v0  ;;  %v1390_v50 = vadd.f32 %v4556_v6, %v1284_v56  ;;  %v1472_v0 = vmul.f32 %v4767_v13, %v4595_v12  ;;  %v1342_v6 = vld [vmem:[#allocation3 + $0xd7] sm:$0xff] }
 0x223   : > { %v1445_v42 = vadd.f32 %v1421_v14, %v1339_v52  ;;  %v2151_v27 = vmul.f32 %v2127_v62, %v1911_v38  ;;  %v1967_v17 = vmul.f32 %v1943_v31, %v4746_v20  ;;  %v1550_v51 = vadd.f32 %v4679_v22, %v1444_v33  ;;  %v4781_v22 = vld [vmem:[%s4901_s5 + $0x6] ss:$0 sm:$0xff]  ;;  %v1870_v62 = vld [vmem:[#allocation3 + $0xe1] sm:$0xff]  ;;  %v2227_v31 = vpop.f32.mrf.mxu0 }
 0x224   : > { %v1968_v58 = vmul.f32 %v1944_v35, %v4748_v55  ;;  %v2152_v43 = vmul.f32 %v2128_v11, %v1912_v26  ;;  %v1632_v24 = vmul.f32 %v4703_v7, %v1606_v57  ;;  %v1578_v21 = vmul.f32 %v2730_v44, %v4602_v9  ;;  %v5226_v11 = vld [vmem:[#allocation33_spill] sm:$0xff]  ;;  %2286 = vst.msk [vmem:[%s4725_s11 + $0x8] sm:$0xff] %vm396_vm1, %v2227_v31 }
 0x225   : > { %v1551_v46 = vadd.f32 %v1527_v3, %v1445_v42  ;;  %v1991_v60 = vmul.f32 0.044715, %v1967_v17  ;;  %v1496_v12 = vadd.f32 %v1472_v0, %v1390_v50  ;;  %v1633_v1 = vmul.f32 %v4703_v7, %v1607_v47  ;;  %v5227_v42 = vld [vmem:[#allocation27_spill] sm:$0xff]  ;;  %v2734_v47 = vld [vmem:[%s4901_s5 + $0x8] ss:$0 sm:$0xff] }
 0x226   : > { %v1992_v2 = vmul.f32 0.044715, %v1968_v58  ;;  %v2169_v5 = vpack.c.bf16 %v2152_v43, %v2151_v27  ;;  %v1683_v37 = vmul.f32 %v4781_v22, %v1342_v6  ;;  %v1656_v41 = vadd.f32 %v1632_v24, %v1550_v51 }
 0x227   : > { %v2015_v10 = vadd.f32 %v1991_v60, %v4746_v20  ;;  %v1684_v9 = vmul.f32 %v4781_v22, %v1658_v53  ;;  %v1657_v38 = vadd.f32 %v1633_v1, %v1551_v46  ;;  %v1738_v7 = vmul.f32 %v4718_v32, %v1712_v36 }
 0x228   : > { %v2016_v45 = vadd.f32 %v1992_v2, %v4748_v55  ;;  %2549 = vmatmul.msk.bf16.gmra.mxu0 %vm451_vm2, %v2169_v5  ;;  %v1739_v34 = vmul.f32 %v4718_v32, %v1713_v49  ;;  %v1368_v61 = vmul.f32 %v2732_v8, %v1342_v6  ;;  %v1602_v30 = vadd.f32 %v1578_v21, %v1496_v12  ;;  %v4798_v32 = vld [vmem:[%s4901_s5 + $0x7] ss:$0 sm:$0xff]  ;;  %v1659_v49 = vld [vmem:[#allocation3 + $0xe7] sm:$0xff] }
 0x229   : > { %v2039_v26 = vmul.f32 0.7978846, %v2015_v10  ;;  %v1762_v18 = vadd.f32 %v1738_v7, %v1656_v41  ;;  %v1844_v25 = vmul.f32 %v4737_v29, %v1818_v39  ;;  %v1367_v59 = vmul.f32 %v2732_v8, %v4553_v40 }
 0x22a   : > { %v2040_v48 = vmul.f32 0.7978846, %v2016_v45  ;;  %v1763_v14 = vadd.f32 %v1739_v34, %v1657_v38  ;;  %v1790_v19 = vmul.f32 %v4798_v32, %v1764_v23  ;;  %v1845_v56 = vmul.f32 %v4737_v29, %v1819_v15  ;;  %v1765_v15 = vld [vmem:[#allocation3 + $0xe8] sm:$0xff] }
 0x22b   : > { %2678 = vtanh.f32 %v2039_v26  ;;  %v1707_v3 = vadd.f32 %v1683_v37, %v4698_v16  ;;  %v1708_v4 = vadd.f32 %v1684_v9, %v1602_v30  ;;  %v4803_v52 = vadd.f32 %v1844_v25, %v1762_v18  ;;  %v1554_v16 = vld [vmem:[#allocation3 + $0xd9] sm:$0xff]  ;;  %v1660_v37 = vld [vmem:[#allocation3 + $0xef] sm:$0xff]  ;;  %v2230_v38 = vpop.f32.mrf.mxu0 }
 0x22c   : > { %2680 = vtanh.f32 %v2040_v48  ;;  %v4805_v40 = vadd.f32 %v1845_v56, %v1763_v14  ;;  %v1789_v35 = vmul.f32 %v4798_v32, %v1448_v28  ;;  %v1392_v50 = vadd.f32 %v1368_v61, %v5226_v11  ;;  %2287 = vst.msk [vmem:[%s4725_s11 + $0x10] sm:$0xff] %vm396_vm1, %v2230_v38  ;;  %v1766_v26 = vld [vmem:[#allocation3 + $0xf0] sm:$0xff] }
 0x22d   : > { %v1945_v33 = vmul.f32 %v4803_v52, %v4803_v52  ;;  %v1474_v29 = vmul.f32 %v4767_v13, %v1448_v28  ;;  %v1391_v57 = vadd.f32 %v1367_v59, %v5227_v42  ;;  %v1814_v58 = vadd.f32 %v1790_v19, %v1708_v4  ;;  %v1872_v19 = vld [vmem:[#allocation3 + $0xf1] sm:$0xff] }
 0x22e   : > { %v1946_v27 = vmul.f32 %v4805_v40, %v4805_v40  ;;  %v1813_v17 = vadd.f32 %v1789_v35, %v1707_v3  ;;  %v1896_v0 = vmul.f32 %v2734_v47, %v1870_v62  ;;  %v1473_v53 = vmul.f32 %v4767_v13, %v4597_v63 }
 0x22f   : > { %v1969_v43 = vmul.f32 %v1945_v33, %v4803_v52  ;;  %v1579_v51 = vmul.f32 %v2730_v44, %v4607_v54  ;;  %v1895_v2 = vmul.f32 %v2734_v47, %v1554_v16  ;;  %v1498_v36 = vadd.f32 %v1474_v29, %v1392_v50 }
 0x230   : > { %v1970_v46 = vmul.f32 %v1946_v27, %v4805_v40  ;;  %v1580_v5 = vmul.f32 %v2730_v44, %v1554_v16  ;;  %v1497_v1 = vadd.f32 %v1473_v53, %v1391_v57  ;;  %v1920_v41 = vadd.f32 %v1896_v0, %v1814_v58 }
 0x231   : > { %v2679_v6 = vpop.eup %2678  ;;  %v1993_v21 = vmul.f32 0.044715, %v1969_v43  ;;  %v1919_v45 = vadd.f32 %v1895_v2, %v1813_v17  ;;  %v1685_v9 = vmul.f32 %v4781_v22, %v1659_v49  ;;  %v1686_v34 = vmul.f32 %v4781_v22, %v1660_v37  ;;  %v1871_v22 = vld [vmem:[#allocation3 + $0xe9] sm:$0xff] }
 0x232   : > { %v2681_v60 = vpop.eup %2680  ;;  %v2087_v24 = vadd.f32 1.0, %v2679_v6  ;;  %v1994_v10 = vmul.f32 0.044715, %v1970_v46  ;;  %v1603_v13 = vadd.f32 %v1579_v51, %v1497_v1  ;;  %v1604_v44 = vadd.f32 %v1580_v5, %v1498_v36 }
 0x233   : > { %v2088_v12 = vadd.f32 1.0, %v2681_v60  ;;  %v2017_v63 = vadd.f32 %v1993_v21, %v4803_v52  ;;  %v1791_v25 = vmul.f32 %v4798_v32, %v1765_v15  ;;  %v1792_v59 = vmul.f32 %v4798_v32, %v1766_v26  ;;  %v2232_v3 = vpop.f32.mrf.mxu0 }
 0x234   : > { %v2111_v39 = vmul.f32 0.5, %v2087_v24  ;;  %v2018_v23 = vadd.f32 %v1994_v10, %v4805_v40  ;;  %v1709_v14 = vadd.f32 %v1685_v9, %v1603_v13  ;;  %v1898_v31 = vmul.f32 %v2734_v47, %v1872_v19  ;;  %2288 = vst.msk [vmem:[%s4725_s11 + $0x18] sm:$0xff] %vm396_vm1, %v2232_v3 }
 0x235   : > { %v2112_v54 = vmul.f32 0.5, %v2088_v12  ;;  %v2041_v8 = vmul.f32 0.7978846, %v2017_v63 }
 0x236   : > { %v2135_v7 = vmul.f32 %v2111_v39, %v4746_v20  ;;  %v2042_v48 = vmul.f32 0.7978846, %v2018_v23  ;;  %v1710_v20 = vadd.f32 %v1686_v34, %v1604_v44  ;;  %v1815_v56 = vadd.f32 %v1791_v25, %v1709_v14 }
 0x237   : > { %v2136_v61 = vmul.f32 %v2112_v54, %v4748_v55  ;;  %2682 = vtanh.f32 %v2041_v8  ;;  %v1897_v55 = vmul.f32 %v2734_v47, %v1871_v22 }
 0x238   : > { %v2159_v30 = vmul.f32 %v2135_v7, %v1919_v45  ;;  %2684 = vtanh.f32 %v2042_v48  ;;  %v1816_v62 = vadd.f32 %v1792_v59, %v1710_v20 }
 0x239   : > { %v2160_v18 = vmul.f32 %v2136_v61, %v1920_v41  ;;  %v1921_v32 = vadd.f32 %v1897_v55, %v1815_v56 }
 0x23a   : > { %v1922_v29 = vadd.f32 %v1898_v31, %v1816_v62 }
 0x23b   : > { %v2173_v28 = vpack.c.bf16 %v2160_v18, %v2159_v30  ;;  %v2235_v17 = vpop.f32.mrf.mxu0 }
 0x23c   : > { %2289 = vst.msk [vmem:[%s4725_s11 + $0x20] sm:$0xff] %vm396_vm1, %v2235_v17 }
 0x23d   : > { %2553 = vmatmul.msk.bf16.gmra.mxu1 %vm451_vm2, %v2173_v28  ;;  %v2683_v4 = vpop.eup %2682 }
 0x23e   : > { %v2685_v35 = vpop.eup %2684  ;;  %v2089_v11 = vadd.f32 1.0, %v2683_v4 }
 0x23f   : > { %v2090_v50 = vadd.f32 1.0, %v2685_v35 }
 0x240   : > { %v2113_v33 = vmul.f32 0.5, %v2089_v11 }
 0x241   : > { %v2114_v16 = vmul.f32 0.5, %v2090_v50 }
 0x242   : > { %v2137_v42 = vmul.f32 %v2113_v33, %v4803_v52 }
 0x243   : > { %v2138_v57 = vmul.f32 %v2114_v16, %v4805_v40  ;;  %v2237_v43 = vpop.f32.mrf.mxu0 }
 0x244   : > { %v2161_v27 = vmul.f32 %v2137_v42, %v1921_v32  ;;  %2290 = vst.msk [vmem:[%s4725_s11 + $0x28] sm:$0xff] %vm396_vm1, %v2237_v43 }
 0x245   : > { %v2162_v58 = vmul.f32 %v2138_v57, %v1922_v29 }
 0x247   : > { %v2174_v0 = vpack.c.bf16 %v2162_v58, %v2161_v27 }
 0x24a   : > { %v2260_v47 = vpop.f32.mrf.mxu1 }
 0x24b   : > { %2299 = vst.msk [vmem:[%s4725_s11 + $0x70] sm:$0xff] %vm396_vm1, %v2260_v47  ;;  %v2240_v40 = vpop.f32.mrf.mxu0 }
 0x24c   : > { %2291 = vst.msk [vmem:[%s4725_s11 + $0x30] sm:$0xff] %vm396_vm1, %v2240_v40 }
 0x24d   : > { %2554 = vmatmul.msk.bf16.gmra.mxu1 %vm451_vm2, %v2174_v0 }
 0x252   : > { %v2262_v52 = vpop.f32.mrf.mxu1 }
 0x253   : > { %2300 = vst.msk [vmem:[%s4725_s11 + $0x78] sm:$0xff] %vm396_vm1, %v2262_v52  ;;  %v2242_v6 = vpop.f32.mrf.mxu0 }
 0x254   : > { %2292 = vst.msk [vmem:[%s4725_s11 + $0x38] sm:$0xff] %vm396_vm1, %v2242_v6 }
 0x25b   : > { %v2245_v53 = vpop.f32.mrf.mxu0 }
 0x25c   : > { %2293 = vst.msk [vmem:[%s4725_s11 + $0x40] sm:$0xff] %vm396_vm1, %v2245_v53 }
 0x263   : > { %v2247_v51 = vpop.f32.mrf.mxu0 }
 0x264   : > { %2294 = vst.msk [vmem:[%s4725_s11 + $0x48] sm:$0xff] %vm396_vm1, %v2247_v51 }
 0x275   : > { %v2265_v46 = vpop.f32.mrf.mxu1 }
 0x276   : > { %2301 = vst.msk [vmem:[%s4725_s11 + $0x80] sm:$0xff] %vm396_vm1, %v2265_v46 }
 0x278   : > { %v2250_v60 = vpop.f32.mrf.mxu0 }
 0x279   : > { %2295 = vst.msk [vmem:[%s4725_s11 + $0x50] sm:$0xff] %vm396_vm1, %v2250_v60 }
 0x27d   : > { %v2267_v2 = vpop.f32.mrf.mxu1 }
 0x27e   : > { %2302 = vst.msk [vmem:[%s4725_s11 + $0x88] sm:$0xff] %vm396_vm1, %v2267_v2 }
 0x280   : > { %v2252_v24 = vpop.f32.mrf.mxu0 }
 0x281   : > { %2296 = vst.msk [vmem:[%s4725_s11 + $0x58] sm:$0xff] %vm396_vm1, %v2252_v24 }
 0x296   : > { %v2270_v36 = vpop.f32.mrf.mxu1 }
 0x297   : > { %2303 = vst.msk [vmem:[%s4725_s11 + $0x90] sm:$0xff] %vm396_vm1, %v2270_v36 }
 0x29e   : > { %v2272_v49 = vpop.f32.mrf.mxu1 }
 0x29f   : > { %2304 = vst.msk [vmem:[%s4725_s11 + $0x98] sm:$0xff] %vm396_vm1, %v2272_v49 }
 0x2a5   : > { %v2255_v21 = vpop.f32.mrf.mxu0 }
 0x2a6   : > { %2297 = vst.msk [vmem:[%s4725_s11 + $0x60] sm:$0xff] %vm396_vm1, %v2255_v21 }
 0x2ad   : > { %v2257_v5 = vpop.f32.mrf.mxu0 }
 0x2ae   : > { %2298 = vst.msk [vmem:[%s4725_s11 + $0x68] sm:$0xff] %vm396_vm1, %v2257_v5 }
 0x2ba   : > { %v2275_v12 = vpop.f32.mrf.mxu1 }
 0x2bb   : > { %2305 = vst.msk [vmem:[%s4725_s11 + $0xa0] sm:$0xff] %vm396_vm1, %v2275_v12 }
 0x2c2   : > { %v2277_v1 = vpop.f32.mrf.mxu1 }
 0x2c3   : > { %2306 = vst.msk [vmem:[%s4725_s11 + $0xa8] sm:$0xff] %vm396_vm1, %v2277_v1 }
 0x2ca   : > { %v2280_v37 = vpop.f32.mrf.mxu1 }
 0x2cb   : > { %2307 = vst.msk [vmem:[%s4725_s11 + $0xb0] sm:$0xff] %vm396_vm1, %v2280_v37 }
 0x2d2   : > { %v2282_v10 = vpop.f32.mrf.mxu1 }
 0x2d3   : > { %2308 = vst.msk [vmem:[%s4725_s11 + $0xb8] sm:$0xff] %vm396_vm1, %v2282_v10 }
 0x2d4 PF: > { %s17_s28 = sadd.s32 1, %s2773_s28   ;;  %s5228_s24 = smov %s2765_s26 }
 0x2d5   : > { %p14_p7 = scmp.ge.s32.totalorder %s17_s28, 6   ;;  %s5229_s25 = smov %s2769_s27 }
 0x2d6   : > { %s5230_s26 = smov %s5233_s29  ;;  %s5231_s27 = smov %s5237_s30 }
 0x2d7   :  { %16 = sbr.rel (!%p14_p7) target bundleno = 3 (0x3), region = 84 }

</bundles_post_ra>
